<compile_context>
chip_gen: v6e
topology: v6e:2x2x1
jax: 0.10.0
libtpu: 0.0.40
codegen_flags: <defaults>
</compile_context>

<pallas_src>
import jax
import jax.numpy as jnp
from jax.experimental import pallas as pl
from jax.experimental.pallas import tpu as pltpu


_BN_EPS = 1e-5
_K = 4  # kernel size of every ConvTranspose2d in the Generator

_VMEM_SPEC = pl.BlockSpec(memory_space=pltpu.MemorySpace.VMEM)


# ------------------------------ Pallas kernels ------------------------------ #
def _gemm_bn_relu_kernel(w_ref, p_ref, g_ref, b_ref, o_ref):
    """o = relu(gamma * batchnorm(w @ p) + beta).

    w:(Cout,KK) bf16, p:(KK,M) bf16, g/b:(Cout,1) f32, o:(Cout,M) bf16.
    Batch statistics are computed over the lane-dense M = N*OH*OW axis
    (training-mode BatchNorm2d, biased variance).
    """
    acc = jnp.dot(w_ref[...], p_ref[...], preferred_element_type=jnp.float32)
    mean = jnp.mean(acc, axis=1, keepdims=True)
    var = jnp.mean(jnp.square(acc - mean), axis=1, keepdims=True)
    y = (acc - mean) * jax.lax.rsqrt(var + _BN_EPS) * g_ref[...] + b_ref[...]
    o_ref[...] = jnp.maximum(y, 0.0).astype(o_ref.dtype)


def _gemm_bias_tanh_kernel(w_ref, p_ref, b_ref, o_ref):
    """o = tanh(w @ p + b); b:(Cout,1) f32 broadcast across lanes."""
    acc = jnp.dot(w_ref[...], p_ref[...], preferred_element_type=jnp.float32)
    o_ref[...] = jnp.tanh(acc + b_ref[...]).astype(o_ref.dtype)


# ------------------------------ Pallas wrappers ----------------------------- #
def fused_convT_bn_relu(w_conv, patches, gamma, beta):
    """Single-block whole-problem GEMM + BatchNorm(affine) + ReLU."""
    Cout, KK = w_conv.shape
    M = patches.shape[1]
    return pl.pallas_call(
        _gemm_bn_relu_kernel,
        out_shape=jax.ShapeDtypeStruct((Cout, M), jnp.bfloat16),
        in_specs=[_VMEM_SPEC, _VMEM_SPEC, _VMEM_SPEC, _VMEM_SPEC],
        out_specs=_VMEM_SPEC,
        cost_estimate=pl.CostEstimate(
            flops=2 * Cout * KK * M + 8 * Cout * M,
            transcendentals=Cout,
            bytes_accessed=2 * (Cout * KK + KK * M + Cout * M) + 8 * Cout),
    )(w_conv, patches, gamma, beta)


def fused_convT_bias_tanh(w_conv, patches, bias):
    """GEMM + bias + tanh; lane-dense output dim split into parallel blocks."""
    Cout, KK = w_conv.shape
    M = patches.shape[1]
    # >= 2 parallel output blocks (engages both v7x TensorCores) when divisible.
    tn = M // 2 if (M % 256 == 0) else M
    return pl.pallas_call(
        _gemm_bias_tanh_kernel,
        out_shape=jax.ShapeDtypeStruct((Cout, M), jnp.float32),
        grid=(M // tn,),
        in_specs=[
            pl.BlockSpec((Cout, KK), lambda j: (0, 0)),
            pl.BlockSpec((KK, tn), lambda j: (0, j)),
            pl.BlockSpec((Cout, 1), lambda j: (0, 0)),
        ],
        out_specs=pl.BlockSpec((Cout, tn), lambda j: (0, j)),
        compiler_params=pltpu.CompilerParams(dimension_semantics=("parallel",)),
        cost_estimate=pl.CostEstimate(
            flops=2 * Cout * KK * M,
            transcendentals=Cout * M,
            bytes_accessed=2 * (Cout * KK + KK * M) + 4 * (Cout * M + Cout)),
    )(w_conv, patches, bias)


# ------------------------- ConvTranspose2d lowering glue --------------------- #
def _dilate_pad_im2col(act, stride, padding, K):
    """act: (Cin, N, H, W) channel-major.  Returns (patchesT, OH, OW).

    Lowers ConvTranspose2d(stride, padding, K) to a stride-1 conv on the
    zero-dilated, (K-1-padding)-padded input, expressed as im2col so the
    Pallas kernel sees a plain GEMM.  Dilation and padding are fused into one
    scatter into a single pre-zeroed buffer.  patchesT has shape
    (Cin*K*K, N*OH*OW) with reduction index ordered (cin, kh, kw) to match
    _transposed_conv_weight.
    """
    Cin, N, H, W = act.shape
    p = K - 1 - padding
    Hd, Wd = (H - 1) * stride + 1, (W - 1) * stride + 1
    Hp, Wp = Hd + 2 * p, Wd + 2 * p
    if stride == 1 and p == 0:
        xp = act
    else:
        xp = jnp.zeros((Cin, N, Hp, Wp), act.dtype)
        xp = xp.at[:, :, p:p + Hd:stride, p:p + Wd:stride].set(act)
    OH, OW = Hp - K + 1, Wp - K + 1
    taps = [xp[:, :, kh:kh + OH, kw:kw + OW] for kh in range(K) for kw in range(K)]
    patches = jnp.stack(taps, axis=1)                      # (Cin, K*K, N, OH, OW)
    return patches.reshape(Cin * K * K, N * OH * OW), OH, OW


def _transposed_conv_weight(w_torch_layout):
    """torch ConvTranspose2d weight (Cin, Cout, K, K) -> GEMM LHS (Cout, Cin*K*K).

    Equivalent ordinary-conv weight: spatial flip + in/out channel swap, with
    reduction index order (cin, kh, kw); precomputed once and cast to bf16.
    """
    w_flip = w_torch_layout[:, :, ::-1, ::-1]              # (Cin, Cout, K, K)
    w_conv = jnp.transpose(w_flip, (1, 0, 2, 3))           # (Cout, Cin, K, K)
    return w_conv.reshape(w_conv.shape[0], -1).astype(jnp.bfloat16)


# --------------------------------- Generator --------------------------------- #
def generator_forward(x_nchw, gp):
    """x: (N, nz+num_class, 1, 1) NCHW f32 -> (N, nc, 32, 32) f32."""
    N = x_nchw.shape[0]
    # channel-major, lane-dense layout (C, N, H, W); activations carried in bf16
    act = jnp.transpose(x_nchw, (1, 0, 2, 3)).astype(jnp.bfloat16)

    for i, (stride, padding) in enumerate(((1, 0), (2, 1), (2, 1)), start=1):
        w = gp[f"wg{i}"]
        patches, OH, OW = _dilate_pad_im2col(act, stride, padding, _K)
        out = fused_convT_bn_relu(w, patches, gp[f"gamma{i}"], gp[f"beta{i}"])
        act = out.reshape(w.shape[0], N, OH, OW)           # (Cout, N, OH, OW) bf16

    patches, OH, OW = _dilate_pad_im2col(act, 2, 1, _K)
    out = fused_convT_bias_tanh(gp["wg4"], patches, gp["bias4"])  # (nc, N*32*32) f32
    out = out.reshape(gp["wg4"].shape[0], N, OH, OW)
    return jnp.transpose(out, (1, 0, 2, 3))                # -> NCHW


def init_params(key, nz, nc, ngf, num_class):
    k1, k2, k3, k4, k5 = jax.random.split(key, 5)
    std = 0.02
    return {
        # torch ConvTranspose2d weight layout: (in_channels, out_channels, K, K)
        "w1": std * jax.random.normal(k1, (nz + num_class, ngf * 4, 4, 4), jnp.float32),
        "w2": std * jax.random.normal(k2, (ngf * 4, ngf * 2, 4, 4), jnp.float32),
        "w3": std * jax.random.normal(k3, (ngf * 2, ngf, 4, 4), jnp.float32),
        "w4": std * jax.random.normal(k4, (ngf, nc, 4, 4), jnp.float32),
        "b4": std * jax.random.normal(k5, (nc,), jnp.float32),
        # BatchNorm2d affine params, torch defaults (gamma=1, beta=0)
        "gamma1": jnp.ones((ngf * 4,), jnp.float32), "beta1": jnp.zeros((ngf * 4,), jnp.float32),
        "gamma2": jnp.ones((ngf * 2,), jnp.float32), "beta2": jnp.zeros((ngf * 2,), jnp.float32),
        "gamma3": jnp.ones((ngf,), jnp.float32),     "beta3": jnp.zeros((ngf,), jnp.float32),
    }


def prepare_generator_params(params):
    """One-time transform of torch-layout parameters into kernel-ready form."""
    gp = {}
    for i in (1, 2, 3, 4):
        gp[f"wg{i}"] = _transposed_conv_weight(params[f"w{i}"])
    for i in (1, 2, 3):
        gp[f"gamma{i}"] = params[f"gamma{i}"].reshape(-1, 1).astype(jnp.float32)
        gp[f"beta{i}"] = params[f"beta{i}"].reshape(-1, 1).astype(jnp.float32)
    gp["bias4"] = params["b4"].reshape(-1, 1).astype(jnp.float32)
    return gp


# ------------------------------ Pure-JAX reference --------------------------- #
def _conv_transpose_ref(x, w_torch, stride, padding):
    """ConvTranspose2d via lhs-dilated conv; x:(N,Cin,H,W), w:(Cin,Cout,K,K)."""
    w = jnp.transpose(w_torch[:, :, ::-1, ::-1], (1, 0, 2, 3))  # (Cout, Cin, K, K)
    p = _K - 1 - padding
    return jax.lax.conv_general_dilated(
        x, w, window_strides=(1, 1), padding=[(p, p), (p, p)],
        lhs_dilation=(stride, stride),
        dimension_numbers=("NCHW", "OIHW", "NCHW"),
        precision=jax.lax.Precision.HIGHEST)


def generator_forward_ref(x_nchw, params):
    """Reference forward with the same bf16 rounding points as the kernel path."""
    r = lambda a: a.astype(jnp.bfloat16).astype(jnp.float32)
    act = r(x_nchw)
    for i, (stride, padding) in enumerate(((1, 0), (2, 1), (2, 1)), start=1):
        y = _conv_transpose_ref(act, r(params[f"w{i}"]), stride, padding)
        mean = jnp.mean(y, axis=(0, 2, 3), keepdims=True)
        var = jnp.mean(jnp.square(y - mean), axis=(0, 2, 3), keepdims=True)
        y = (y - mean) * jax.lax.rsqrt(var + _BN_EPS)
        y = y * params[f"gamma{i}"].reshape(1, -1, 1, 1) + params[f"beta{i}"].reshape(1, -1, 1, 1)
        act = r(jnp.maximum(y, 0.0))
    y = _conv_transpose_ref(act, r(params["w4"]), 2, 1) + params["b4"].reshape(1, -1, 1, 1)
    return jnp.tanh(y)


if __name__ == "__main__":
    nz, nc, ngf, num_class = 16, 3, 16, 10
    batch = 2

    key = jax.random.PRNGKey(0)
    pkey, xkey = jax.random.split(key)
    params = init_params(pkey, nz, nc, ngf, num_class)
    gparams = prepare_generator_params(params)     # weights transformed once
    # Generator input: latent + one-hot class, spatial 1x1 (standard ACGAN usage)
    x = jax.random.normal(xkey, (batch, nz + num_class, 1, 1), jnp.float32)

    fwd = jax.jit(generator_forward)
    out = jax.block_until_ready(fwd(x, gparams))

    assert out.shape == (batch, nc, 32, 32), out.shape
    assert bool(jnp.all(jnp.isfinite(out)))
    assert bool(jnp.all(jnp.abs(out) <= 1.0 + 1e-6))

    ref = jax.block_until_ready(jax.jit(generator_forward_ref)(x, params))
    max_err = float(jnp.max(jnp.abs(out - ref)))
    assert max_err < 1e-2, f"max abs error vs reference: {max_err}"
    print("KERNEL_OK")
</pallas_src>

<mosaic_0001>
module attributes {stable_mosaic.version = 11 : i64} {
  func.func @_gemm_bn_relu_kernel(%arg0: memref<64x416xbf16, #tpu.memory_space<vmem>>, %arg1: memref<416x32xbf16, #tpu.memory_space<vmem>>, %arg2: memref<64x1xf32, #tpu.memory_space<vmem>>, %arg3: memref<64x1xf32, #tpu.memory_space<vmem>>, %arg4: memref<64x32xbf16, #tpu.memory_space<vmem>>) attributes {dimension_semantics = [], scalar_prefetch = 0 : i64, scratch_operands = 0 : i64, tpu.core_type = #tpu.core_type<tc>} {
    %c0 = arith.constant 0 : index
    %c0_0 = arith.constant 0 : index
    %0 = vector.load %arg0[%c0, %c0_0] : memref<64x416xbf16, #tpu.memory_space<vmem>>, vector<64x416xbf16>
    %c0_1 = arith.constant 0 : index
    %c0_2 = arith.constant 0 : index
    %1 = vector.load %arg1[%c0_1, %c0_2] : memref<416x32xbf16, #tpu.memory_space<vmem>>, vector<416x32xbf16>
    %cst = arith.constant dense<0.000000e+00> : vector<64x32xf32>
    %2 = tpu.matmul %0, %1, %cst {dimension_numbers = #tpu.dot_dimension_numbers<[1], [0], [0], [1], [0, 0, 1, 1], [], []>} : vector<64x416xbf16>, vector<416x32xbf16>, vector<64x32xf32> -> vector<64x32xf32>
    %cst_3 = arith.constant dense<0.000000e+00> : vector<64xf32>
    %3 = vector.multi_reduction <add>, %2, %cst_3 [1] : vector<64x32xf32> to vector<64xf32>
    %4 = vector.shape_cast %3 : vector<64xf32> to vector<64x1xf32>
    %cst_4 = arith.constant 3.200000e+01 : f32
    %5 = vector.broadcast %cst_4 : f32 to vector<64x1xf32>
    %6 = arith.divf %4, %5 : vector<64x1xf32>
    %7 = vector.broadcast %6 : vector<64x1xf32> to vector<64x32xf32>
    %8 = arith.subf %2, %7 : vector<64x32xf32>
    %9 = arith.mulf %8, %8 : vector<64x32xf32>
    %cst_5 = arith.constant dense<0.000000e+00> : vector<64xf32>
    %10 = vector.multi_reduction <add>, %9, %cst_5 [1] : vector<64x32xf32> to vector<64xf32>
    %11 = vector.shape_cast %10 : vector<64xf32> to vector<64x1xf32>
    %cst_6 = arith.constant 3.200000e+01 : f32
    %12 = vector.broadcast %cst_6 : f32 to vector<64x1xf32>
    %13 = arith.divf %11, %12 : vector<64x1xf32>
    %14 = vector.broadcast %6 : vector<64x1xf32> to vector<64x32xf32>
    %15 = arith.subf %2, %14 : vector<64x32xf32>
    %cst_7 = arith.constant 9.99999974E-6 : f32
    %16 = vector.broadcast %cst_7 : f32 to vector<64x1xf32>
    %17 = arith.addf %13, %16 : vector<64x1xf32>
    %18 = math.rsqrt %17 : vector<64x1xf32>
    %19 = vector.broadcast %18 : vector<64x1xf32> to vector<64x32xf32>
    %20 = arith.mulf %15, %19 : vector<64x32xf32>
    %c0_8 = arith.constant 0 : index
    %c0_9 = arith.constant 0 : index
    %21 = vector.load %arg2[%c0_8, %c0_9] : memref<64x1xf32, #tpu.memory_space<vmem>>, vector<64x1xf32>
    %22 = vector.broadcast %21 : vector<64x1xf32> to vector<64x32xf32>
    %23 = arith.mulf %20, %22 : vector<64x32xf32>
    %c0_10 = arith.constant 0 : index
    %c0_11 = arith.constant 0 : index
    %24 = vector.load %arg3[%c0_10, %c0_11] : memref<64x1xf32, #tpu.memory_space<vmem>>, vector<64x1xf32>
    %25 = vector.broadcast %24 : vector<64x1xf32> to vector<64x32xf32>
    %26 = arith.addf %23, %25 : vector<64x32xf32>
    %cst_12 = arith.constant 0.000000e+00 : f32
    %27 = vector.broadcast %cst_12 : f32 to vector<64x32xf32>
    %28 = arith.maximumf %26, %27 : vector<64x32xf32>
    %29 = arith.truncf %28 : vector<64x32xf32> to vector<64x32xbf16>
    %c0_13 = arith.constant 0 : index
    %c0_14 = arith.constant 0 : index
    %30 = vector.load %arg4[%c0_13, %c0_14] : memref<64x32xbf16, #tpu.memory_space<vmem>>, vector<64x32xbf16>
    tpu.vector_store %arg4[%c0_13, %c0_14], %29 {strides = array<i32>} : memref<64x32xbf16, #tpu.memory_space<vmem>>, vector<64x32xbf16>,
    return
  }
}

module attributes {stable_mosaic.version = 11 : i64} {
  func.func @_gemm_bn_relu_kernel(%arg0: memref<32x1024xbf16, #tpu.memory_space<vmem>>, %arg1: memref<1024x128xbf16, #tpu.memory_space<vmem>>, %arg2: memref<32x1xf32, #tpu.memory_space<vmem>>, %arg3: memref<32x1xf32, #tpu.memory_space<vmem>>, %arg4: memref<32x128xbf16, #tpu.memory_space<vmem>>) attributes {dimension_semantics = [], scalar_prefetch = 0 : i64, scratch_operands = 0 : i64, tpu.core_type = #tpu.core_type<tc>} {
    %c0 = arith.constant 0 : index
    %c0_0 = arith.constant 0 : index
    %0 = vector.load %arg0[%c0, %c0_0] : memref<32x1024xbf16, #tpu.memory_space<vmem>>, vector<32x1024xbf16>
    %c0_1 = arith.constant 0 : index
    %c0_2 = arith.constant 0 : index
    %1 = vector.load %arg1[%c0_1, %c0_2] : memref<1024x128xbf16, #tpu.memory_space<vmem>>, vector<1024x128xbf16>
    %cst = arith.constant dense<0.000000e+00> : vector<32x128xf32>
    %2 = tpu.matmul %0, %1, %cst {dimension_numbers = #tpu.dot_dimension_numbers<[1], [0], [0], [1], [0, 0, 1, 1], [], []>} : vector<32x1024xbf16>, vector<1024x128xbf16>, vector<32x128xf32> -> vector<32x128xf32>
    %cst_3 = arith.constant dense<0.000000e+00> : vector<32xf32>
    %3 = vector.multi_reduction <add>, %2, %cst_3 [1] : vector<32x128xf32> to vector<32xf32>
    %4 = vector.shape_cast %3 : vector<32xf32> to vector<32x1xf32>
    %cst_4 = arith.constant 1.280000e+02 : f32
    %5 = vector.broadcast %cst_4 : f32 to vector<32x1xf32>
    %6 = arith.divf %4, %5 : vector<32x1xf32>
    %7 = vector.broadcast %6 : vector<32x1xf32> to vector<32x128xf32>
    %8 = arith.subf %2, %7 : vector<32x128xf32>
    %9 = arith.mulf %8, %8 : vector<32x128xf32>
    %cst_5 = arith.constant dense<0.000000e+00> : vector<32xf32>
    %10 = vector.multi_reduction <add>, %9, %cst_5 [1] : vector<32x128xf32> to vector<32xf32>
    %11 = vector.shape_cast %10 : vector<32xf32> to vector<32x1xf32>
    %cst_6 = arith.constant 1.280000e+02 : f32
    %12 = vector.broadcast %cst_6 : f32 to vector<32x1xf32>
    %13 = arith.divf %11, %12 : vector<32x1xf32>
    %14 = vector.broadcast %6 : vector<32x1xf32> to vector<32x128xf32>
    %15 = arith.subf %2, %14 : vector<32x128xf32>
    %cst_7 = arith.constant 9.99999974E-6 : f32
    %16 = vector.broadcast %cst_7 : f32 to vector<32x1xf32>
    %17 = arith.addf %13, %16 : vector<32x1xf32>
    %18 = math.rsqrt %17 : vector<32x1xf32>
    %19 = vector.broadcast %18 : vector<32x1xf32> to vector<32x128xf32>
    %20 = arith.mulf %15, %19 : vector<32x128xf32>
    %c0_8 = arith.constant 0 : index
    %c0_9 = arith.constant 0 : index
    %21 = vector.load %arg2[%c0_8, %c0_9] : memref<32x1xf32, #tpu.memory_space<vmem>>, vector<32x1xf32>
    %22 = vector.broadcast %21 : vector<32x1xf32> to vector<32x128xf32>
    %23 = arith.mulf %20, %22 : vector<32x128xf32>
    %c0_10 = arith.constant 0 : index
    %c0_11 = arith.constant 0 : index
    %24 = vector.load %arg3[%c0_10, %c0_11] : memref<32x1xf32, #tpu.memory_space<vmem>>, vector<32x1xf32>
    %25 = vector.broadcast %24 : vector<32x1xf32> to vector<32x128xf32>
    %26 = arith.addf %23, %25 : vector<32x128xf32>
    %cst_12 = arith.constant 0.000000e+00 : f32
    %27 = vector.broadcast %cst_12 : f32 to vector<32x128xf32>
    %28 = arith.maximumf %26, %27 : vector<32x128xf32>
    %29 = arith.truncf %28 : vector<32x128xf32> to vector<32x128xbf16>
    %c0_13 = arith.constant 0 : index
    %c0_14 = arith.constant 0 : index
    %30 = vector.load %arg4[%c0_13, %c0_14] : memref<32x128xbf16, #tpu.memory_space<vmem>>, vector<32x128xbf16>
    tpu.vector_store %arg4[%c0_13, %c0_14], %29 {strides = array<i32>} : memref<32x128xbf16, #tpu.memory_space<vmem>>, vector<32x128xbf16>,
    return
  }
}

module attributes {stable_mosaic.version = 11 : i64} {
  func.func @_gemm_bn_relu_kernel(%arg0: memref<16x512xbf16, #tpu.memory_space<vmem>>, %arg1: memref<512x512xbf16, #tpu.memory_space<vmem>>, %arg2: memref<16x1xf32, #tpu.memory_space<vmem>>, %arg3: memref<16x1xf32, #tpu.memory_space<vmem>>, %arg4: memref<16x512xbf16, #tpu.memory_space<vmem>>) attributes {dimension_semantics = [], scalar_prefetch = 0 : i64, scratch_operands = 0 : i64, tpu.core_type = #tpu.core_type<tc>} {
    %c0 = arith.constant 0 : index
    %c0_0 = arith.constant 0 : index
    %0 = vector.load %arg0[%c0, %c0_0] : memref<16x512xbf16, #tpu.memory_space<vmem>>, vector<16x512xbf16>
    %c0_1 = arith.constant 0 : index
    %c0_2 = arith.constant 0 : index
    %1 = vector.load %arg1[%c0_1, %c0_2] : memref<512x512xbf16, #tpu.memory_space<vmem>>, vector<512x512xbf16>
    %cst = arith.constant dense<0.000000e+00> : vector<16x512xf32>
    %2 = tpu.matmul %0, %1, %cst {dimension_numbers = #tpu.dot_dimension_numbers<[1], [0], [0], [1], [0, 0, 1, 1], [], []>} : vector<16x512xbf16>, vector<512x512xbf16>, vector<16x512xf32> -> vector<16x512xf32>
    %cst_3 = arith.constant dense<0.000000e+00> : vector<16xf32>
    %3 = vector.multi_reduction <add>, %2, %cst_3 [1] : vector<16x512xf32> to vector<16xf32>
    %4 = vector.shape_cast %3 : vector<16xf32> to vector<16x1xf32>
    %cst_4 = arith.constant 5.120000e+02 : f32
    %5 = vector.broadcast %cst_4 : f32 to vector<16x1xf32>
    %6 = arith.divf %4, %5 : vector<16x1xf32>
    %7 = vector.broadcast %6 : vector<16x1xf32> to vector<16x512xf32>
    %8 = arith.subf %2, %7 : vector<16x512xf32>
    %9 = arith.mulf %8, %8 : vector<16x512xf32>
    %cst_5 = arith.constant dense<0.000000e+00> : vector<16xf32>
    %10 = vector.multi_reduction <add>, %9, %cst_5 [1] : vector<16x512xf32> to vector<16xf32>
    %11 = vector.shape_cast %10 : vector<16xf32> to vector<16x1xf32>
    %cst_6 = arith.constant 5.120000e+02 : f32
    %12 = vector.broadcast %cst_6 : f32 to vector<16x1xf32>
    %13 = arith.divf %11, %12 : vector<16x1xf32>
    %14 = vector.broadcast %6 : vector<16x1xf32> to vector<16x512xf32>
    %15 = arith.subf %2, %14 : vector<16x512xf32>
    %cst_7 = arith.constant 9.99999974E-6 : f32
    %16 = vector.broadcast %cst_7 : f32 to vector<16x1xf32>
    %17 = arith.addf %13, %16 : vector<16x1xf32>
    %18 = math.rsqrt %17 : vector<16x1xf32>
    %19 = vector.broadcast %18 : vector<16x1xf32> to vector<16x512xf32>
    %20 = arith.mulf %15, %19 : vector<16x512xf32>
    %c0_8 = arith.constant 0 : index
    %c0_9 = arith.constant 0 : index
    %21 = vector.load %arg2[%c0_8, %c0_9] : memref<16x1xf32, #tpu.memory_space<vmem>>, vector<16x1xf32>
    %22 = vector.broadcast %21 : vector<16x1xf32> to vector<16x512xf32>
    %23 = arith.mulf %20, %22 : vector<16x512xf32>
    %c0_10 = arith.constant 0 : index
    %c0_11 = arith.constant 0 : index
    %24 = vector.load %arg3[%c0_10, %c0_11] : memref<16x1xf32, #tpu.memory_space<vmem>>, vector<16x1xf32>
    %25 = vector.broadcast %24 : vector<16x1xf32> to vector<16x512xf32>
    %26 = arith.addf %23, %25 : vector<16x512xf32>
    %cst_12 = arith.constant 0.000000e+00 : f32
    %27 = vector.broadcast %cst_12 : f32 to vector<16x512xf32>
    %28 = arith.maximumf %26, %27 : vector<16x512xf32>
    %29 = arith.truncf %28 : vector<16x512xf32> to vector<16x512xbf16>
    %c0_13 = arith.constant 0 : index
    %c0_14 = arith.constant 0 : index
    %30 = vector.load %arg4[%c0_13, %c0_14] : memref<16x512xbf16, #tpu.memory_space<vmem>>, vector<16x512xbf16>
    tpu.vector_store %arg4[%c0_13, %c0_14], %29 {strides = array<i32>} : memref<16x512xbf16, #tpu.memory_space<vmem>>, vector<16x512xbf16>,
    return
  }
}

module attributes {stable_mosaic.version = 11 : i64} {
  func.func @_gemm_bias_tanh_kernel(%arg0: i32, %arg1: memref<3x256xbf16, #tpu.memory_space<vmem>>, %arg2: memref<256x1024xbf16, #tpu.memory_space<vmem>>, %arg3: memref<3x1xf32, #tpu.memory_space<vmem>>, %arg4: memref<3x1024xf32, #tpu.memory_space<vmem>>) attributes {dimension_semantics = [#tpu.dimension_semantics<parallel>], iteration_bounds = array<i64: 2>, scalar_prefetch = 0 : i64, scratch_operands = 0 : i64, tpu.core_type = #tpu.core_type<tc>, window_params = [{pipeline_mode = #tpu.pipeline_mode<synchronous>, transform_indices = @transform_0, window_bounds = array<i64: 3, 256>}, {transform_indices = @transform_1, window_bounds = array<i64: 256, 1024>}, {pipeline_mode = #tpu.pipeline_mode<synchronous>, transform_indices = @transform_2, window_bounds = array<i64: 3, 1>}, {transform_indices = @transform_3, window_bounds = array<i64: 3, 1024>}]} {
    %c0 = arith.constant 0 : index
    %c0_0 = arith.constant 0 : index
    %0 = vector.load %arg1[%c0, %c0_0] : memref<3x256xbf16, #tpu.memory_space<vmem>>, vector<3x256xbf16>
    %c0_1 = arith.constant 0 : index
    %c0_2 = arith.constant 0 : index
    %1 = vector.load %arg2[%c0_1, %c0_2] : memref<256x1024xbf16, #tpu.memory_space<vmem>>, vector<256x1024xbf16>
    %cst = arith.constant dense<0.000000e+00> : vector<3x1024xf32>
    %2 = tpu.matmul %0, %1, %cst {dimension_numbers = #tpu.dot_dimension_numbers<[1], [0], [0], [1], [0, 0, 1, 1], [], []>} : vector<3x256xbf16>, vector<256x1024xbf16>, vector<3x1024xf32> -> vector<3x1024xf32>
    %c0_3 = arith.constant 0 : index
    %c0_4 = arith.constant 0 : index
    %3 = vector.load %arg3[%c0_3, %c0_4] : memref<3x1xf32, #tpu.memory_space<vmem>>, vector<3x1xf32>
    %4 = vector.broadcast %3 : vector<3x1xf32> to vector<3x1024xf32>
    %5 = arith.addf %2, %4 : vector<3x1024xf32>
    %6 = math.tanh %5 : vector<3x1024xf32>
    %c0_5 = arith.constant 0 : index
    %c0_6 = arith.constant 0 : index
    %7 = vector.load %arg4[%c0_5, %c0_6] : memref<3x1024xf32, #tpu.memory_space<vmem>>, vector<3x1024xf32>
    tpu.vector_store %arg4[%c0_5, %c0_6], %6 {strides = array<i32>} : memref<3x1024xf32, #tpu.memory_space<vmem>>, vector<3x1024xf32>,
    return
  }
  func.func @transform_0(%arg0: i32) -> (i32, i32) {
    %c0_i32 = arith.constant 0 : i32
    %c0_i32_0 = arith.constant 0 : i32
    %c0_i32_1 = arith.constant 0 : i32
    return %c0_i32, %c0_i32_0 : i32, i32
  }
  func.func @transform_1(%arg0: i32) -> (i32, i32) {
    %c0_i32 = arith.constant 0 : i32
    %c0_i32_0 = arith.constant 0 : i32
    return %c0_i32, %arg0 : i32, i32
  }
  func.func @transform_2(%arg0: i32) -> (i32, i32) {
    %c0_i32 = arith.constant 0 : i32
    %c0_i32_0 = arith.constant 0 : i32
    %c0_i32_1 = arith.constant 0 : i32
    return %c0_i32, %c0_i32_0 : i32, i32
  }
  func.func @transform_3(%arg0: i32) -> (i32, i32) {
    %c0_i32 = arith.constant 0 : i32
    %c0_i32_0 = arith.constant 0 : i32
    return %c0_i32, %arg0 : i32, i32
  }
}

</mosaic_0001>

<bundles_post_ra>
// kernel: generator_forward.4
= control target key start
LH: loop header
LB: loop body
LE: loop exit
PB: predicated region body
PF: predicated region fallthrough
CT: control target
= control target key end

     0   :  { %9 = vsyncpa [#allocation3], 0  ;;  %s942_s15 = smov [#allocation2]   ;;  %s1250_s0 = inlined_call_operand.hbm [shape: bf16[64,416], index: 0, kind: input, shape index: {}]   ;;  %s1251_s1 = inlined_call_operand.vmem [shape: bf16[416,32], index: 1, kind: input, shape index: {}]   ;;  %s1252_s2 = inlined_call_operand.vmem [shape: f32[64,1], index: 2, kind: input, shape index: {}]   ;;  %s1253_s3 = inlined_call_operand.vmem [shape: f32[64,1], index: 3, kind: input, shape index: {}]   ;;  %s1254_s4 = inlined_call_operand.vmem [shape: bf16[64,32], index: 4, kind: output, shape index: {}]  }
   0x1   :  { %s15_s16 = sshll.u32 %s942_s15, 4  ;;  %s16_s16 = int_to_ptr.vmem [resolvable:$true] %s15_s16 }
   0x2   :  { %s928_s17 = scalar_lea.vmem %s16_s16, 2048  ;;  %p933_p1 = scmp.lt.s32.totalorder %s16_s16, %s16_s16 }
   0x3   :  { %p929_p0 = scmp.ne.s32.totalorder %s16_s16, %s928_s17  ;;  %p934_p2 = scmp.lt.s32.totalorder %s928_s17, %s928_s17 }
   0x5   :  { %p935_p3 = por %p934_p2, %p933_p1 }
   0x7   :  { %p936_p4 = pnand %p935_p3, %p929_p0 }
   0x9   :  { %939 = shalt.err (!%p936_p4)
}
   0xa   :  { %s943_s18 = smov 256   ;;  %s944_s19 = smov 16  }
   0xb   :  { %21 = dma.hbm_to_vmem [thread:$0]  %s1250_s0, 2048, %s16_s16, [#allocation3], %s943_s18, %s943_s18, %s944_s19  }
   0xc   :  { %940 = dma.done.wait [#allocation3], 2048  }
   0xd   :  { %941 = vsyncadd [#allocation3], 4294965248  ;;  %v945_v0 = vmov 0   ;;  %v854_v1 = vld [vmem:[%s1251_s1 + $0x78] sm:$0xff]   ;;  %v857_v4 = vld [vmem:[%s1251_s1 + $0x70] sm:$0xff]   ;;  %vm332_vm0 = vcmask 261120  }
   0xe   :  { %410 = vmatprep.subr.bf16.mxu1 %v945_v0  ;;  %853 = vset.pattern.permute.xlu1 %v945_v0  ;;  %v855_v2 = vld [vmem:[%s1251_s1 + $0xb8] sm:$0xff]   ;;  %v858_v5 = vld [vmem:[%s1251_s1 + $0xb0] sm:$0xff]   ;;  %v860_v7 = vld [vmem:[%s1251_s1 + $0x68] sm:$0xff]   ;;  %vm732_vm1 = vcmask 257024  }
   0xf   :  { %852 = vset.pattern.permute.xlu0 %v945_v0  ;;  %808 = vmatprep.subr.bf16.mxu0 %v854_v1  ;;  %v856_v3 = vld [vmem:[%s1251_s1 + $0x38] sm:$0xff]   ;;  %v859_v6 = vld [vmem:[%s1251_s1 + $0x30] sm:$0xff]   ;;  %v861_v8 = vld [vmem:[%s1251_s1 + $0xa8] sm:$0xff]  }
  0x10   :  { %411 = vmatpush1.bf16.msra.mxu1 %v855_v2  ;;  %809 = vmatpush3.bf16.msra.mxu0 %v856_v3  ;;  %v862_v9 = vld [vmem:[%s1251_s1 + $0x28] sm:$0xff]   ;;  %v863_v10 = vld [vmem:[%s1251_s1 + $0x60] sm:$0xff]   ;;  %v866_v13 = vld [vmem:[%s1251_s1 + $0x58] sm:$0xff]  }
  0x11   :  { %412 = vmatprep.subr.bf16.mxu1 %v945_v0  ;;  %810 = vmatprep.subr.bf16.mxu0 %v857_v4  ;;  %v864_v11 = vld [vmem:[%s1251_s1 + $0xa0] sm:$0xff]   ;;  %v867_v14 = vld [vmem:[%s1251_s1 + $0x98] sm:$0xff]   ;;  %v869_v16 = vld [vmem:[%s1251_s1 + $0x50] sm:$0xff]  }
  0x12   :  { %v865_v12 = vld [vmem:[%s1251_s1 + $0x20] sm:$0xff]   ;;  %v868_v15 = vld [vmem:[%s1251_s1 + $0x18] sm:$0xff]   ;;  %v870_v17 = vld [vmem:[%s1251_s1 + $0x90] sm:$0xff]  }
  0x13   :  { %v871_v18 = vld [vmem:[%s1251_s1 + $0x10] sm:$0xff]   ;;  %v872_v19 = vld [vmem:[%s1251_s1 + $0x48] sm:$0xff]   ;;  %v875_v22 = vld [vmem:[%s1251_s1 + $0x40] sm:$0xff]  }
  0x14   :  { %413 = vmatpush1.bf16.msra.mxu1 %v858_v5  ;;  %811 = vmatpush3.bf16.msra.mxu0 %v859_v6  ;;  %v873_v20 = vld [vmem:[%s1251_s1 + $0x88] sm:$0xff]   ;;  %v880_v23 = vld [vmem:[#allocation2 + $0x4] ss:$16 sps:$4 sm:$0xff]   ;;  %v878_v27 = vld [vmem:[#allocation2] ss:$16 sps:$4 sm:$0xff]  }
  0x15   :  { %414 = vmatprep.subr.bf16.mxu1 %v945_v0  ;;  %812 = vmatprep.subr.bf16.mxu0 %v860_v7  ;;  %v874_v21 = vld [vmem:[%s1251_s1 + $0x8] sm:$0xff]   ;;  %v876_v24 = vld [vmem:[%s1251_s1 + $0x80] sm:$0xff]  }
  0x16   :  { %377 = vmatprep.mubr.bf16.mxu0 %v880_v23  ;;  %v877_v25 = vld [vmem:[%s1251_s1] sm:$0xff]   ;;  %v885_v26 = vld [vmem:[#allocation2 + $0xc] ss:$16 sps:$4 sm:$0xff]   ;;  %v883_v31 = vld [vmem:[#allocation2 + $0x8] ss:$16 sps:$4 sm:$0xff]  }
  0x17   :  { %788 = vmatprep.mubr.msk.bf16.mxu1 %vm332_vm0, %v885_v26  ;;  %v881_v28 = vld [vmem:[%s1251_s1 + $0xc8] sm:$0xff]   ;;  %v886_v29 = vld [vmem:[#allocation2 + $0x24] ss:$16 sps:$4 sm:$0xff]   ;;  %v888_v32 = vld [vmem:[#allocation2 + $0x20] ss:$16 sps:$4 sm:$0xff]  }
  0x18   :  { %415 = vmatpush1.bf16.msra.mxu1 %v861_v8  ;;  %813 = vmatpush3.bf16.msra.mxu0 %v862_v9  ;;  %v882_v30 = vld [vmem:[%s1251_s1 + $0xc0] sm:$0xff]   ;;  %v889_v33 = vld [vmem:[#allocation2 + $0x2c] ss:$16 sps:$4 sm:$0xff]   ;;  %v893_v35 = vld [vmem:[#allocation2 + $0x28] ss:$16 sps:$4 sm:$0xff]  }
  0x19   :  { %416 = vmatprep.subr.bf16.mxu1 %v945_v0  ;;  %814 = vmatprep.subr.bf16.mxu0 %v863_v10  ;;  %v891_v34 = vld [vmem:[#allocation2 + $0x44] ss:$16 sps:$4 sm:$0xff]   ;;  %v894_v36 = vld [vmem:[#allocation2 + $0x40] ss:$16 sps:$4 sm:$0xff]   ;;  %v895_v37 = vld [vmem:[#allocation2 + $0x4c] ss:$16 sps:$4 sm:$0xff]  }
  0x1a   :  { %v898_v38 = vld [vmem:[#allocation2 + $0x64] ss:$16 sps:$4 sm:$0xff]   ;;  %v897_v39 = vld [vmem:[#allocation2 + $0x48] ss:$16 sps:$4 sm:$0xff]   ;;  %v900_v40 = vld [vmem:[#allocation2 + $0x60] ss:$16 sps:$4 sm:$0xff]  }
  0x1b   :  { %v901_v41 = vld [vmem:[#allocation2 + $0x6c] ss:$16 sps:$4 sm:$0xff]   ;;  %v903_v42 = vld [vmem:[#allocation2 + $0x68] ss:$16 sps:$4 sm:$0xff]  }
  0x1c   :  { %417 = vmatpush1.bf16.msra.mxu1 %v864_v11  ;;  %815 = vmatpush3.bf16.msra.mxu0 %v865_v12 }
  0x1d   :  { %418 = vmatprep.subr.bf16.mxu1 %v945_v0  ;;  %816 = vmatprep.subr.bf16.mxu0 %v866_v13 }
  0x20   :  { %419 = vmatpush1.bf16.msra.mxu1 %v867_v14  ;;  %817 = vmatpush3.bf16.msra.mxu0 %v868_v15 }
  0x21   :  { %420 = vmatprep.subr.bf16.mxu1 %v945_v0  ;;  %818 = vmatprep.subr.bf16.mxu0 %v869_v16 }
  0x24   :  { %421 = vmatpush1.bf16.msra.mxu1 %v870_v17  ;;  %819 = vmatpush3.bf16.msra.mxu0 %v871_v18 }
  0x25   :  { %422 = vmatprep.subr.bf16.mxu1 %v945_v0  ;;  %820 = vmatprep.subr.bf16.mxu0 %v872_v19 }
  0x28   :  { %423 = vmatpush1.bf16.msra.mxu1 %v873_v20  ;;  %821 = vmatpush3.bf16.msra.mxu0 %v874_v21 }
  0x29   :  { %424 = vmatprep.subr.bf16.mxu1 %v945_v0  ;;  %822 = vmatprep.subr.bf16.mxu0 %v875_v22 }
  0x2c   :  { %425 = vmatpush1.bf16.msra.mxu1 %v876_v24  ;;  %823 = vmatpush3.bf16.msra.mxu0 %v877_v25 }
  0x2d   :  { %438 = vmatprep.subr.bf16.mxu1 %v945_v0 }
  0x2f   :  { %378 = vmatmul.mubr.bf16.vlgmr.msra.gmra.mxu0 %v878_v27 }
  0x30   :  { %439 = vmatpush2.bf16.msra.mxu1 %v881_v28  ;;  %385 = vmatprep.mubr.bf16.mxu0 %v886_v29 }
  0x31   :  { %440 = vmatprep.subr.bf16.mxu1 %v945_v0 }
  0x34   :  { %441 = vmatpush2.bf16.msra.mxu1 %v882_v30  ;;  %v581_v30 = vld [vmem:[%s1252_s2 + $0x8] sm:$0xff] }
  0x37   :  { %443 = vmatmul.mubr.bf16.vlgmr.msra.gmra.mxu1 %v883_v31  ;;  %386 = vmatmul.mubr.bf16.gmra.mxu0 %v888_v32  ;;  %v582_v31 = vld [vmem:[%s1252_s2 + $0x10] sm:$0xff]  ;;  %v583_v32 = vld [vmem:[%s1252_s2 + $0x18] sm:$0xff] }
  0x38   :  { %789 = vmatprep.mubr.msk.bf16.mxu1 %vm332_vm0, %v889_v33  ;;  %393 = vmatprep.mubr.bf16.mxu0 %v891_v34  ;;  %v580_v33 = vld [vmem:[%s1252_s2] sm:$0xff] }
  0x39   :  { %v584_v34 = vld [vmem:[%s1252_s2 + $0x20] sm:$0xff] }
  0x3f   :  { %451 = vmatmul.mubr.bf16.gmra.mxu1 %v893_v35  ;;  %394 = vmatmul.mubr.bf16.gmra.mxu0 %v894_v36  ;;  %v637_v35 = vld [vmem:[%s1253_s3 + $0x8] sm:$0xff] }
  0x40   :  { %790 = vmatprep.mubr.msk.bf16.mxu1 %vm332_vm0, %v895_v37  ;;  %401 = vmatprep.mubr.bf16.mxu0 %v898_v38  ;;  %v585_v36 = vld [vmem:[%s1252_s2 + $0x28] sm:$0xff]  ;;  %v639_v37 = vld [vmem:[%s1253_s3 + $0x18] sm:$0xff]  ;;  %v586_v38 = vld [vmem:[%s1252_s2 + $0x30] sm:$0xff] }
  0x47   :  { %459 = vmatmul.mubr.bf16.gmra.mxu1 %v897_v39  ;;  %402 = vmatmul.mubr.bf16.gmra.mxu0 %v900_v40  ;;  %v641_v39 = vld [vmem:[%s1253_s3 + $0x28] sm:$0xff]  ;;  %v587_v40 = vld [vmem:[%s1252_s2 + $0x38] sm:$0xff] }
  0x48   :  { %791 = vmatprep.mubr.msk.bf16.mxu1 %vm332_vm0, %v901_v41 }
  0x4f   :  { %467 = vmatmul.mubr.bf16.gmra.mxu1 %v903_v42 }
  0xef   :  { %v824_v43 = vpop.f32.mrf.mxu0 }
  0xf1   :  { %v825_v44 = vpop.f32.mrf.mxu0 }
  0xf2   :  { %v826_v46 = vadd.f32 %v825_v44, %v824_v43 }
  0xf3   :  { %v827_v45 = vpop.f32.mrf.mxu0 }
  0xf5   :  { %v828_v47 = vpop.f32.mrf.mxu0 }
  0xf6   :  { %v829_v52 = vadd.f32 %v828_v47, %v827_v45  ;;  %v638_v47 = vld [vmem:[%s1253_s3 + $0x10] sm:$0xff] }
  0xf7   :  { %v444_v48 = vpop.f32.mrf.mxu1  ;;  %v830_v50 = vpop.f32.mrf.mxu0 }
  0xf8   :  { %v1068_v49 = vadd.f32 %v826_v46, %v444_v48  ;;  %v636_v46 = vld [vmem:[%s1253_s3] sm:$0xff] }
  0xf9   :  { %v446_v51 = vpop.f32.mrf.mxu1  ;;  %v831_v53 = vpop.f32.mrf.mxu0  ;;  %v640_v48 = vld [vmem:[%s1253_s3 + $0x20] sm:$0xff] }
  0xfa   :  { %v475_v54 = vsel %vm332_vm0, %v1068_v49, 0.0  ;;  %v832_v59 = vadd.f32 %v831_v53, %v830_v50 }
  0xfb   :  { %v447_v55 = vpop.f32.mrf.mxu1  ;;  %476 = vadd.xlane.f32.xlu0 %v475_v54  ;;  %v833_v57 = vpop.f32.mrf.mxu0 }
  0xfc   :  { %v1072_v56 = vadd.f32 %v829_v52, %v447_v55 }
  0xfd   :  { %v449_v58 = vpop.f32.mrf.mxu1  ;;  %v834_v60 = vpop.f32.mrf.mxu0 }
  0xfe   :  { %v478_v61 = vsel %vm332_vm0, %v1072_v56, 0.0  ;;  %v835_v2 = vadd.f32 %v834_v60, %v833_v57 }
  0xff   :  { %v452_v62 = vpop.f32.mrf.mxu1  ;;  %479 = vadd.xlane.f32.xlu0 %v478_v61  ;;  %v836_v0 = vpop.f32.mrf.mxu0 }
 0x100   :  { %v1076_v63 = vadd.f32 %v832_v59, %v452_v62 }
 0x101   :  { %v454_v1 = vpop.f32.mrf.mxu1  ;;  %v837_v3 = vpop.f32.mrf.mxu0 }
 0x102   :  { %v481_v4 = vsel %vm332_vm0, %v1076_v63, 0.0  ;;  %v838_v9 = vadd.f32 %v837_v3, %v836_v0 }
 0x103   :  { %v455_v5 = vpop.f32.mrf.mxu1  ;;  %482 = vadd.xlane.f32.xlu1 %v481_v4  ;;  %v839_v7 = vpop.f32.mrf.mxu0 }
 0x104   :  { %v1080_v6 = vadd.f32 %v835_v2, %v455_v5 }
 0x105   :  { %v457_v8 = vpop.f32.mrf.mxu1  ;;  %v840_v10 = vpop.f32.mrf.mxu0 }
 0x106   :  { %v484_v11 = vsel %vm332_vm0, %v1080_v6, 0.0  ;;  %v841_v16 = vadd.f32 %v840_v10, %v839_v7 }
 0x107   :  { %v460_v12 = vpop.f32.mrf.mxu1  ;;  %485 = vadd.xlane.f32.xlu1 %v484_v11  ;;  %v842_v14 = vpop.f32.mrf.mxu0 }
 0x108   :  { %v1084_v13 = vadd.f32 %v838_v9, %v460_v12 }
 0x109   :  { %v462_v15 = vpop.f32.mrf.mxu1  ;;  %v843_v18 = vpop.f32.mrf.mxu0 }
 0x10a   :  { %v487_v17 = vsel %vm332_vm0, %v1084_v13, 0.0  ;;  %v844_v21 = vadd.f32 %v843_v18, %v842_v14 }
 0x10b   :  { %v463_v19 = vpop.f32.mrf.mxu1  ;;  %488 = vadd.xlane.f32.xlu0 %v487_v17  ;;  %v845_v41 = vpop.f32.mrf.mxu0 }
 0x10c   :  { %v1088_v20 = vadd.f32 %v841_v16, %v463_v19 }
 0x10d   :  { %v465_v22 = vpop.f32.mrf.mxu1  ;;  %v846_v42 = vpop.f32.mrf.mxu0 }
 0x10e   :  { %v490_v23 = vsel %vm332_vm0, %v1088_v20, 0.0  ;;  %v847_v43 = vadd.f32 %v846_v42, %v845_v41 }
 0x10f   :  { %v468_v24 = vpop.f32.mrf.mxu1  ;;  %491 = vadd.xlane.f32.xlu1 %v490_v23 }
 0x110   :  { %v1092_v25 = vadd.f32 %v844_v21, %v468_v24 }
 0x111   :  { %v470_v26 = vpop.f32.mrf.mxu1 }
 0x112   :  { %v493_v27 = vsel %vm332_vm0, %v1092_v25, 0.0 }
 0x113   :  { %494 = vadd.xlane.f32.xlu0 %v493_v27  ;;  %v471_v28 = vpop.f32.mrf.mxu1 }
 0x114   :  { %v472_v44 = vadd.f32 %v847_v43, %v471_v28 }
 0x115   :  { %v473_v29 = vpop.f32.mrf.mxu1 }
 0x116   :  { %v496_v45 = vsel %vm332_vm0, %v472_v44, 0.0 }
 0x120   :  { %595 = vperm.xlu1 %853, %v581_v30  }
 0x124   :  { %600 = vperm.xlu1 %853, %v582_v31  }
 0x128   :  { %605 = vperm.xlu1 %853, %v583_v32  }
 0x129   :  { %590 = vperm.xlu0 %852, %v580_v33   ;;  %v642_v33 = vld [vmem:[%s1253_s3 + $0x30] sm:$0xff] }
 0x12c   :  { %610 = vperm.xlu1 %853, %v584_v34  }
 0x12d   :  { %651 = vperm.xlu0 %852, %v637_v35  }
 0x130   :  { %615 = vperm.xlu1 %853, %v585_v36  }
 0x131   :  { %661 = vperm.xlu0 %852, %v639_v37  }
 0x134   :  { %620 = vperm.xlu1 %853, %v586_v38  }
 0x135   :  { %671 = vperm.xlu0 %852, %v641_v39  }
 0x138   :  { %625 = vperm.xlu1 %853, %v587_v40  }
 0x15c   :  { %497 = vadd.xlane.f32.xlu1 %v496_v45 }
 0x16d   :  { %646 = vperm.xlu1 %853, %v636_v46  }
 0x171   :  { %656 = vperm.xlu1 %853, %v638_v47  }
 0x175   :  { %666 = vperm.xlu1 %853, %v640_v48  }
 0x184   :  { %v477_v50 = vpop.xlane.xlu0 %476 }
 0x185   :  { %v500_v51 = vmul.f32 0.03125, %v477_v50 }
 0x187   :  { %v1140_v52 = vsub.f32 %v1068_v49, %v500_v51 }
 0x188   :  { %v480_v53 = vpop.xlane.xlu0 %479 }
 0x189   :  { %v516_v54 = vmul.f32 %v1140_v52, %v1140_v52  ;;  %v501_v57 = vmul.f32 0.03125, %v480_v53 }
 0x18b   :  { %v524_v55 = vsel %vm332_vm0, %v516_v54, 0.0  ;;  %v1149_v61 = vsub.f32 %v1072_v56, %v501_v57 }
 0x18c   :  { %v483_v58 = vpop.xlane.xlu1 %482  ;;  %525 = vadd.xlane.f32.xlu0 %v524_v55 }
 0x18d   :  { %v502_v59 = vmul.f32 0.03125, %v483_v58  ;;  %v517_v4 = vmul.f32 %v1149_v61, %v1149_v61 }
 0x18f   :  { %v1146_v60 = vsub.f32 %v1076_v63, %v502_v59  ;;  %v527_v7 = vsel %vm332_vm0, %v517_v4, 0.0 }
 0x190   :  { %v486_v62 = vpop.xlane.xlu1 %485 }
 0x191   :  { %v503_v0 = vmul.f32 0.03125, %v486_v62  ;;  %v518_v49 = vmul.f32 %v1146_v60, %v1146_v60 }
 0x193   :  { %v530_v1 = vsel %vm332_vm0, %v518_v49, 0.0  ;;  %v1155_v2 = vsub.f32 %v1080_v6, %v503_v0 }
 0x194   :  { %531 = vadd.xlane.f32.xlu0 %v530_v1  ;;  %v489_v3 = vpop.xlane.xlu0 %488 }
 0x195   :  { %v504_v63 = vmul.f32 0.03125, %v489_v3  ;;  %v519_v8 = vmul.f32 %v1155_v2, %v1155_v2 }
 0x197   :  { %v1160_v5 = vsub.f32 %v1084_v13, %v504_v63  ;;  %v533_v13 = vsel %vm332_vm0, %v519_v8, 0.0 }
 0x198   :  { %v492_v56 = vpop.xlane.xlu1 %491 }
 0x199   :  { %v505_v9 = vmul.f32 0.03125, %v492_v56  ;;  %528 = vadd.xlane.f32.xlu1 %v527_v7  ;;  %v520_v6 = vmul.f32 %v1160_v5, %v1160_v5 }
 0x19b   :  { %v1168_v10 = vsub.f32 %v1088_v20, %v505_v9  ;;  %v536_v11 = vsel %vm332_vm0, %v520_v6, 0.0  ;;  %v643_v20 = vld [vmem:[%s1253_s3 + $0x38] sm:$0xff] }
 0x19c   :  { %537 = vadd.xlane.f32.xlu0 %v536_v11  ;;  %v495_v12 = vpop.xlane.xlu0 %494  ;;  %v596_v21 = vpop.permute.xlu1 %595 }
 0x19d   :  { %v506_v14 = vmul.f32 0.03125, %v495_v12  ;;  %534 = vadd.xlane.f32.xlu1 %v533_v13  ;;  %v521_v15 = vmul.f32 %v1168_v10, %v1168_v10 }
 0x19f   :  { %v1175_v16 = vsub.f32 %v1092_v25, %v506_v14  ;;  %v539_v17 = vsel %vm332_vm0, %v521_v15, 0.0 }
 0x1a0   :  { %v601_v22 = vpop.permute.xlu1 %600 }
 0x1a1   :  { %540 = vadd.xlane.f32.xlu1 %v539_v17  ;;  %v522_v18 = vmul.f32 %v1175_v16, %v1175_v16 }
 0x1a3   :  { %v542_v19 = vsel %vm332_vm0, %v522_v18, 0.0 }
 0x1a4   :  { %543 = vadd.xlane.f32.xlu0 %v542_v19  ;;  %v1184_v23 = vpop.permute.xlu1 %605  ;;  %v591_v34 = vpop.permute.xlu0 %590 }
 0x1a8   :  { %v1186_v24 = vpop.permute.xlu1 %610  ;;  %v652_v35 = vpop.permute.xlu0 %651 }
 0x1ac   :  { %v1188_v25 = vpop.permute.xlu1 %615  ;;  %v662_v36 = vpop.permute.xlu0 %661 }
 0x1b0   :  { %v1190_v26 = vpop.permute.xlu1 %620  ;;  %v1202_v37 = vpop.permute.xlu0 %671 }
 0x1b4   :  { %v1192_v27 = vpop.permute.xlu1 %625 }
 0x1ba   :  { %681 = vperm.xlu0 %852, %v643_v20  }
 0x1e5   :  { %v498_v28 = vpop.xlane.xlu1 %497 }
 0x1e6   :  { %v507_v29 = vmul.f32 0.03125, %v498_v28 }
 0x1e8   :  { %v1194_v30 = vsub.f32 %v472_v44, %v507_v29 }
 0x1e9   :  { %v647_v38 = vpop.permute.xlu1 %646 }
 0x1ea   :  { %v523_v31 = vmul.f32 %v1194_v30, %v1194_v30 }
 0x1ec   :  { %v545_v32 = vsel %vm332_vm0, %v523_v31, 0.0 }
 0x1ed   :  { %546 = vadd.xlane.f32.xlu1 %v545_v32  ;;  %v657_v41 = vpop.permute.xlu1 %656 }
 0x1f1   :  { %v667_v44 = vpop.permute.xlu1 %666 }
 0x1fe   :  { %676 = vperm.xlu1 %853, %v642_v33  }
 0x215   :  { %v526_v39 = vpop.xlane.xlu0 %525 }
 0x216   :  { %v548_v40 = vmul.f32 0.03125, %v526_v39 }
 0x218   :  { %v556_v42 = vadd.f32 1e-05, %v548_v40 }
 0x21a   :  { %904 = vrsqrt.f32 %v556_v42 }
 0x21d   :  { %v532_v43 = vpop.xlane.xlu0 %531 }
 0x21e   :  { %v550_v45 = vmul.f32 0.03125, %v532_v43 }
 0x220   :  { %v558_v46 = vadd.f32 1e-05, %v550_v45 }
 0x222   :  { %906 = vrsqrt.f32 %v558_v46  ;;  %v529_v47 = vpop.xlane.xlu1 %528 }
 0x223   :  { %v549_v48 = vmul.f32 0.03125, %v529_v47 }
 0x225   :  { %v557_v50 = vadd.f32 1e-05, %v549_v48  ;;  %v538_v51 = vpop.xlane.xlu0 %537 }
 0x226   :  { %v552_v53 = vmul.f32 0.03125, %v538_v51  ;;  %v535_v54 = vpop.xlane.xlu1 %534 }
 0x227   :  { %v905_v55 = vpop.eup %904  ;;  %908 = vrsqrt.f32 %v557_v50  ;;  %v551_v57 = vmul.f32 0.03125, %v535_v54 }
 0x228   :  { %v572_v58 = vmul.f32 %v905_v55, %v1140_v52  ;;  %v560_v59 = vadd.f32 1e-05, %v552_v53 }
 0x229   :  { %v559_v62 = vadd.f32 1e-05, %v551_v57 }
 0x22a   :  { %v628_v0 = vmul.f32 %v591_v34, %v572_v58  ;;  %910 = vrsqrt.f32 %v560_v59  ;;  %v541_v49 = vpop.xlane.xlu1 %540 }
 0x22b   :  { %912 = vrsqrt.f32 %v559_v62  ;;  %v553_v1 = vmul.f32 0.03125, %v541_v49 }
 0x22c   :  { %v684_v3 = vadd.f32 %v647_v38, %v628_v0 }
 0x22d   :  { %v561_v4 = vadd.f32 1e-05, %v553_v1 }
 0x22e   :  { %v692_v63 = vmax.f32 %v684_v3, 0.0 }
 0x22f   :  { %v907_v56 = vpop.eup %906  ;;  %914 = vrsqrt.f32 %v561_v4 }
 0x230   :  { %v800_v7 = vpack.c.bf16 %v692_v63, %v692_v63  ;;  %v574_v8 = vmul.f32 %v907_v56, %v1146_v60 }
 0x232   :  { %v630_v9 = vmul.f32 %v601_v22, %v574_v8  ;;  %733 = vst.msk [vmem:[%s1254_s4] sm:$0xf] %vm732_vm1, %v800_v7 }
 0x234   :  { %v909_v52 = vpop.eup %908  ;;  %v686_v6 = vadd.f32 %v657_v41, %v630_v9 }
 0x235   :  { %v573_v11 = vmul.f32 %v909_v52, %v1149_v61 }
 0x236   :  { %v694_v12 = vmax.f32 %v686_v6, 0.0 }
 0x237   :  { %v911_v13 = vpop.eup %910  ;;  %v629_v14 = vmul.f32 %v596_v21, %v573_v11 }
 0x238   :  { %v913_v15 = vpop.eup %912  ;;  %v802_v17 = vpack.c.bf16 %v694_v12, %v694_v12  ;;  %v576_v18 = vmul.f32 %v911_v13, %v1160_v5 }
 0x239   :  { %v685_v19 = vadd.f32 %v652_v35, %v629_v14  ;;  %v575_v60 = vmul.f32 %v913_v15, %v1155_v2 }
 0x23a   :  { %v632_v20 = vmul.f32 %v1186_v24, %v576_v18  ;;  %735 = vst.msk [vmem:[%s1254_s4 + $0x8] sm:$0xf] %vm732_vm1, %v802_v17 }
 0x23b   :  { %v693_v22 = vmax.f32 %v685_v19, 0.0  ;;  %v631_v61 = vmul.f32 %v1184_v23, %v575_v60 }
 0x23c   :  { %v915_v28 = vpop.eup %914  ;;  %v688_v29 = vadd.f32 %v667_v44, %v632_v20 }
 0x23d   :  { %v801_v21 = vpack.c.bf16 %v693_v22, %v693_v22  ;;  %v687_v31 = vadd.f32 %v662_v36, %v631_v61  ;;  %v577_v32 = vmul.f32 %v915_v28, %v1168_v10 }
 0x23e   :  { %v696_v5 = vmax.f32 %v688_v29, 0.0 }
 0x23f   :  { %v695_v33 = vmax.f32 %v687_v31, 0.0  ;;  %v633_v2 = vmul.f32 %v1188_v25, %v577_v32  ;;  %734 = vst.msk [vmem:[%s1254_s4 + $0x4] sm:$0xf] %vm732_vm1, %v801_v21  ;;  %v544_v25 = vpop.xlane.xlu0 %543 }
 0x240   :  { %v804_v24 = vpack.c.bf16 %v696_v5, %v696_v5  ;;  %v554_v36 = vmul.f32 0.03125, %v544_v25 }
 0x241   :  { %v803_v34 = vpack.c.bf16 %v695_v33, %v695_v33  ;;  %v689_v35 = vadd.f32 %v1202_v37, %v633_v2 }
 0x242   :  { %737 = vst.msk [vmem:[%s1254_s4 + $0x10] sm:$0xf] %vm732_vm1, %v804_v24  ;;  %v562_v37 = vadd.f32 1e-05, %v554_v36 }
 0x243   :  { %v697_v23 = vmax.f32 %v689_v35, 0.0  ;;  %736 = vst.msk [vmem:[%s1254_s4 + $0xc] sm:$0xf] %vm732_vm1, %v803_v34  ;;  %v682_v51 = vpop.permute.xlu0 %681 }
 0x244   :  { %916 = vrsqrt.f32 %v562_v37 }
 0x245   :  { %v805_v10 = vpack.c.bf16 %v697_v23, %v697_v23 }
 0x247   :  { %738 = vst.msk [vmem:[%s1254_s4 + $0x14] sm:$0xf] %vm732_vm1, %v805_v10 }
 0x251   :  { %v917_v38 = vpop.eup %916 }
 0x252   :  { %v578_v39 = vmul.f32 %v917_v38, %v1175_v16 }
 0x254   :  { %v634_v43 = vmul.f32 %v1190_v26, %v578_v39 }
 0x276   :  { %v547_v40 = vpop.xlane.xlu1 %546 }
 0x277   :  { %v555_v41 = vmul.f32 0.03125, %v547_v40 }
 0x279   :  { %v563_v42 = vadd.f32 1e-05, %v555_v41 }
 0x27a   :  { %v677_v44 = vpop.permute.xlu1 %676 }
 0x27b   :  { %918 = vrsqrt.f32 %v563_v42  ;;  %v690_v45 = vadd.f32 %v677_v44, %v634_v43 }
 0x27d   :  { %v698_v46 = vmax.f32 %v690_v45, 0.0 }
 0x27f   :  { %v806_v47 = vpack.c.bf16 %v698_v46, %v698_v46 }
 0x281   :  { %739 = vst.msk [vmem:[%s1254_s4 + $0x18] sm:$0xf] %vm732_vm1, %v806_v47 }
 0x288   :  { %v919_v48 = vpop.eup %918 }
 0x289   :  { %v579_v50 = vmul.f32 %v919_v48, %v1194_v30 }
 0x28b   :  { %v635_v16 = vmul.f32 %v1192_v27, %v579_v50 }
 0x28d   :  { %v691_v53 = vadd.f32 %v682_v51, %v635_v16 }
 0x28f   :  { %v699_v54 = vmax.f32 %v691_v53, 0.0 }
 0x291   :  { %v807_v55 = vpack.c.bf16 %v699_v54, %v699_v54 }
 0x293   :  { %740 = vst.msk [vmem:[%s1254_s4 + $0x1c] sm:$0xf] %vm732_vm1, %v807_v55 }
 0x294   :  { %745 = vsyncpa [#allocation3], 1 }

// kernel: generator_forward.5
= control target key start
LH: loop header
LB: loop body
LE: loop exit
PB: predicated region body
PF: predicated region fallthrough
CT: control target
= control target key end

     0   :  { %s1538_s1 = inlined_call_operand.vmem [shape: bf16[1024,128], index: 1, kind: input, shape index: {}]   ;;  %s1539_s0 = inlined_call_operand.vmem [shape: bf16[32,1024], index: 0, kind: input, shape index: {}]   ;;  %s1540_s2 = inlined_call_operand.vmem [shape: f32[32,1], index: 2, kind: input, shape index: {}]   ;;  %s1541_s3 = inlined_call_operand.vmem [shape: f32[32,1], index: 3, kind: input, shape index: {}]   ;;  %s1542_s4 = inlined_call_operand.vmem [shape: bf16[32,128], index: 4, kind: output, shape index: {}]  }
   0x1   :  { %v1165_v0 = vld [vmem:[%s1538_s1 + $0x78] sm:$0xff]   ;;  %v1169_v4 = vld [vmem:[%s1538_s1 + $0x70] sm:$0xff]   ;;  %v1173_v8 = vld [vmem:[%s1538_s1 + $0x68] sm:$0xff]  }
   0x2   :  { %v1166_v1 = vld [vmem:[%s1538_s1 + $0xf8] sm:$0xff]   ;;  %1050 = vmatprep.subr.bf16.mxu0 %v1165_v0  ;;  %v1170_v5 = vld [vmem:[%s1538_s1 + $0xf0] sm:$0xff]   ;;  %v1174_v9 = vld [vmem:[%s1538_s1 + $0xe8] sm:$0xff]  }
   0x3   :  { %v1167_v2 = vld [vmem:[%s1538_s1 + $0x38] sm:$0xff]   ;;  %1078 = vmatprep.subr.bf16.mxu1 %v1166_v1  ;;  %v1171_v6 = vld [vmem:[%s1538_s1 + $0x30] sm:$0xff]   ;;  %v1175_v10 = vld [vmem:[%s1538_s1 + $0x28] sm:$0xff]  }
   0x4   :  { %v1168_v3 = vld [vmem:[%s1538_s1 + $0xb8] sm:$0xff]   ;;  %1051 = vmatpush3.bf16.msra.mxu0 %v1167_v2  ;;  %v1172_v7 = vld [vmem:[%s1538_s1 + $0xb0] sm:$0xff]   ;;  %v1176_v11 = vld [vmem:[%s1538_s1 + $0xa8] sm:$0xff]  }
   0x5   :  { %1079 = vmatpush3.bf16.msra.mxu1 %v1168_v3  ;;  %1052 = vmatprep.subr.bf16.mxu0 %v1169_v4  ;;  %v1177_v12 = vld [vmem:[%s1538_s1 + $0x60] sm:$0xff]   ;;  %v1181_v16 = vld [vmem:[%s1538_s1 + $0x58] sm:$0xff]   ;;  %v1185_v20 = vld [vmem:[%s1538_s1 + $0x50] sm:$0xff]  }
   0x6   :  { %1080 = vmatprep.subr.bf16.mxu1 %v1170_v5  ;;  %v1178_v13 = vld [vmem:[%s1538_s1 + $0xe0] sm:$0xff]   ;;  %v1182_v17 = vld [vmem:[%s1538_s1 + $0xd8] sm:$0xff]   ;;  %v1186_v21 = vld [vmem:[%s1538_s1 + $0xd0] sm:$0xff]  }
   0x7   :  { %v1179_v14 = vld [vmem:[%s1538_s1 + $0x20] sm:$0xff]   ;;  %v1183_v18 = vld [vmem:[%s1538_s1 + $0x18] sm:$0xff]   ;;  %v1187_v22 = vld [vmem:[%s1538_s1 + $0x10] sm:$0xff]  }
   0x8   :  { %1053 = vmatpush3.bf16.msra.mxu0 %v1171_v6  ;;  %v1180_v15 = vld [vmem:[%s1538_s1 + $0xa0] sm:$0xff]   ;;  %v1184_v19 = vld [vmem:[%s1538_s1 + $0x98] sm:$0xff]   ;;  %v1188_v23 = vld [vmem:[%s1538_s1 + $0x90] sm:$0xff]  }
   0x9   :  { %1081 = vmatpush3.bf16.msra.mxu1 %v1172_v7  ;;  %1054 = vmatprep.subr.bf16.mxu0 %v1173_v8  ;;  %v1189_v24 = vld [vmem:[%s1538_s1 + $0x48] sm:$0xff]   ;;  %v1193_v28 = vld [vmem:[%s1538_s1 + $0x40] sm:$0xff]   ;;  %v1197_v40 = vld [vmem:[%s1538_s1 + $0x178] sm:$0xff]  }
   0xa   :  { %1082 = vmatprep.subr.bf16.mxu1 %v1174_v9  ;;  %v1190_v25 = vld [vmem:[%s1538_s1 + $0xc8] sm:$0xff]   ;;  %v1194_v29 = vld [vmem:[%s1538_s1 + $0xc0] sm:$0xff]   ;;  %v1198_v41 = vld [vmem:[%s1538_s1 + $0x1f8] sm:$0xff]  }
   0xb   :  { %v1191_v26 = vld [vmem:[%s1538_s1 + $0x8] sm:$0xff]   ;;  %v1195_v30 = vld [vmem:[%s1538_s1] sm:$0xff]   ;;  %v1199_v42 = vld [vmem:[%s1538_s1 + $0x138] sm:$0xff]  }
   0xc   :  { %1055 = vmatpush3.bf16.msra.mxu0 %v1175_v10  ;;  %v1192_v27 = vld [vmem:[%s1538_s1 + $0x88] sm:$0xff]   ;;  %v1196_v31 = vld [vmem:[%s1538_s1 + $0x80] sm:$0xff]   ;;  %v1200_v43 = vld [vmem:[%s1538_s1 + $0x1b8] sm:$0xff]  }
   0xd   :  { %1083 = vmatpush3.bf16.msra.mxu1 %v1176_v11  ;;  %1056 = vmatprep.subr.bf16.mxu0 %v1177_v12  ;;  %v18_v32 = vld [vmem:[%s1539_s0] sm:$0xff]  ;;  %v19_v34 = vld [vmem:[%s1539_s0 + $0x8] sm:$0xff]  ;;  %v1201_v44 = vld [vmem:[%s1538_s1 + $0x170] sm:$0xff]  }
   0xe   :  { %1084 = vmatprep.subr.bf16.mxu1 %v1178_v13  ;;  %v22_v33 = vld [vmem:[%s1539_s0 + $0x20] sm:$0xff]  ;;  %v23_v37 = vld [vmem:[%s1539_s0 + $0x28] sm:$0xff]  ;;  %v1202_v45 = vld [vmem:[%s1538_s1 + $0x1f0] sm:$0xff]  }
   0xf   :  { %v951_v35 = vcombine.low %v18_v32, %v22_v33  ;;  %v952_v36 = vcombine.high %v18_v32, %v22_v33  ;;  %v953_v38 = vcombine.low %v19_v34, %v23_v37  ;;  %v954_v39 = vcombine.high %v19_v34, %v23_v37  ;;  %v1203_v46 = vld [vmem:[%s1538_s1 + $0x130] sm:$0xff]   ;;  %v1205_v48 = vld [vmem:[%s1538_s1 + $0x168] sm:$0xff]   ;;  %v1209_v52 = vld [vmem:[%s1538_s1 + $0x160] sm:$0xff]  }
  0x10   :  { %1057 = vmatpush3.bf16.msra.mxu0 %v1179_v14  ;;  %v1204_v47 = vld [vmem:[%s1538_s1 + $0x1b0] sm:$0xff]   ;;  %v1206_v49 = vld [vmem:[%s1538_s1 + $0x1e8] sm:$0xff]   ;;  %v1210_v53 = vld [vmem:[%s1538_s1 + $0x1e0] sm:$0xff]  }
  0x11   :  { %1085 = vmatpush3.bf16.msra.mxu1 %v1180_v15  ;;  %1058 = vmatprep.subr.bf16.mxu0 %v1181_v16  ;;  %v1207_v50 = vld [vmem:[%s1538_s1 + $0x128] sm:$0xff]   ;;  %v1211_v54 = vld [vmem:[%s1538_s1 + $0x120] sm:$0xff]   ;;  %v1213_v56 = vld [vmem:[%s1538_s1 + $0x158] sm:$0xff]  }
  0x12   :  { %1086 = vmatprep.subr.bf16.mxu1 %v1182_v17  ;;  %658 = vmatprep.mubr.bf16.mxu0 %v952_v36  ;;  %v1208_v51 = vld [vmem:[%s1538_s1 + $0x1a8] sm:$0xff]   ;;  %v1212_v55 = vld [vmem:[%s1538_s1 + $0x1a0] sm:$0xff]   ;;  %v1214_v57 = vld [vmem:[%s1538_s1 + $0x1d8] sm:$0xff]  }
  0x13   :  { %707 = vmatprep.mubr.bf16.mxu1 %v954_v39  ;;  %v26_v58 = vld [vmem:[%s1539_s0 + $0x40] sm:$0xff]  ;;  %v27_v61 = vld [vmem:[%s1539_s0 + $0x48] sm:$0xff]  ;;  %v1215_v1 = vld [vmem:[%s1538_s1 + $0x118] sm:$0xff]  }
  0x14   :  { %1059 = vmatpush3.bf16.msra.mxu0 %v1183_v18  ;;  %v30_v59 = vld [vmem:[%s1539_s0 + $0x60] sm:$0xff]  ;;  %v31_v62 = vld [vmem:[%s1539_s0 + $0x68] sm:$0xff]  ;;  %v1216_v3 = vld [vmem:[%s1538_s1 + $0x198] sm:$0xff]  }
  0x15   :  { %1087 = vmatpush3.bf16.msra.mxu1 %v1184_v19  ;;  %1060 = vmatprep.subr.bf16.mxu0 %v1185_v20  ;;  %v960_v60 = vcombine.high %v26_v58, %v30_v59  ;;  %v959_v63 = vcombine.low %v26_v58, %v30_v59  ;;  %v962_v0 = vcombine.high %v27_v61, %v31_v62  ;;  %v1217_v4 = vld [vmem:[%s1538_s1 + $0x150] sm:$0xff]   ;;  %v1221_v8 = vld [vmem:[%s1538_s1 + $0x148] sm:$0xff]   ;;  %v1225_v12 = vld [vmem:[%s1538_s1 + $0x140] sm:$0xff]  }
  0x16   :  { %1088 = vmatprep.subr.bf16.mxu1 %v1186_v21  ;;  %v961_v2 = vcombine.low %v27_v61, %v31_v62  ;;  %v1218_v5 = vld [vmem:[%s1538_s1 + $0x1d0] sm:$0xff]   ;;  %v1222_v9 = vld [vmem:[%s1538_s1 + $0x1c8] sm:$0xff]   ;;  %v1226_v13 = vld [vmem:[%s1538_s1 + $0x1c0] sm:$0xff]  }
  0x17   :  { %v1219_v6 = vld [vmem:[%s1538_s1 + $0x110] sm:$0xff]   ;;  %v1223_v10 = vld [vmem:[%s1538_s1 + $0x108] sm:$0xff]   ;;  %v1227_v14 = vld [vmem:[%s1538_s1 + $0x100] sm:$0xff]  }
  0x18   :  { %1061 = vmatpush3.bf16.msra.mxu0 %v1187_v22  ;;  %v1220_v7 = vld [vmem:[%s1538_s1 + $0x190] sm:$0xff]   ;;  %v1224_v11 = vld [vmem:[%s1538_s1 + $0x188] sm:$0xff]   ;;  %v1228_v15 = vld [vmem:[%s1538_s1 + $0x180] sm:$0xff]  }
  0x19   :  { %1089 = vmatpush3.bf16.msra.mxu1 %v1188_v23  ;;  %1062 = vmatprep.subr.bf16.mxu0 %v1189_v24  ;;  %v20_v16 = vld [vmem:[%s1539_s0 + $0x10] sm:$0xff]  ;;  %v21_v18 = vld [vmem:[%s1539_s0 + $0x18] sm:$0xff] }
  0x1a   :  { %1090 = vmatprep.subr.bf16.mxu1 %v1190_v25  ;;  %v24_v17 = vld [vmem:[%s1539_s0 + $0x30] sm:$0xff]  ;;  %v25_v19 = vld [vmem:[%s1539_s0 + $0x38] sm:$0xff] }
  0x1b   :  { %v955_v20 = vcombine.low %v20_v16, %v24_v17  ;;  %v956_v21 = vcombine.high %v20_v16, %v24_v17  ;;  %v957_v22 = vcombine.low %v21_v18, %v25_v19  ;;  %v958_v23 = vcombine.high %v21_v18, %v25_v19  ;;  %v28_v24 = vld [vmem:[%s1539_s0 + $0x50] sm:$0xff] }
  0x1c   :  { %1063 = vmatpush3.bf16.msra.mxu0 %v1191_v26  ;;  %v32_v25 = vld [vmem:[%s1539_s0 + $0x70] sm:$0xff]  ;;  %v29_v26 = vld [vmem:[%s1539_s0 + $0x58] sm:$0xff] }
  0x1d   :  { %1091 = vmatpush3.bf16.msra.mxu1 %v1192_v27  ;;  %1064 = vmatprep.subr.bf16.mxu0 %v1193_v28  ;;  %v964_v27 = vcombine.high %v28_v24, %v32_v25  ;;  %v33_v28 = vld [vmem:[%s1539_s0 + $0x78] sm:$0xff] }
  0x1e   :  { %1092 = vmatprep.subr.bf16.mxu1 %v1194_v29  ;;  %v966_v29 = vcombine.high %v29_v26, %v33_v28 }
  0x20   :  { %1065 = vmatpush3.bf16.msra.mxu0 %v1195_v30  ;;  %v963_v30 = vcombine.low %v28_v24, %v32_v25 }
  0x21   :  { %1093 = vmatpush3.bf16.msra.mxu1 %v1196_v31  ;;  %1106 = vmatprep.subr.bf16.mxu0 %v1197_v40  ;;  %v965_v31 = vcombine.low %v29_v26, %v33_v28  ;;  %v1237_v28 = vmov 0  }
  0x22   :  { %1134 = vmatprep.subr.bf16.mxu1 %v1198_v41  ;;  %1164 = vset.pattern.permute.xlu1 %v1237_v28 }
  0x23   :  { %659 = vmatmul.mubr.bf16.vlgmr.msra.gmra.mxu0 %v951_v35  ;;  %1163 = vset.pattern.permute.xlu0 %v1237_v28 }
  0x24   :  { %708 = vmatmul.mubr.bf16.vlgmr.msra.gmra.mxu1 %v953_v38  ;;  %1107 = vmatpush3.bf16.msra.mxu0 %v1199_v42 }
  0x25   :  { %1135 = vmatpush3.bf16.msra.mxu1 %v1200_v43  ;;  %1108 = vmatprep.subr.bf16.mxu0 %v1201_v44 }
  0x26   :  { %1136 = vmatprep.subr.bf16.mxu1 %v1202_v45  ;;  %666 = vmatprep.mubr.bf16.mxu0 %v960_v60 }
  0x27   :  { %715 = vmatprep.mubr.bf16.mxu1 %v962_v0 }
  0x28   :  { %1109 = vmatpush3.bf16.msra.mxu0 %v1203_v46 }
  0x29   :  { %1137 = vmatpush3.bf16.msra.mxu1 %v1204_v47  ;;  %1110 = vmatprep.subr.bf16.mxu0 %v1205_v48 }
  0x2a   :  { %1138 = vmatprep.subr.bf16.mxu1 %v1206_v49 }
  0x2b   :  { %667 = vmatmul.mubr.bf16.gmra.mxu0 %v959_v63 }
  0x2c   :  { %1111 = vmatpush3.bf16.msra.mxu0 %v1207_v50  ;;  %716 = vmatmul.mubr.bf16.gmra.mxu1 %v961_v2 }
  0x2d   :  { %1139 = vmatpush3.bf16.msra.mxu1 %v1208_v51  ;;  %1112 = vmatprep.subr.bf16.mxu0 %v1209_v52 }
  0x2e   :  { %1140 = vmatprep.subr.bf16.mxu1 %v1210_v53  ;;  %756 = vmatprep.mubr.bf16.mxu0 %v956_v21 }
  0x2f   :  { %805 = vmatprep.mubr.bf16.mxu1 %v958_v23 }
  0x30   :  { %1113 = vmatpush3.bf16.msra.mxu0 %v1211_v54 }
  0x31   :  { %1141 = vmatpush3.bf16.msra.mxu1 %v1212_v55  ;;  %1114 = vmatprep.subr.bf16.mxu0 %v1213_v56 }
  0x32   :  { %1142 = vmatprep.subr.bf16.mxu1 %v1214_v57 }
  0x34   :  { %1115 = vmatpush3.bf16.msra.mxu0 %v1215_v1 }
  0x35   :  { %1143 = vmatpush3.bf16.msra.mxu1 %v1216_v3  ;;  %1116 = vmatprep.subr.bf16.mxu0 %v1217_v4 }
  0x36   :  { %1144 = vmatprep.subr.bf16.mxu1 %v1218_v5 }
  0x38   :  { %1117 = vmatpush3.bf16.msra.mxu0 %v1219_v6 }
  0x39   :  { %1145 = vmatpush3.bf16.msra.mxu1 %v1220_v7  ;;  %1118 = vmatprep.subr.bf16.mxu0 %v1221_v8 }
  0x3a   :  { %1146 = vmatprep.subr.bf16.mxu1 %v1222_v9 }
  0x3c   :  { %1119 = vmatpush3.bf16.msra.mxu0 %v1223_v10 }
  0x3d   :  { %1147 = vmatpush3.bf16.msra.mxu1 %v1224_v11  ;;  %1120 = vmatprep.subr.bf16.mxu0 %v1225_v12 }
  0x3e   :  { %1148 = vmatprep.subr.bf16.mxu1 %v1226_v13 }
  0x40   :  { %1121 = vmatpush3.bf16.msra.mxu0 %v1227_v14 }
  0x41   :  { %1149 = vmatpush3.bf16.msra.mxu1 %v1228_v15 }
  0x43   :  { %757 = vmatmul.mubr.bf16.vlgmr.msra.gmra.mxu0 %v955_v20 }
  0x44   :  { %806 = vmatmul.mubr.bf16.vlgmr.msra.gmra.mxu1 %v957_v22  ;;  %764 = vmatprep.mubr.bf16.mxu0 %v964_v27 }
  0x45   :  { %813 = vmatprep.mubr.bf16.mxu1 %v966_v29 }
  0x4b   :  { %765 = vmatmul.mubr.bf16.gmra.mxu0 %v963_v30 }
  0x4c   :  { %814 = vmatmul.mubr.bf16.gmra.mxu1 %v965_v31 }
  0xe3   :  { %v1066_v32 = vpop.f32.mrf.mxu0 }
  0xe4   :  { %v1094_v33 = vpop.f32.mrf.mxu1 }
  0xe5   :  { %v1067_v34 = vpop.f32.mrf.mxu0 }
  0xe6   :  { %v1095_v35 = vpop.f32.mrf.mxu1  ;;  %v1068_v48 = vadd.f32 %v1067_v34, %v1066_v32 }
  0xe7   :  { %v1069_v36 = vpop.f32.mrf.mxu0  ;;  %v1096_v49 = vadd.f32 %v1095_v35, %v1094_v33 }
  0xe8   :  { %v1097_v37 = vpop.f32.mrf.mxu1 }
  0xe9   :  { %v1070_v38 = vpop.f32.mrf.mxu0  ;;  %v710_v54 = vadd.f32 %v1096_v49, %v1068_v48 }
  0xea   :  { %v1098_v39 = vpop.f32.mrf.mxu1  ;;  %v1071_v55 = vadd.f32 %v1070_v38, %v1069_v36 }
  0xeb   :  { %v1072_v40 = vpop.f32.mrf.mxu0  ;;  %v1099_v56 = vadd.f32 %v1098_v39, %v1097_v37 }
  0xec   :  { %v1100_v41 = vpop.f32.mrf.mxu1 }
  0xed   :  { %v1073_v42 = vpop.f32.mrf.mxu0  ;;  %v713_v2 = vadd.f32 %v1099_v56, %v1071_v55 }
  0xee   :  { %v1101_v43 = vpop.f32.mrf.mxu1  ;;  %v1074_v62 = vadd.f32 %v1073_v42, %v1072_v40  ;;  %v869_v42 = vld [vmem:[%s1540_s2 + $0x10] sm:$0xff] }
  0xef   :  { %v1075_v44 = vpop.f32.mrf.mxu0  ;;  %v1102_v63 = vadd.f32 %v1101_v43, %v1100_v41  ;;  %v868_v41 = vld [vmem:[%s1540_s2 + $0x8] sm:$0xff]  ;;  %v870_v43 = vld [vmem:[%s1540_s2 + $0x18] sm:$0xff] }
  0xf0   :  { %v1103_v45 = vpop.f32.mrf.mxu1 }
  0xf1   :  { %v1076_v46 = vpop.f32.mrf.mxu0  ;;  %v718_v9 = vadd.f32 %v1102_v63, %v1074_v62 }
  0xf2   :  { %v1104_v47 = vpop.f32.mrf.mxu1  ;;  %v1077_v10 = vadd.f32 %v1076_v46, %v1075_v44  ;;  %v867_v44 = vld [vmem:[%s1540_s2] sm:$0xff]  ;;  %v896_v46 = vld [vmem:[%s1541_s3 + $0x8] sm:$0xff] }
  0xf3   :  { %v1105_v13 = vadd.f32 %v1104_v47, %v1103_v45  ;;  %v895_v45 = vld [vmem:[%s1541_s3] sm:$0xff]  ;;  %v897_v47 = vld [vmem:[%s1541_s3 + $0x10] sm:$0xff] }
  0xf5   :  { %v721_v22 = vadd.f32 %v1105_v13, %v1077_v10 }
 0x103   :  { %v1122_v50 = vpop.f32.mrf.mxu0 }
 0x104   :  { %v1150_v51 = vpop.f32.mrf.mxu1 }
 0x105   :  { %v1123_v52 = vpop.f32.mrf.mxu0 }
 0x106   :  { %v1151_v53 = vpop.f32.mrf.mxu1  ;;  %v1124_v57 = vadd.f32 %v1123_v52, %v1122_v50  ;;  %v898_v52 = vld [vmem:[%s1541_s3 + $0x18] sm:$0xff] }
 0x107   :  { %v1125_v58 = vpop.f32.mrf.mxu0  ;;  %v1152_v61 = vadd.f32 %v1151_v53, %v1150_v51 }
 0x108   :  { %v1153_v59 = vpop.f32.mrf.mxu1  ;;  %v759_v60 = vadd.f32 %v1124_v57, %v710_v54 }
 0x109   :  { %v1126_v0 = vpop.f32.mrf.mxu0 }
 0x10a   :  { %v1154_v1 = vpop.f32.mrf.mxu1  ;;  %v1127_v3 = vadd.f32 %v1126_v0, %v1125_v58  ;;  %v808_v4 = vadd.f32 %v1152_v61, %v759_v60 }
 0x10b   :  { %v1128_v5 = vpop.f32.mrf.mxu0  ;;  %v1155_v8 = vadd.f32 %v1154_v1, %v1153_v59 }
 0x10c   :  { %v1156_v6 = vpop.f32.mrf.mxu1  ;;  %v762_v7 = vadd.f32 %v1127_v3, %v713_v2  ;;  %822 = vadd.xlane.f32.xlu0 %v808_v4 }
 0x10d   :  { %v1129_v11 = vpop.f32.mrf.mxu0 }
 0x10e   :  { %v1157_v12 = vpop.f32.mrf.mxu1  ;;  %v1130_v14 = vadd.f32 %v1129_v11, %v1128_v5  ;;  %v811_v16 = vadd.f32 %v1155_v8, %v762_v7 }
 0x10f   :  { %v1158_v15 = vadd.f32 %v1157_v12, %v1156_v6  ;;  %v1131_v17 = vpop.f32.mrf.mxu0 }
 0x110   :  { %v1159_v18 = vpop.f32.mrf.mxu1  ;;  %v767_v19 = vadd.f32 %v1130_v14, %v718_v9  ;;  %824 = vadd.xlane.f32.xlu0 %v811_v16 }
 0x111   :  { %v1132_v20 = vpop.f32.mrf.mxu0 }
 0x112   :  { %v1160_v21 = vpop.f32.mrf.mxu1  ;;  %v1133_v23 = vadd.f32 %v1132_v20, %v1131_v17  ;;  %v816_v25 = vadd.f32 %v1158_v15, %v767_v19 }
 0x113   :  { %v1161_v24 = vadd.f32 %v1160_v21, %v1159_v18 }
 0x114   :  { %v770_v26 = vadd.f32 %v1133_v23, %v721_v22  ;;  %826 = vadd.xlane.f32.xlu1 %v816_v25 }
 0x116   :  { %v819_v27 = vadd.f32 %v1161_v24, %v770_v26 }
 0x118   :  { %828 = vadd.xlane.f32.xlu1 %v819_v27 }
 0x195   :  { %v823_v29 = vpop.xlane.xlu0 %822 }
 0x196   :  { %v831_v30 = vmul.f32 0.0078125, %v823_v29 }
 0x198   :  { %v835_v31 = vsub.f32 %v808_v4, %v831_v30 }
 0x199   :  { %v825_v32 = vpop.xlane.xlu0 %824 }
 0x19a   :  { %v832_v33 = vmul.f32 0.0078125, %v825_v32  ;;  %v839_v34 = vmul.f32 %v835_v31, %v835_v31 }
 0x19c   :  { %v836_v35 = vsub.f32 %v811_v16, %v832_v33  ;;  %843 = vadd.xlane.f32.xlu0 %v839_v34 }
 0x19d   :  { %v827_v36 = vpop.xlane.xlu1 %826 }
 0x19e   :  { %v833_v37 = vmul.f32 0.0078125, %v827_v36  ;;  %v840_v38 = vmul.f32 %v836_v35, %v836_v35 }
 0x1a0   :  { %v1503_v39 = vsub.f32 %v816_v25, %v833_v37  ;;  %845 = vadd.xlane.f32.xlu1 %v840_v38 }
 0x1a1   :  { %v829_v48 = vpop.xlane.xlu1 %828 }
 0x1a2   :  { %v841_v40 = vmul.f32 %v1503_v39, %v1503_v39  ;;  %v834_v49 = vmul.f32 0.0078125, %v829_v48 }
 0x1a4   :  { %847 = vadd.xlane.f32.xlu0 %v841_v40  ;;  %v838_v50 = vsub.f32 %v819_v27, %v834_v49 }
 0x1a6   :  { %v842_v51 = vmul.f32 %v838_v50, %v838_v50 }
 0x1b1   :  { %878 = vperm.xlu1 %1164, %v868_v41  }
 0x1b5   :  { %883 = vperm.xlu1 %1164, %v869_v42  }
 0x1b9   :  { %888 = vperm.xlu1 %1164, %v870_v43  }
 0x1ba   :  { %873 = vperm.xlu0 %1163, %v867_v44  }
 0x1bd   :  { %901 = vperm.xlu1 %1164, %v895_v45  }
 0x1c1   :  { %906 = vperm.xlu1 %1164, %v896_v46  }
 0x1c5   :  { %911 = vperm.xlu1 %1164, %v897_v47  }
 0x1e9   :  { %849 = vadd.xlane.f32.xlu1 %v842_v51 }
 0x1fa   :  { %916 = vperm.xlu1 %1164, %v898_v52  }
 0x225   :  { %v844_v53 = vpop.xlane.xlu0 %843 }
 0x226   :  { %v851_v54 = vmul.f32 0.0078125, %v844_v53 }
 0x228   :  { %v855_v55 = vadd.f32 1e-05, %v851_v54 }
 0x229   :  { %v846_v56 = vpop.xlane.xlu1 %845 }
 0x22a   :  { %1229 = vrsqrt.f32 %v855_v55  ;;  %v852_v57 = vmul.f32 0.0078125, %v846_v56 }
 0x22c   :  { %v856_v58 = vadd.f32 1e-05, %v852_v57 }
 0x22d   :  { %v879_v59 = vpop.permute.xlu1 %878  ;;  %v848_v61 = vpop.xlane.xlu0 %847 }
 0x22e   :  { %1231 = vrsqrt.f32 %v856_v58  ;;  %v853_v13 = vmul.f32 0.0078125, %v848_v61 }
 0x230   :  { %v857_v14 = vadd.f32 1e-05, %v853_v13 }
 0x231   :  { %v884_v60 = vpop.permute.xlu1 %883 }
 0x232   :  { %1233 = vrsqrt.f32 %v857_v14 }
 0x235   :  { %v889_v62 = vpop.permute.xlu1 %888  ;;  %v874_v0 = vpop.permute.xlu0 %873 }
 0x237   :  { %v1230_v63 = vpop.eup %1229 }
 0x238   :  { %v863_v1 = vmul.f32 %v1230_v63, %v835_v31 }
 0x239   :  { %v902_v2 = vpop.permute.xlu1 %901 }
 0x23a   :  { %v891_v3 = vmul.f32 %v874_v0, %v863_v1 }
 0x23b   :  { %v1232_v4 = vpop.eup %1231 }
 0x23c   :  { %v864_v5 = vmul.f32 %v1232_v4, %v836_v35  ;;  %v919_v7 = vadd.f32 %v902_v2, %v891_v3 }
 0x23d   :  { %v907_v8 = vpop.permute.xlu1 %906 }
 0x23e   :  { %v892_v6 = vmul.f32 %v879_v59, %v864_v5  ;;  %v923_v10 = vmax.f32 %v919_v7, 0.0 }
 0x23f   :  { %v1234_v19 = vpop.eup %1233 }
 0x240   :  { %v920_v9 = vadd.f32 %v907_v8, %v892_v6  ;;  %v865_v20 = vmul.f32 %v1234_v19, %v1503_v39 }
 0x241   :  { %v912_v15 = vpop.permute.xlu1 %911 }
 0x242   :  { %v924_v11 = vmax.f32 %v920_v9, 0.0  ;;  %v893_v21 = vmul.f32 %v884_v60, %v865_v20 }
 0x244   :  { %v1042_v12 = vpack.c.bf16 %v924_v11, %v923_v10  ;;  %v921_v24 = vadd.f32 %v912_v15, %v893_v21 }
 0x246   :  { %1043 = vst [vmem:[%s1542_s4] sm:$0xff] %v1042_v12   ;;  %v925_v28 = vmax.f32 %v921_v24, 0.0 }
 0x272   :  { %v850_v16 = vpop.xlane.xlu1 %849 }
 0x273   :  { %v854_v17 = vmul.f32 0.0078125, %v850_v16 }
 0x275   :  { %v858_v18 = vadd.f32 1e-05, %v854_v17 }
 0x276   :  { %v917_v26 = vpop.permute.xlu1 %916 }
 0x277   :  { %1235 = vrsqrt.f32 %v858_v18 }
 0x284   :  { %v1236_v22 = vpop.eup %1235 }
 0x285   :  { %v866_v23 = vmul.f32 %v1236_v22, %v838_v50 }
 0x287   :  { %v894_v25 = vmul.f32 %v889_v62, %v866_v23 }
 0x289   :  { %v922_v27 = vadd.f32 %v917_v26, %v894_v25 }
 0x28b   :  { %v926_v29 = vmax.f32 %v922_v27, 0.0 }
 0x28d   :  { %v1047_v30 = vpack.c.bf16 %v926_v29, %v925_v28 }
 0x28f   :  { %1049 = vst [vmem:[%s1542_s4 + $0x8] sm:$0xff] %v1047_v30  }

// kernel: generator_forward.6
= control target key start
LH: loop header
LB: loop body
LE: loop exit
PB: predicated region body
PF: predicated region fallthrough
CT: control target
= control target key end

     0   :  { %s1913_s1 = inlined_call_operand.vmem [shape: bf16[512,512], index: 1, kind: input, shape index: {}]   ;;  %s1914_s0 = inlined_call_operand.vmem [shape: bf16[16,512], index: 0, kind: input, shape index: {}]   ;;  %s1915_s2 = inlined_call_operand.vmem [shape: f32[16,1], index: 2, kind: input, shape index: {}]   ;;  %s1916_s3 = inlined_call_operand.vmem [shape: f32[16,1], index: 3, kind: input, shape index: {}]   ;;  %s1917_s4 = inlined_call_operand.vmem [shape: bf16[16,512], index: 4, kind: output, shape index: {}]  }
   0x1   :  { %v1257_v0 = vld [vmem:[%s1913_s1 + $0xe4] ss:$16 sps:$4 sm:$0xff]   ;;  %v1261_v2 = vld [vmem:[%s1913_s1 + $0xe0] ss:$16 sps:$4 sm:$0xff]   ;;  %v1358_v51 = vld [vmem:[%s1914_s0 + $0xc] ss:$16 sps:$4 sm:$0xff]  }
   0x2   :  { %v1259_v1 = vld [vmem:[%s1913_s1 + $0x2e4] ss:$16 sps:$4 sm:$0xff]   ;;  %809 = vmatprep.subr.bf16.mxu0 %v1257_v0  ;;  %v1262_v3 = vld [vmem:[%s1913_s1 + $0x2e0] ss:$16 sps:$4 sm:$0xff]   ;;  %884 = vmatprep.mubr.bf16.mxu1 %v1358_v51 }
   0x3   :  { %852 = vmatprep.subr.bf16.mxu1 %v1259_v1  ;;  %v1263_v4 = vld [vmem:[%s1913_s1 + $0xc4] ss:$16 sps:$4 sm:$0xff]   ;;  %810 = vmatpush1.bf16.msra.mxu0 %v1261_v2  ;;  %v1267_v6 = vld [vmem:[%s1913_s1 + $0xc0] ss:$16 sps:$4 sm:$0xff]   ;;  %v1361_v2 = vld [vmem:[%s1913_s1 + $0xec] ss:$16 sps:$4 sm:$0xff]  }
   0x4   :  { %853 = vmatpush1.bf16.msra.mxu1 %v1262_v3  ;;  %v1265_v5 = vld [vmem:[%s1913_s1 + $0x2c4] ss:$16 sps:$4 sm:$0xff]   ;;  %811 = vmatprep.subr.bf16.mxu0 %v1263_v4  ;;  %v1268_v7 = vld [vmem:[%s1913_s1 + $0x2c0] ss:$16 sps:$4 sm:$0xff]   ;;  %v1364_v3 = vld [vmem:[%s1913_s1 + $0x2ec] ss:$16 sps:$4 sm:$0xff]  }
   0x5   :  { %854 = vmatprep.subr.bf16.mxu1 %v1265_v5  ;;  %v1269_v8 = vld [vmem:[%s1913_s1 + $0xa4] ss:$16 sps:$4 sm:$0xff]   ;;  %v1273_v10 = vld [vmem:[%s1913_s1 + $0xa0] ss:$16 sps:$4 sm:$0xff]   ;;  %v1697_v5 = vld [vmem:[%s1914_s0 + $0x8] ss:$16 sps:$4 sm:$0xff]  }
   0x6   :  { %v1271_v9 = vld [vmem:[%s1913_s1 + $0x2a4] ss:$16 sps:$4 sm:$0xff]   ;;  %v1274_v11 = vld [vmem:[%s1913_s1 + $0x2a0] ss:$16 sps:$4 sm:$0xff]  }
   0x7   :  { %812 = vmatpush1.bf16.msra.mxu0 %v1267_v6  ;;  %v1275_v12 = vld [vmem:[%s1913_s1 + $0x84] ss:$16 sps:$4 sm:$0xff]   ;;  %v1279_v14 = vld [vmem:[%s1913_s1 + $0x80] ss:$16 sps:$4 sm:$0xff]   ;;  %v1359_v6 = vld [vmem:[%s1913_s1 + $0xe8] ss:$16 sps:$4 sm:$0xff]  }
   0x8   :  { %855 = vmatpush1.bf16.msra.mxu1 %v1268_v7  ;;  %813 = vmatprep.subr.bf16.mxu0 %v1269_v8  ;;  %v1277_v13 = vld [vmem:[%s1913_s1 + $0x284] ss:$16 sps:$4 sm:$0xff]   ;;  %v1280_v15 = vld [vmem:[%s1913_s1 + $0x280] ss:$16 sps:$4 sm:$0xff]   ;;  %v1362_v7 = vld [vmem:[%s1913_s1 + $0x2e8] ss:$16 sps:$4 sm:$0xff]  }
   0x9   :  { %856 = vmatprep.subr.bf16.mxu1 %v1271_v9  ;;  %v1281_v16 = vld [vmem:[%s1913_s1 + $0x64] ss:$16 sps:$4 sm:$0xff]   ;;  %v1285_v18 = vld [vmem:[%s1913_s1 + $0x60] ss:$16 sps:$4 sm:$0xff]   ;;  %v1367_v8 = vld [vmem:[%s1913_s1 + $0xcc] ss:$16 sps:$4 sm:$0xff]  }
   0xa   :  { %v1283_v17 = vld [vmem:[%s1913_s1 + $0x264] ss:$16 sps:$4 sm:$0xff]   ;;  %v1286_v19 = vld [vmem:[%s1913_s1 + $0x260] ss:$16 sps:$4 sm:$0xff]   ;;  %v1370_v9 = vld [vmem:[%s1913_s1 + $0x2cc] ss:$16 sps:$4 sm:$0xff]  }
   0xb   :  { %814 = vmatpush1.bf16.msra.mxu0 %v1273_v10  ;;  %v1287_v20 = vld [vmem:[%s1913_s1 + $0x44] ss:$16 sps:$4 sm:$0xff]   ;;  %v1291_v22 = vld [vmem:[%s1913_s1 + $0x40] ss:$16 sps:$4 sm:$0xff]   ;;  %v1365_v10 = vld [vmem:[%s1913_s1 + $0xc8] ss:$16 sps:$4 sm:$0xff]  }
   0xc   :  { %857 = vmatpush1.bf16.msra.mxu1 %v1274_v11  ;;  %815 = vmatprep.subr.bf16.mxu0 %v1275_v12  ;;  %v1289_v21 = vld [vmem:[%s1913_s1 + $0x244] ss:$16 sps:$4 sm:$0xff]   ;;  %v1292_v23 = vld [vmem:[%s1913_s1 + $0x240] ss:$16 sps:$4 sm:$0xff]   ;;  %v1368_v11 = vld [vmem:[%s1913_s1 + $0x2c8] ss:$16 sps:$4 sm:$0xff]  }
   0xd   :  { %858 = vmatprep.subr.bf16.mxu1 %v1277_v13  ;;  %v1293_v24 = vld [vmem:[%s1913_s1 + $0x24] ss:$16 sps:$4 sm:$0xff]   ;;  %v1297_v26 = vld [vmem:[%s1913_s1 + $0x20] ss:$16 sps:$4 sm:$0xff]   ;;  %v1373_v12 = vld [vmem:[%s1913_s1 + $0xac] ss:$16 sps:$4 sm:$0xff]  }
   0xe   :  { %v1295_v25 = vld [vmem:[%s1913_s1 + $0x224] ss:$16 sps:$4 sm:$0xff]   ;;  %v1298_v27 = vld [vmem:[%s1913_s1 + $0x220] ss:$16 sps:$4 sm:$0xff]   ;;  %v1376_v13 = vld [vmem:[%s1913_s1 + $0x2ac] ss:$16 sps:$4 sm:$0xff]  }
   0xf   :  { %816 = vmatpush1.bf16.msra.mxu0 %v1279_v14  ;;  %v1299_v28 = vld [vmem:[%s1913_s1 + $0x4] ss:$16 sps:$4 sm:$0xff]   ;;  %v1303_v30 = vld [vmem:[%s1913_s1] ss:$16 sps:$4 sm:$0xff]   ;;  %v1371_v14 = vld [vmem:[%s1913_s1 + $0xa8] ss:$16 sps:$4 sm:$0xff]  }
  0x10   :  { %859 = vmatpush1.bf16.msra.mxu1 %v1280_v15  ;;  %817 = vmatprep.subr.bf16.mxu0 %v1281_v16  ;;  %v1301_v29 = vld [vmem:[%s1913_s1 + $0x204] ss:$16 sps:$4 sm:$0xff]   ;;  %v1304_v31 = vld [vmem:[%s1913_s1 + $0x200] ss:$16 sps:$4 sm:$0xff]   ;;  %v1374_v15 = vld [vmem:[%s1913_s1 + $0x2a8] ss:$16 sps:$4 sm:$0xff]  }
  0x11   :  { %860 = vmatprep.subr.bf16.mxu1 %v1283_v17  ;;  %v1305_v32 = vld [vmem:[%s1913_s1 + $0x1e4] ss:$16 sps:$4 sm:$0xff]   ;;  %v1309_v34 = vld [vmem:[%s1913_s1 + $0x1e0] ss:$16 sps:$4 sm:$0xff]   ;;  %v1379_v16 = vld [vmem:[%s1913_s1 + $0x8c] ss:$16 sps:$4 sm:$0xff]  }
  0x12   :  { %v1307_v33 = vld [vmem:[%s1913_s1 + $0x3e4] ss:$16 sps:$4 sm:$0xff]   ;;  %v1310_v35 = vld [vmem:[%s1913_s1 + $0x3e0] ss:$16 sps:$4 sm:$0xff]   ;;  %v1382_v17 = vld [vmem:[%s1913_s1 + $0x28c] ss:$16 sps:$4 sm:$0xff]  }
  0x13   :  { %818 = vmatpush1.bf16.msra.mxu0 %v1285_v18  ;;  %v1311_v36 = vld [vmem:[%s1913_s1 + $0x1c4] ss:$16 sps:$4 sm:$0xff]   ;;  %v1315_v38 = vld [vmem:[%s1913_s1 + $0x1c0] ss:$16 sps:$4 sm:$0xff]   ;;  %v1377_v18 = vld [vmem:[%s1913_s1 + $0x88] ss:$16 sps:$4 sm:$0xff]  }
  0x14   :  { %861 = vmatpush1.bf16.msra.mxu1 %v1286_v19  ;;  %819 = vmatprep.subr.bf16.mxu0 %v1287_v20  ;;  %v1313_v37 = vld [vmem:[%s1913_s1 + $0x3c4] ss:$16 sps:$4 sm:$0xff]   ;;  %v1316_v39 = vld [vmem:[%s1913_s1 + $0x3c0] ss:$16 sps:$4 sm:$0xff]   ;;  %v1380_v19 = vld [vmem:[%s1913_s1 + $0x288] ss:$16 sps:$4 sm:$0xff]  }
  0x15   :  { %862 = vmatprep.subr.bf16.mxu1 %v1289_v21  ;;  %v1317_v40 = vld [vmem:[%s1913_s1 + $0x1a4] ss:$16 sps:$4 sm:$0xff]   ;;  %v1321_v42 = vld [vmem:[%s1913_s1 + $0x1a0] ss:$16 sps:$4 sm:$0xff]   ;;  %v1385_v20 = vld [vmem:[%s1913_s1 + $0x6c] ss:$16 sps:$4 sm:$0xff]  }
  0x16   :  { %v1319_v41 = vld [vmem:[%s1913_s1 + $0x3a4] ss:$16 sps:$4 sm:$0xff]   ;;  %v1322_v43 = vld [vmem:[%s1913_s1 + $0x3a0] ss:$16 sps:$4 sm:$0xff]   ;;  %v1388_v21 = vld [vmem:[%s1913_s1 + $0x26c] ss:$16 sps:$4 sm:$0xff]  }
  0x17   :  { %820 = vmatpush1.bf16.msra.mxu0 %v1291_v22  ;;  %v1323_v44 = vld [vmem:[%s1913_s1 + $0x184] ss:$16 sps:$4 sm:$0xff]   ;;  %v1327_v46 = vld [vmem:[%s1913_s1 + $0x180] ss:$16 sps:$4 sm:$0xff]   ;;  %v1383_v22 = vld [vmem:[%s1913_s1 + $0x68] ss:$16 sps:$4 sm:$0xff]  }
  0x18   :  { %863 = vmatpush1.bf16.msra.mxu1 %v1292_v23  ;;  %821 = vmatprep.subr.bf16.mxu0 %v1293_v24  ;;  %v1325_v45 = vld [vmem:[%s1913_s1 + $0x384] ss:$16 sps:$4 sm:$0xff]   ;;  %v1328_v47 = vld [vmem:[%s1913_s1 + $0x380] ss:$16 sps:$4 sm:$0xff]   ;;  %v1386_v23 = vld [vmem:[%s1913_s1 + $0x268] ss:$16 sps:$4 sm:$0xff]  }
  0x19   :  { %864 = vmatprep.subr.bf16.mxu1 %v1295_v25  ;;  %v1329_v48 = vld [vmem:[%s1913_s1 + $0x164] ss:$16 sps:$4 sm:$0xff]   ;;  %v1333_v52 = vld [vmem:[%s1913_s1 + $0x160] ss:$16 sps:$4 sm:$0xff]   ;;  %v1391_v24 = vld [vmem:[%s1913_s1 + $0x4c] ss:$16 sps:$4 sm:$0xff]  }
  0x1a   :  { %v1355_v49 = vld [vmem:[%s1914_s0 + $0x4] ss:$16 sps:$4 sm:$0xff]   ;;  %v1334_v53 = vld [vmem:[%s1913_s1 + $0x360] ss:$16 sps:$4 sm:$0xff]   ;;  %v1394_v25 = vld [vmem:[%s1913_s1 + $0x24c] ss:$16 sps:$4 sm:$0xff]  }
  0x1b   :  { %822 = vmatpush1.bf16.msra.mxu0 %v1297_v26  ;;  %v1331_v50 = vld [vmem:[%s1913_s1 + $0x364] ss:$16 sps:$4 sm:$0xff]   ;;  %841 = vmatprep.mubr.bf16.mxu0 %v1355_v49  ;;  %v1339_v56 = vld [vmem:[%s1913_s1 + $0x140] ss:$16 sps:$4 sm:$0xff]   ;;  %v1389_v26 = vld [vmem:[%s1913_s1 + $0x48] ss:$16 sps:$4 sm:$0xff]  }
  0x1c   :  { %865 = vmatpush1.bf16.msra.mxu1 %v1298_v27  ;;  %823 = vmatprep.subr.bf16.mxu0 %v1299_v28  ;;  %v1335_v54 = vld [vmem:[%s1913_s1 + $0x144] ss:$16 sps:$4 sm:$0xff]   ;;  %v1340_v57 = vld [vmem:[%s1913_s1 + $0x340] ss:$16 sps:$4 sm:$0xff]   ;;  %v1392_v27 = vld [vmem:[%s1913_s1 + $0x248] ss:$16 sps:$4 sm:$0xff]  }
  0x1d   :  { %866 = vmatprep.subr.bf16.mxu1 %v1301_v29  ;;  %v1337_v55 = vld [vmem:[%s1913_s1 + $0x344] ss:$16 sps:$4 sm:$0xff]   ;;  %v1345_v60 = vld [vmem:[%s1913_s1 + $0x120] ss:$16 sps:$4 sm:$0xff]   ;;  %v1397_v28 = vld [vmem:[%s1913_s1 + $0x2c] ss:$16 sps:$4 sm:$0xff]  }
  0x1e   :  { %v1341_v58 = vld [vmem:[%s1913_s1 + $0x124] ss:$16 sps:$4 sm:$0xff]   ;;  %v1346_v61 = vld [vmem:[%s1913_s1 + $0x320] ss:$16 sps:$4 sm:$0xff]   ;;  %v1400_v29 = vld [vmem:[%s1913_s1 + $0x22c] ss:$16 sps:$4 sm:$0xff]  }
  0x1f   :  { %824 = vmatpush1.bf16.msra.mxu0 %v1303_v30  ;;  %v1343_v59 = vld [vmem:[%s1913_s1 + $0x324] ss:$16 sps:$4 sm:$0xff]   ;;  %v1351_v0 = vld [vmem:[%s1913_s1 + $0x100] ss:$16 sps:$4 sm:$0xff]   ;;  %v1395_v30 = vld [vmem:[%s1913_s1 + $0x28] ss:$16 sps:$4 sm:$0xff]  }
  0x20   :  { %867 = vmatpush1.bf16.msra.mxu1 %v1304_v31  ;;  %825 = vmatprep.subr.bf16.mxu0 %v1305_v32  ;;  %v1347_v62 = vld [vmem:[%s1913_s1 + $0x104] ss:$16 sps:$4 sm:$0xff]   ;;  %v1352_v1 = vld [vmem:[%s1913_s1 + $0x300] ss:$16 sps:$4 sm:$0xff]   ;;  %v1398_v31 = vld [vmem:[%s1913_s1 + $0x228] ss:$16 sps:$4 sm:$0xff]  }
  0x21   :  { %868 = vmatprep.subr.bf16.mxu1 %v1307_v33  ;;  %v1349_v63 = vld [vmem:[%s1913_s1 + $0x304] ss:$16 sps:$4 sm:$0xff]   ;;  %v1692_v4 = vld [vmem:[%s1914_s0] ss:$16 sps:$4 sm:$0xff]   ;;  %v1403_v32 = vld [vmem:[%s1913_s1 + $0xc] ss:$16 sps:$4 sm:$0xff]  }
  0x22   :  { %v1406_v33 = vld [vmem:[%s1913_s1 + $0x20c] ss:$16 sps:$4 sm:$0xff]  }
  0x23   :  { %826 = vmatpush2.bf16.msra.mxu0 %v1309_v34  ;;  %v1401_v34 = vld [vmem:[%s1913_s1 + $0x8] ss:$16 sps:$4 sm:$0xff]  }
  0x24   :  { %869 = vmatpush2.bf16.msra.mxu1 %v1310_v35  ;;  %827 = vmatprep.subr.bf16.mxu0 %v1311_v36  ;;  %v1404_v35 = vld [vmem:[%s1913_s1 + $0x208] ss:$16 sps:$4 sm:$0xff]   ;;  %v1409_v36 = vld [vmem:[%s1913_s1 + $0x1ec] ss:$16 sps:$4 sm:$0xff]  }
  0x25   :  { %870 = vmatprep.subr.bf16.mxu1 %v1313_v37  ;;  %v1412_v37 = vld [vmem:[%s1913_s1 + $0x3ec] ss:$16 sps:$4 sm:$0xff]  }
  0x27   :  { %828 = vmatpush2.bf16.msra.mxu0 %v1315_v38  ;;  %v1407_v38 = vld [vmem:[%s1913_s1 + $0x1e8] ss:$16 sps:$4 sm:$0xff]  }
  0x28   :  { %871 = vmatpush2.bf16.msra.mxu1 %v1316_v39  ;;  %829 = vmatprep.subr.bf16.mxu0 %v1317_v40  ;;  %v1410_v39 = vld [vmem:[%s1913_s1 + $0x3e8] ss:$16 sps:$4 sm:$0xff]   ;;  %v1415_v40 = vld [vmem:[%s1913_s1 + $0x1cc] ss:$16 sps:$4 sm:$0xff]  }
  0x29   :  { %872 = vmatprep.subr.bf16.mxu1 %v1319_v41  ;;  %v1418_v41 = vld [vmem:[%s1913_s1 + $0x3cc] ss:$16 sps:$4 sm:$0xff]  }
  0x2b   :  { %830 = vmatpush2.bf16.msra.mxu0 %v1321_v42  ;;  %v1413_v42 = vld [vmem:[%s1913_s1 + $0x1c8] ss:$16 sps:$4 sm:$0xff]  }
  0x2c   :  { %873 = vmatpush2.bf16.msra.mxu1 %v1322_v43  ;;  %831 = vmatprep.subr.bf16.mxu0 %v1323_v44  ;;  %v1416_v43 = vld [vmem:[%s1913_s1 + $0x3c8] ss:$16 sps:$4 sm:$0xff]   ;;  %v1421_v44 = vld [vmem:[%s1913_s1 + $0x1ac] ss:$16 sps:$4 sm:$0xff]  }
  0x2d   :  { %874 = vmatprep.subr.bf16.mxu1 %v1325_v45  ;;  %v1424_v45 = vld [vmem:[%s1913_s1 + $0x3ac] ss:$16 sps:$4 sm:$0xff]  }
  0x2f   :  { %832 = vmatpush2.bf16.msra.mxu0 %v1327_v46  ;;  %v1419_v46 = vld [vmem:[%s1913_s1 + $0x1a8] ss:$16 sps:$4 sm:$0xff]  }
  0x30   :  { %875 = vmatpush2.bf16.msra.mxu1 %v1328_v47  ;;  %833 = vmatprep.subr.bf16.mxu0 %v1329_v48  ;;  %v1422_v47 = vld [vmem:[%s1913_s1 + $0x3a8] ss:$16 sps:$4 sm:$0xff]   ;;  %v1427_v48 = vld [vmem:[%s1913_s1 + $0x18c] ss:$16 sps:$4 sm:$0xff]  }
  0x31   :  { %876 = vmatprep.subr.bf16.mxu1 %v1331_v50  ;;  %v1425_v50 = vld [vmem:[%s1913_s1 + $0x188] ss:$16 sps:$4 sm:$0xff]  }
  0x33   :  { %834 = vmatpush2.bf16.msra.mxu0 %v1333_v52  ;;  %v1433_v52 = vld [vmem:[%s1913_s1 + $0x16c] ss:$16 sps:$4 sm:$0xff]  }
  0x34   :  { %877 = vmatpush2.bf16.msra.mxu1 %v1334_v53  ;;  %835 = vmatprep.subr.bf16.mxu0 %v1335_v54  ;;  %v1436_v53 = vld [vmem:[%s1913_s1 + $0x36c] ss:$16 sps:$4 sm:$0xff]   ;;  %v1431_v54 = vld [vmem:[%s1913_s1 + $0x168] ss:$16 sps:$4 sm:$0xff]  }
  0x35   :  { %878 = vmatprep.subr.bf16.mxu1 %v1337_v55  ;;  %v1434_v55 = vld [vmem:[%s1913_s1 + $0x368] ss:$16 sps:$4 sm:$0xff]  }
  0x37   :  { %836 = vmatpush2.bf16.msra.mxu0 %v1339_v56  ;;  %v1439_v56 = vld [vmem:[%s1913_s1 + $0x14c] ss:$16 sps:$4 sm:$0xff]  }
  0x38   :  { %879 = vmatpush2.bf16.msra.mxu1 %v1340_v57  ;;  %837 = vmatprep.subr.bf16.mxu0 %v1341_v58  ;;  %v1442_v57 = vld [vmem:[%s1913_s1 + $0x34c] ss:$16 sps:$4 sm:$0xff]   ;;  %v1437_v58 = vld [vmem:[%s1913_s1 + $0x148] ss:$16 sps:$4 sm:$0xff]  }
  0x39   :  { %880 = vmatprep.subr.bf16.mxu1 %v1343_v59  ;;  %v1440_v59 = vld [vmem:[%s1913_s1 + $0x348] ss:$16 sps:$4 sm:$0xff]  }
  0x3b   :  { %838 = vmatpush2.bf16.msra.mxu0 %v1345_v60  ;;  %v1445_v60 = vld [vmem:[%s1913_s1 + $0x12c] ss:$16 sps:$4 sm:$0xff]  }
  0x3c   :  { %881 = vmatpush2.bf16.msra.mxu1 %v1346_v61  ;;  %839 = vmatprep.subr.bf16.mxu0 %v1347_v62  ;;  %v1448_v61 = vld [vmem:[%s1913_s1 + $0x32c] ss:$16 sps:$4 sm:$0xff]   ;;  %v1443_v62 = vld [vmem:[%s1913_s1 + $0x128] ss:$16 sps:$4 sm:$0xff]  }
  0x3d   :  { %882 = vmatprep.subr.bf16.mxu1 %v1349_v63  ;;  %v1446_v63 = vld [vmem:[%s1913_s1 + $0x328] ss:$16 sps:$4 sm:$0xff]  }
  0x3f   :  { %840 = vmatpush2.bf16.msra.mxu0 %v1351_v0  ;;  %v1451_v0 = vld [vmem:[%s1913_s1 + $0x10c] ss:$16 sps:$4 sm:$0xff]  }
  0x40   :  { %883 = vmatpush2.bf16.msra.mxu1 %v1352_v1  ;;  %895 = vmatprep.subr.bf16.mxu0 %v1361_v2  ;;  %v1454_v1 = vld [vmem:[%s1913_s1 + $0x30c] ss:$16 sps:$4 sm:$0xff]   ;;  %v1449_v2 = vld [vmem:[%s1913_s1 + $0x108] ss:$16 sps:$4 sm:$0xff]  }
  0x41   :  { %938 = vmatprep.subr.bf16.mxu1 %v1364_v3  ;;  %v1452_v3 = vld [vmem:[%s1913_s1 + $0x308] ss:$16 sps:$4 sm:$0xff]  }
  0x42   :  { %842 = vmatmul.mubr.bf16.vlgmr.msra.gmra.mxu0 %v1692_v4 }
  0x43   :  { %885 = vmatmul.mubr.bf16.vlgmr.msra.gmra.mxu1 %v1697_v5  ;;  %896 = vmatpush1.bf16.msra.mxu0 %v1359_v6  ;;  %v1459_v6 = vmov 0  }
  0x44   :  { %939 = vmatpush1.bf16.msra.mxu1 %v1362_v7  ;;  %897 = vmatprep.subr.bf16.mxu0 %v1367_v8  ;;  %v1035_v7 = vld [vmem:[%s1915_s2 + $0x8] sm:$0xff]  ;;  %v1054_v8 = vld [vmem:[%s1916_s3] sm:$0xff] }
  0x45   :  { %940 = vmatprep.subr.bf16.mxu1 %v1370_v9  ;;  %927 = vmatprep.mubr.bf16.mxu0 %v1355_v49  ;;  %v1430_v49 = vld [vmem:[%s1913_s1 + $0x38c] ss:$16 sps:$4 sm:$0xff]  }
  0x46   :  { %970 = vmatprep.mubr.bf16.mxu1 %v1358_v51  ;;  %v1428_v51 = vld [vmem:[%s1913_s1 + $0x388] ss:$16 sps:$4 sm:$0xff]   ;;  %1256 = vset.pattern.permute.xlu1 %v1459_v6 }
  0x47   :  { %898 = vmatpush1.bf16.msra.mxu0 %v1365_v10  ;;  %1255 = vset.pattern.permute.xlu0 %v1459_v6 }
  0x48   :  { %941 = vmatpush1.bf16.msra.mxu1 %v1368_v11  ;;  %899 = vmatprep.subr.bf16.mxu0 %v1373_v12 }
  0x49   :  { %942 = vmatprep.subr.bf16.mxu1 %v1376_v13  ;;  %1043 = vperm.xlu1 %1256, %v1035_v7  }
  0x4b   :  { %900 = vmatpush1.bf16.msra.mxu0 %v1371_v14 }
  0x4c   :  { %943 = vmatpush1.bf16.msra.mxu1 %v1374_v15  ;;  %901 = vmatprep.subr.bf16.mxu0 %v1379_v16 }
  0x4d   :  { %944 = vmatprep.subr.bf16.mxu1 %v1382_v17  ;;  %1058 = vperm.xlu1 %1256, %v1054_v8  }
  0x4f   :  { %902 = vmatpush1.bf16.msra.mxu0 %v1377_v18 }
  0x50   :  { %945 = vmatpush1.bf16.msra.mxu1 %v1380_v19  ;;  %903 = vmatprep.subr.bf16.mxu0 %v1385_v20 }
  0x51   :  { %946 = vmatprep.subr.bf16.mxu1 %v1388_v21 }
  0x53   :  { %904 = vmatpush1.bf16.msra.mxu0 %v1383_v22 }
  0x54   :  { %947 = vmatpush1.bf16.msra.mxu1 %v1386_v23  ;;  %905 = vmatprep.subr.bf16.mxu0 %v1391_v24 }
  0x55   :  { %948 = vmatprep.subr.bf16.mxu1 %v1394_v25 }
  0x57   :  { %906 = vmatpush1.bf16.msra.mxu0 %v1389_v26 }
  0x58   :  { %949 = vmatpush1.bf16.msra.mxu1 %v1392_v27  ;;  %907 = vmatprep.subr.bf16.mxu0 %v1397_v28 }
  0x59   :  { %950 = vmatprep.subr.bf16.mxu1 %v1400_v29 }
  0x5b   :  { %908 = vmatpush1.bf16.msra.mxu0 %v1395_v30 }
  0x5c   :  { %951 = vmatpush1.bf16.msra.mxu1 %v1398_v31  ;;  %909 = vmatprep.subr.bf16.mxu0 %v1403_v32 }
  0x5d   :  { %952 = vmatprep.subr.bf16.mxu1 %v1406_v33 }
  0x5f   :  { %910 = vmatpush1.bf16.msra.mxu0 %v1401_v34 }
  0x60   :  { %953 = vmatpush1.bf16.msra.mxu1 %v1404_v35  ;;  %911 = vmatprep.subr.bf16.mxu0 %v1409_v36 }
  0x61   :  { %954 = vmatprep.subr.bf16.mxu1 %v1412_v37  ;;  %v1034_v37 = vld [vmem:[%s1915_s2] sm:$0xff] }
  0x63   :  { %912 = vmatpush2.bf16.msra.mxu0 %v1407_v38 }
  0x64   :  { %955 = vmatpush2.bf16.msra.mxu1 %v1410_v39  ;;  %913 = vmatprep.subr.bf16.mxu0 %v1415_v40 }
  0x65   :  { %956 = vmatprep.subr.bf16.mxu1 %v1418_v41 }
  0x67   :  { %914 = vmatpush2.bf16.msra.mxu0 %v1413_v42 }
  0x68   :  { %957 = vmatpush2.bf16.msra.mxu1 %v1416_v43  ;;  %915 = vmatprep.subr.bf16.mxu0 %v1421_v44 }
  0x69   :  { %958 = vmatprep.subr.bf16.mxu1 %v1424_v45 }
  0x6b   :  { %916 = vmatpush2.bf16.msra.mxu0 %v1419_v46 }
  0x6c   :  { %959 = vmatpush2.bf16.msra.mxu1 %v1422_v47  ;;  %917 = vmatprep.subr.bf16.mxu0 %v1427_v48 }
  0x6d   :  { %960 = vmatprep.subr.bf16.mxu1 %v1430_v49 }
  0x6f   :  { %918 = vmatpush2.bf16.msra.mxu0 %v1425_v50 }
  0x70   :  { %961 = vmatpush2.bf16.msra.mxu1 %v1428_v51  ;;  %919 = vmatprep.subr.bf16.mxu0 %v1433_v52 }
  0x71   :  { %962 = vmatprep.subr.bf16.mxu1 %v1436_v53 }
  0x73   :  { %920 = vmatpush2.bf16.msra.mxu0 %v1431_v54 }
  0x74   :  { %963 = vmatpush2.bf16.msra.mxu1 %v1434_v55  ;;  %921 = vmatprep.subr.bf16.mxu0 %v1439_v56 }
  0x75   :  { %964 = vmatprep.subr.bf16.mxu1 %v1442_v57 }
  0x77   :  { %922 = vmatpush2.bf16.msra.mxu0 %v1437_v58 }
  0x78   :  { %965 = vmatpush2.bf16.msra.mxu1 %v1440_v59  ;;  %923 = vmatprep.subr.bf16.mxu0 %v1445_v60 }
  0x79   :  { %966 = vmatprep.subr.bf16.mxu1 %v1448_v61 }
  0x7b   :  { %924 = vmatpush2.bf16.msra.mxu0 %v1443_v62 }
  0x7c   :  { %967 = vmatpush2.bf16.msra.mxu1 %v1446_v63  ;;  %925 = vmatprep.subr.bf16.mxu0 %v1451_v0  ;;  %v1055_v0 = vld [vmem:[%s1916_s3 + $0x8] sm:$0xff] }
  0x7d   :  { %968 = vmatprep.subr.bf16.mxu1 %v1454_v1 }
  0x7f   :  { %926 = vmatpush2.bf16.msra.mxu0 %v1449_v2 }
  0x80   :  { %969 = vmatpush2.bf16.msra.mxu1 %v1452_v3 }
  0x82   :  { %928 = vmatmul.mubr.bf16.vlgmr.msra.gmra.mxu0 %v1692_v4 }
  0x83   :  { %971 = vmatmul.mubr.bf16.vlgmr.msra.gmra.mxu1 %v1697_v5 }
  0xc4   :  { %v1044_v1 = vpop.permute.xlu1 %1043 }
  0xc8   :  { %v1059_v2 = vpop.permute.xlu1 %1058 }
 0x102   :  { %v843_v9 = vpop.f32.mrf.mxu0 }
 0x103   :  { %v886_v10 = vpop.f32.mrf.mxu1 }
 0x104   :  { %v845_v11 = vpop.f32.mrf.mxu0  ;;  %v887_v5 = vadd.f32 %v886_v10, %v843_v9 }
 0x105   :  { %v888_v12 = vpop.f32.mrf.mxu1 }
 0x106   :  { %v847_v4 = vpop.f32.mrf.mxu0  ;;  %v889_v14 = vadd.f32 %v888_v12, %v845_v11 }
 0x107   :  { %v890_v13 = vpop.f32.mrf.mxu1 }
 0x108   :  { %v849_v15 = vpop.f32.mrf.mxu0  ;;  %v981_v19 = vadd.f32 %v889_v14, %v887_v5  ;;  %v891_v24 = vadd.f32 %v890_v13, %v847_v4 }
 0x109   :  { %v892_v16 = vpop.f32.mrf.mxu1 }
 0x10a   :  { %v893_v20 = vadd.f32 %v892_v16, %v849_v15 }
 0x10c   :  { %v986_v29 = vadd.f32 %v893_v20, %v891_v24 }
 0x142   :  { %v929_v17 = vpop.f32.mrf.mxu0 }
 0x143   :  { %v972_v18 = vpop.f32.mrf.mxu1 }
 0x144   :  { %v973_v21 = vadd.f32 %v972_v18, %v929_v17  ;;  %v931_v22 = vpop.f32.mrf.mxu0 }
 0x145   :  { %v974_v23 = vpop.f32.mrf.mxu1 }
 0x146   :  { %v975_v25 = vadd.f32 %v974_v23, %v931_v22  ;;  %v982_v26 = vadd.f32 %v981_v19, %v973_v21  ;;  %v933_v27 = vpop.f32.mrf.mxu0 }
 0x147   :  { %v976_v28 = vpop.f32.mrf.mxu1 }
 0x148   :  { %v977_v30 = vadd.f32 %v976_v28, %v933_v27  ;;  %v983_v31 = vadd.f32 %v982_v26, %v975_v25  ;;  %v935_v32 = vpop.f32.mrf.mxu0 }
 0x149   :  { %v978_v33 = vpop.f32.mrf.mxu1 }
 0x14a   :  { %v987_v34 = vadd.f32 %v986_v29, %v977_v30  ;;  %v979_v35 = vadd.f32 %v978_v33, %v935_v32  ;;  %984 = vadd.xlane.f32.xlu0 %v983_v31 }
 0x14c   :  { %v988_v36 = vadd.f32 %v987_v34, %v979_v35 }
 0x14e   :  { %989 = vadd.xlane.f32.xlu0 %v988_v36 }
 0x164   :  { %1038 = vperm.xlu0 %1255, %v1034_v37  }
 0x1d3   :  { %v985_v38 = vpop.xlane.xlu0 %984 }
 0x1d4   :  { %v992_v39 = vmul.f32 0.001953125, %v985_v38 }
 0x1d6   :  { %v994_v40 = vsub.f32 %v887_v5, %v992_v39  ;;  %v995_v41 = vsub.f32 %v889_v14, %v992_v39  ;;  %v996_v42 = vsub.f32 %v973_v21, %v992_v39  ;;  %v997_v44 = vsub.f32 %v975_v25, %v992_v39 }
 0x1d7   :  { %v990_v43 = vpop.xlane.xlu0 %989 }
 0x1d8   :  { %v993_v45 = vmul.f32 0.001953125, %v990_v43  ;;  %v1002_v46 = vmul.f32 %v994_v40, %v994_v40  ;;  %v1003_v47 = vmul.f32 %v995_v41, %v995_v41  ;;  %v1004_v48 = vmul.f32 %v996_v42, %v996_v42 }
 0x1d9   :  { %v1005_v53 = vmul.f32 %v997_v44, %v997_v44 }
 0x1da   :  { %v998_v49 = vsub.f32 %v891_v24, %v993_v45  ;;  %v999_v50 = vsub.f32 %v893_v20, %v993_v45  ;;  %v1010_v51 = vadd.f32 %v1003_v47, %v1002_v46  ;;  %v1000_v52 = vsub.f32 %v977_v30, %v993_v45 }
 0x1db   :  { %v1001_v55 = vsub.f32 %v979_v35, %v993_v45 }
 0x1dc   :  { %v1011_v54 = vadd.f32 %v1010_v51, %v1004_v48  ;;  %v1006_v56 = vmul.f32 %v998_v49, %v998_v49  ;;  %v1007_v57 = vmul.f32 %v999_v50, %v999_v50  ;;  %v1008_v59 = vmul.f32 %v1000_v52, %v1000_v52 }
 0x1dd   :  { %v1009_v61 = vmul.f32 %v1001_v55, %v1001_v55 }
 0x1de   :  { %v1012_v58 = vadd.f32 %v1011_v54, %v1005_v53  ;;  %v1015_v60 = vadd.f32 %v1007_v57, %v1006_v56 }
 0x1df   :  { %v1039_v12 = vpop.permute.xlu0 %1038 }
 0x1e0   :  { %1013 = vadd.xlane.f32.xlu1 %v1012_v58  ;;  %v1016_v62 = vadd.f32 %v1015_v60, %v1008_v59 }
 0x1e2   :  { %v1017_v63 = vadd.f32 %v1016_v62, %v1009_v61 }
 0x1e4   :  { %1018 = vadd.xlane.f32.xlu1 %v1017_v63 }
 0x1f5   :  { %1063 = vperm.xlu1 %1256, %v1055_v0  }
 0x269   :  { %v1014_v3 = vpop.xlane.xlu1 %1013 }
 0x26a   :  { %v1020_v6 = vmul.f32 0.001953125, %v1014_v3 }
 0x26c   :  { %v1022_v7 = vadd.f32 1e-05, %v1020_v6 }
 0x26d   :  { %v1019_v8 = vpop.xlane.xlu1 %1018 }
 0x26e   :  { %1455 = vrsqrt.f32 %v1022_v7  ;;  %v1021_v9 = vmul.f32 0.001953125, %v1019_v8 }
 0x270   :  { %v1023_v10 = vadd.f32 1e-05, %v1021_v9 }
 0x271   :  { %v1064_v32 = vpop.permute.xlu1 %1063 }
 0x272   :  { %1457 = vrsqrt.f32 %v1023_v10 }
 0x27b   :  { %v1456_v11 = vpop.eup %1455 }
 0x27c   :  { %v1026_v4 = vmul.f32 %v1456_v11, %v994_v40  ;;  %v1027_v13 = vmul.f32 %v1456_v11, %v995_v41  ;;  %v1028_v5 = vmul.f32 %v1456_v11, %v996_v42  ;;  %v1029_v14 = vmul.f32 %v1456_v11, %v997_v44 }
 0x27e   :  { %v1046_v15 = vmul.f32 %v1039_v12, %v1026_v4  ;;  %v1047_v16 = vmul.f32 %v1039_v12, %v1027_v13  ;;  %v1048_v17 = vmul.f32 %v1039_v12, %v1028_v5  ;;  %v1049_v18 = vmul.f32 %v1039_v12, %v1029_v14 }
 0x27f   :  { %v1458_v19 = vpop.eup %1457 }
 0x280   :  { %v1030_v20 = vmul.f32 %v1458_v19, %v998_v49  ;;  %v1031_v21 = vmul.f32 %v1458_v19, %v999_v50  ;;  %v1032_v22 = vmul.f32 %v1458_v19, %v1000_v52  ;;  %v1033_v23 = vmul.f32 %v1458_v19, %v1001_v55 }
 0x281   :  { %v1066_v24 = vadd.f32 %v1059_v2, %v1046_v15  ;;  %v1067_v25 = vadd.f32 %v1059_v2, %v1047_v16  ;;  %v1068_v26 = vadd.f32 %v1059_v2, %v1048_v17  ;;  %v1069_v27 = vadd.f32 %v1059_v2, %v1049_v18 }
 0x282   :  { %v1050_v28 = vmul.f32 %v1044_v1, %v1030_v20  ;;  %v1051_v29 = vmul.f32 %v1044_v1, %v1031_v21  ;;  %v1052_v30 = vmul.f32 %v1044_v1, %v1032_v22  ;;  %v1053_v31 = vmul.f32 %v1044_v1, %v1033_v23 }
 0x283   :  { %v1074_v33 = vmax.f32 %v1066_v24, 0.0  ;;  %v1075_v34 = vmax.f32 %v1067_v25, 0.0  ;;  %v1076_v35 = vmax.f32 %v1068_v26, 0.0  ;;  %v1077_v36 = vmax.f32 %v1069_v27, 0.0 }
 0x284   :  { %v1070_v37 = vadd.f32 %v1064_v32, %v1050_v28  ;;  %v1071_v38 = vadd.f32 %v1064_v32, %v1051_v29  ;;  %v1072_v39 = vadd.f32 %v1064_v32, %v1052_v30  ;;  %v1073_v40 = vadd.f32 %v1064_v32, %v1053_v31 }
 0x285   :  { %v1250_v41 = vpack.c.bf16 %v1075_v34, %v1074_v33  ;;  %v1251_v42 = vpack.c.bf16 %v1077_v36, %v1076_v35 }
 0x286   :  { %v1078_v43 = vmax.f32 %v1070_v37, 0.0  ;;  %v1079_v44 = vmax.f32 %v1071_v38, 0.0  ;;  %v1080_v45 = vmax.f32 %v1072_v39, 0.0  ;;  %v1081_v46 = vmax.f32 %v1073_v40, 0.0 }
 0x287   :  { %1106 = vst [vmem:[%s1917_s4] sm:$0xff] %v1250_v41  ;;  %1107 = vst [vmem:[%s1917_s4 + $0x8] sm:$0xff] %v1251_v42 }
 0x288   :  { %v1252_v47 = vpack.c.bf16 %v1079_v44, %v1078_v43  ;;  %v1253_v48 = vpack.c.bf16 %v1081_v46, %v1080_v45 }
 0x28a   :  { %1108 = vst [vmem:[%s1917_s4 + $0x10] sm:$0xff] %v1252_v47  ;;  %1109 = vst [vmem:[%s1917_s4 + $0x18] sm:$0xff] %v1253_v48 }

// kernel: generator_forward.7
= control target key start
LH: loop header
LB: loop body
LE: loop exit
PB: predicated region body
PF: predicated region fallthrough
CT: control target
= control target key end

     0   :  { %s1717_s12 = smov 0   ;;  %s1719_s13 = smov 0   ;;  %s2179_s0 = inlined_call_operand.vmem [shape: bf16[3,256], index: 0, kind: input, shape index: {}]   ;;  %s2180_s1 = inlined_call_operand.vmem [shape: bf16[256,2048], index: 1, kind: input, shape index: {}]   ;;  %s2181_s2 = inlined_call_operand.vmem [shape: f32[3,1], index: 2, kind: input, shape index: {}]   ;;  %s2182_s3 = inlined_call_operand.vmem [shape: f32[3,2048], index: 3, kind: output, shape index: {}]  }
   0x1   :  { %s1721_s14 = smov 0  }
   0x2 LB: > { %s1487_s15 = sadd.s32 4294967295, %s1694_s14   ;;  %s1734_s16 = sadd.s32 1, %s1694_s14   ;;  %s1694_s14 = sphi %s1721_s14, %s2185_s14   ;;  %s1690_s13 = sphi %s1719_s13, %s2184_s13   ;;  %s1686_s12 = sphi %s1717_s12, %s2183_s12  }
   0x3   : > { %s38_s17 = ssub.s32 %s1694_s14, %s1734_s16  ;;  %s41_s18 = sadd.s32 1, %s1690_s13 }
   0x4   : > { %p39_p0 = scmp.eq.s32.totalorder %s38_s17, 0  ;;  %p48_p1 = scmp.ne.s32.totalorder %s1690_s13, %s1686_s12 }
   0x5   : > { %p49_p2 = scmp.eq.s32.totalorder %s1694_s14, 0  ;;  %p1490_p4 = scmp.ge.s32.totalorder %s1694_s14, 2 }
   0x6   : > { %s1743_s19 = scalar_select %p39_p0, %s1690_s13, %s41_s18  }
   0x7   : > { %p50_p3 = por %p49_p2, %p48_p1  ;;  %127 = sbr.rel (%p1490_p4) target bundleno = 80 (0x50), region = 24 }
   0xc   : > { %130 = sbr.rel (!%p50_p3) target bundleno = 80 (0x50), region = 28  ;;  %s132_s20 = sand.u32 (%p50_p3), 1, %s1690_s13  }
   0xd   : > { %s1629_s21 = sshll.u32 (%p50_p3), %s1694_s14, 5  ;;  %s1491_s22 = sshll.u32 (%p50_p3), %s132_s20, 10 }
   0xe   : > { %s1751_s25 = scalar_lea.vmem (%p50_p3), %s2180_s1, %s1629_s21  ;;  %s1756_s26 = scalar_lea.vmem (%p50_p3), [#allocation2], %s1491_s22 }
   0xf   : > { %v150_v0 = vld [vmem:[%s1751_s25] sm:$0xff] (%p50_p3)  ;;  %v152_v1 = vld [vmem:[%s1751_s25 + $0x8] sm:$0xff] (%p50_p3)  ;;  %v154_v2 = vld [vmem:[%s1751_s25 + $0x10] sm:$0xff] (%p50_p3) }
  0x10   : > { %151 = vst [vmem:[%s1756_s26] sm:$0xff] (%p50_p3), %v150_v0  ;;  %153 = vst [vmem:[%s1756_s26 + $0x8] sm:$0xff] (%p50_p3), %v152_v1  ;;  %v156_v3 = vld [vmem:[%s1751_s25 + $0x18] sm:$0xff] (%p50_p3)  ;;  %v158_v4 = vld [vmem:[%s1751_s25 + $0x40] sm:$0xff] (%p50_p3) }
  0x11   : > { %155 = vst [vmem:[%s1756_s26 + $0x10] sm:$0xff] %v154_v2  ;;  %v160_v5 = vld [vmem:[%s1751_s25 + $0x48] sm:$0xff]  ;;  %157 = vst [vmem:[%s1756_s26 + $0x18] sm:$0xff] %v156_v3  ;;  %v162_v6 = vld [vmem:[%s1751_s25 + $0x50] sm:$0xff] }
  0x12   : > { %159 = vst [vmem:[%s1756_s26 + $0x20] sm:$0xff] %v158_v4  ;;  %161 = vst [vmem:[%s1756_s26 + $0x28] sm:$0xff] %v160_v5  ;;  %v164_v7 = vld [vmem:[%s1751_s25 + $0x58] sm:$0xff]  ;;  %v166_v8 = vld [vmem:[%s1751_s25 + $0x80] sm:$0xff] }
  0x13   : > { %163 = vst [vmem:[%s1756_s26 + $0x30] sm:$0xff] %v162_v6  ;;  %165 = vst [vmem:[%s1756_s26 + $0x38] sm:$0xff] %v164_v7  ;;  %v168_v9 = vld [vmem:[%s1751_s25 + $0x88] sm:$0xff]  ;;  %v170_v10 = vld [vmem:[%s1751_s25 + $0x90] sm:$0xff] }
  0x14   : > { %167 = vst [vmem:[%s1756_s26 + $0x40] sm:$0xff] %v166_v8  ;;  %v172_v11 = vld [vmem:[%s1751_s25 + $0x98] sm:$0xff]  ;;  %169 = vst [vmem:[%s1756_s26 + $0x48] sm:$0xff] %v168_v9  ;;  %v174_v12 = vld [vmem:[%s1751_s25 + $0xc0] sm:$0xff] }
  0x15   : > { %171 = vst [vmem:[%s1756_s26 + $0x50] sm:$0xff] %v170_v10  ;;  %173 = vst [vmem:[%s1756_s26 + $0x58] sm:$0xff] %v172_v11  ;;  %v176_v13 = vld [vmem:[%s1751_s25 + $0xc8] sm:$0xff]  ;;  %v178_v14 = vld [vmem:[%s1751_s25 + $0xd0] sm:$0xff] }
  0x16   : > { %175 = vst [vmem:[%s1756_s26 + $0x60] sm:$0xff] %v174_v12  ;;  %177 = vst [vmem:[%s1756_s26 + $0x68] sm:$0xff] %v176_v13  ;;  %v180_v15 = vld [vmem:[%s1751_s25 + $0xd8] sm:$0xff]  ;;  %v182_v16 = vld [vmem:[%s1751_s25 + $0x100] sm:$0xff] }
  0x17   : > { %179 = vst [vmem:[%s1756_s26 + $0x70] sm:$0xff] %v178_v14  ;;  %v184_v17 = vld [vmem:[%s1751_s25 + $0x108] sm:$0xff]  ;;  %181 = vst [vmem:[%s1756_s26 + $0x78] sm:$0xff] %v180_v15  ;;  %v186_v18 = vld [vmem:[%s1751_s25 + $0x110] sm:$0xff] }
  0x18   : > { %183 = vst [vmem:[%s1756_s26 + $0x80] sm:$0xff] %v182_v16  ;;  %185 = vst [vmem:[%s1756_s26 + $0x88] sm:$0xff] %v184_v17  ;;  %v188_v19 = vld [vmem:[%s1751_s25 + $0x118] sm:$0xff]  ;;  %v190_v20 = vld [vmem:[%s1751_s25 + $0x140] sm:$0xff] }
  0x19   : > { %187 = vst [vmem:[%s1756_s26 + $0x90] sm:$0xff] %v186_v18  ;;  %189 = vst [vmem:[%s1756_s26 + $0x98] sm:$0xff] %v188_v19  ;;  %v192_v21 = vld [vmem:[%s1751_s25 + $0x148] sm:$0xff]  ;;  %v194_v22 = vld [vmem:[%s1751_s25 + $0x150] sm:$0xff] }
  0x1a   : > { %191 = vst [vmem:[%s1756_s26 + $0xa0] sm:$0xff] %v190_v20  ;;  %v196_v23 = vld [vmem:[%s1751_s25 + $0x158] sm:$0xff]  ;;  %193 = vst [vmem:[%s1756_s26 + $0xa8] sm:$0xff] %v192_v21  ;;  %v198_v24 = vld [vmem:[%s1751_s25 + $0x180] sm:$0xff] }
  0x1b   : > { %195 = vst [vmem:[%s1756_s26 + $0xb0] sm:$0xff] %v194_v22  ;;  %197 = vst [vmem:[%s1756_s26 + $0xb8] sm:$0xff] %v196_v23  ;;  %v200_v25 = vld [vmem:[%s1751_s25 + $0x188] sm:$0xff]  ;;  %v202_v26 = vld [vmem:[%s1751_s25 + $0x190] sm:$0xff] }
  0x1c   : > { %199 = vst [vmem:[%s1756_s26 + $0xc0] sm:$0xff] %v198_v24  ;;  %201 = vst [vmem:[%s1756_s26 + $0xc8] sm:$0xff] %v200_v25  ;;  %v204_v27 = vld [vmem:[%s1751_s25 + $0x198] sm:$0xff]  ;;  %v206_v28 = vld [vmem:[%s1751_s25 + $0x1c0] sm:$0xff] }
  0x1d   : > { %203 = vst [vmem:[%s1756_s26 + $0xd0] sm:$0xff] %v202_v26  ;;  %v208_v29 = vld [vmem:[%s1751_s25 + $0x1c8] sm:$0xff]  ;;  %205 = vst [vmem:[%s1756_s26 + $0xd8] sm:$0xff] %v204_v27  ;;  %v210_v30 = vld [vmem:[%s1751_s25 + $0x1d0] sm:$0xff] }
  0x1e   : > { %207 = vst [vmem:[%s1756_s26 + $0xe0] sm:$0xff] %v206_v28  ;;  %209 = vst [vmem:[%s1756_s26 + $0xe8] sm:$0xff] %v208_v29  ;;  %v212_v31 = vld [vmem:[%s1751_s25 + $0x1d8] sm:$0xff]  ;;  %v214_v32 = vld [vmem:[%s1751_s25 + $0x200] sm:$0xff] }
  0x1f   : > { %211 = vst [vmem:[%s1756_s26 + $0xf0] sm:$0xff] %v210_v30  ;;  %213 = vst [vmem:[%s1756_s26 + $0xf8] sm:$0xff] %v212_v31  ;;  %v216_v33 = vld [vmem:[%s1751_s25 + $0x208] sm:$0xff]  ;;  %v218_v34 = vld [vmem:[%s1751_s25 + $0x210] sm:$0xff] }
  0x20   : > { %215 = vst [vmem:[%s1756_s26 + $0x100] sm:$0xff] %v214_v32  ;;  %v220_v35 = vld [vmem:[%s1751_s25 + $0x218] sm:$0xff]  ;;  %217 = vst [vmem:[%s1756_s26 + $0x108] sm:$0xff] %v216_v33  ;;  %v222_v36 = vld [vmem:[%s1751_s25 + $0x240] sm:$0xff] }
  0x21   : > { %219 = vst [vmem:[%s1756_s26 + $0x110] sm:$0xff] %v218_v34  ;;  %221 = vst [vmem:[%s1756_s26 + $0x118] sm:$0xff] %v220_v35  ;;  %v224_v37 = vld [vmem:[%s1751_s25 + $0x248] sm:$0xff]  ;;  %v226_v38 = vld [vmem:[%s1751_s25 + $0x250] sm:$0xff] }
  0x22   : > { %223 = vst [vmem:[%s1756_s26 + $0x120] sm:$0xff] %v222_v36  ;;  %225 = vst [vmem:[%s1756_s26 + $0x128] sm:$0xff] %v224_v37  ;;  %v228_v39 = vld [vmem:[%s1751_s25 + $0x258] sm:$0xff]  ;;  %v230_v40 = vld [vmem:[%s1751_s25 + $0x280] sm:$0xff] }
  0x23   : > { %227 = vst [vmem:[%s1756_s26 + $0x130] sm:$0xff] %v226_v38  ;;  %v232_v41 = vld [vmem:[%s1751_s25 + $0x288] sm:$0xff]  ;;  %229 = vst [vmem:[%s1756_s26 + $0x138] sm:$0xff] %v228_v39  ;;  %v234_v42 = vld [vmem:[%s1751_s25 + $0x290] sm:$0xff] }
  0x24   : > { %231 = vst [vmem:[%s1756_s26 + $0x140] sm:$0xff] %v230_v40  ;;  %233 = vst [vmem:[%s1756_s26 + $0x148] sm:$0xff] %v232_v41  ;;  %v236_v43 = vld [vmem:[%s1751_s25 + $0x298] sm:$0xff]  ;;  %v238_v44 = vld [vmem:[%s1751_s25 + $0x2c0] sm:$0xff] }
  0x25   : > { %235 = vst [vmem:[%s1756_s26 + $0x150] sm:$0xff] %v234_v42  ;;  %237 = vst [vmem:[%s1756_s26 + $0x158] sm:$0xff] %v236_v43  ;;  %v240_v45 = vld [vmem:[%s1751_s25 + $0x2c8] sm:$0xff]  ;;  %v242_v46 = vld [vmem:[%s1751_s25 + $0x2d0] sm:$0xff] }
  0x26   : > { %239 = vst [vmem:[%s1756_s26 + $0x160] sm:$0xff] %v238_v44  ;;  %v244_v47 = vld [vmem:[%s1751_s25 + $0x2d8] sm:$0xff]  ;;  %241 = vst [vmem:[%s1756_s26 + $0x168] sm:$0xff] %v240_v45  ;;  %v246_v48 = vld [vmem:[%s1751_s25 + $0x300] sm:$0xff] }
  0x27   : > { %243 = vst [vmem:[%s1756_s26 + $0x170] sm:$0xff] %v242_v46  ;;  %245 = vst [vmem:[%s1756_s26 + $0x178] sm:$0xff] %v244_v47  ;;  %v248_v49 = vld [vmem:[%s1751_s25 + $0x308] sm:$0xff]  ;;  %v250_v50 = vld [vmem:[%s1751_s25 + $0x310] sm:$0xff] }
  0x28   : > { %247 = vst [vmem:[%s1756_s26 + $0x180] sm:$0xff] %v246_v48  ;;  %249 = vst [vmem:[%s1756_s26 + $0x188] sm:$0xff] %v248_v49  ;;  %v252_v51 = vld [vmem:[%s1751_s25 + $0x318] sm:$0xff]  ;;  %v254_v52 = vld [vmem:[%s1751_s25 + $0x340] sm:$0xff] }
  0x29   : > { %251 = vst [vmem:[%s1756_s26 + $0x190] sm:$0xff] %v250_v50  ;;  %v256_v53 = vld [vmem:[%s1751_s25 + $0x348] sm:$0xff]  ;;  %253 = vst [vmem:[%s1756_s26 + $0x198] sm:$0xff] %v252_v51  ;;  %v258_v54 = vld [vmem:[%s1751_s25 + $0x350] sm:$0xff] }
  0x2a   : > { %255 = vst [vmem:[%s1756_s26 + $0x1a0] sm:$0xff] %v254_v52  ;;  %257 = vst [vmem:[%s1756_s26 + $0x1a8] sm:$0xff] %v256_v53  ;;  %v260_v55 = vld [vmem:[%s1751_s25 + $0x358] sm:$0xff]  ;;  %v262_v56 = vld [vmem:[%s1751_s25 + $0x380] sm:$0xff] }
  0x2b   : > { %259 = vst [vmem:[%s1756_s26 + $0x1b0] sm:$0xff] %v258_v54  ;;  %261 = vst [vmem:[%s1756_s26 + $0x1b8] sm:$0xff] %v260_v55  ;;  %v264_v57 = vld [vmem:[%s1751_s25 + $0x388] sm:$0xff]  ;;  %v266_v58 = vld [vmem:[%s1751_s25 + $0x390] sm:$0xff] }
  0x2c   : > { %263 = vst [vmem:[%s1756_s26 + $0x1c0] sm:$0xff] %v262_v56  ;;  %v268_v59 = vld [vmem:[%s1751_s25 + $0x398] sm:$0xff]  ;;  %265 = vst [vmem:[%s1756_s26 + $0x1c8] sm:$0xff] %v264_v57  ;;  %v270_v60 = vld [vmem:[%s1751_s25 + $0x3c0] sm:$0xff] }
  0x2d   : > { %267 = vst [vmem:[%s1756_s26 + $0x1d0] sm:$0xff] %v266_v58  ;;  %269 = vst [vmem:[%s1756_s26 + $0x1d8] sm:$0xff] %v268_v59  ;;  %v272_v61 = vld [vmem:[%s1751_s25 + $0x3c8] sm:$0xff]  ;;  %v274_v62 = vld [vmem:[%s1751_s25 + $0x3d0] sm:$0xff] }
  0x2e   : > { %271 = vst [vmem:[%s1756_s26 + $0x1e0] sm:$0xff] %v270_v60  ;;  %273 = vst [vmem:[%s1756_s26 + $0x1e8] sm:$0xff] %v272_v61  ;;  %v276_v63 = vld [vmem:[%s1751_s25 + $0x3d8] sm:$0xff]  ;;  %v278_v0 = vld [vmem:[%s1751_s25 + $0x400] sm:$0xff] }
  0x2f   : > { %275 = vst [vmem:[%s1756_s26 + $0x1f0] sm:$0xff] %v274_v62  ;;  %v280_v1 = vld [vmem:[%s1751_s25 + $0x408] sm:$0xff]  ;;  %277 = vst [vmem:[%s1756_s26 + $0x1f8] sm:$0xff] %v276_v63  ;;  %v282_v2 = vld [vmem:[%s1751_s25 + $0x410] sm:$0xff] }
  0x30   : > { %279 = vst [vmem:[%s1756_s26 + $0x200] sm:$0xff] %v278_v0  ;;  %281 = vst [vmem:[%s1756_s26 + $0x208] sm:$0xff] %v280_v1  ;;  %v284_v3 = vld [vmem:[%s1751_s25 + $0x418] sm:$0xff]  ;;  %v286_v4 = vld [vmem:[%s1751_s25 + $0x440] sm:$0xff] }
  0x31   : > { %283 = vst [vmem:[%s1756_s26 + $0x210] sm:$0xff] %v282_v2  ;;  %285 = vst [vmem:[%s1756_s26 + $0x218] sm:$0xff] %v284_v3  ;;  %v288_v5 = vld [vmem:[%s1751_s25 + $0x448] sm:$0xff]  ;;  %v290_v6 = vld [vmem:[%s1751_s25 + $0x450] sm:$0xff] }
  0x32   : > { %287 = vst [vmem:[%s1756_s26 + $0x220] sm:$0xff] %v286_v4  ;;  %v292_v7 = vld [vmem:[%s1751_s25 + $0x458] sm:$0xff]  ;;  %289 = vst [vmem:[%s1756_s26 + $0x228] sm:$0xff] %v288_v5  ;;  %v294_v8 = vld [vmem:[%s1751_s25 + $0x480] sm:$0xff] }
  0x33   : > { %291 = vst [vmem:[%s1756_s26 + $0x230] sm:$0xff] %v290_v6  ;;  %293 = vst [vmem:[%s1756_s26 + $0x238] sm:$0xff] %v292_v7  ;;  %v296_v9 = vld [vmem:[%s1751_s25 + $0x488] sm:$0xff]  ;;  %v298_v10 = vld [vmem:[%s1751_s25 + $0x490] sm:$0xff] }
  0x34   : > { %295 = vst [vmem:[%s1756_s26 + $0x240] sm:$0xff] %v294_v8  ;;  %297 = vst [vmem:[%s1756_s26 + $0x248] sm:$0xff] %v296_v9  ;;  %v300_v11 = vld [vmem:[%s1751_s25 + $0x498] sm:$0xff]  ;;  %v302_v12 = vld [vmem:[%s1751_s25 + $0x4c0] sm:$0xff] }
  0x35   : > { %299 = vst [vmem:[%s1756_s26 + $0x250] sm:$0xff] %v298_v10  ;;  %v304_v13 = vld [vmem:[%s1751_s25 + $0x4c8] sm:$0xff]  ;;  %301 = vst [vmem:[%s1756_s26 + $0x258] sm:$0xff] %v300_v11  ;;  %v306_v14 = vld [vmem:[%s1751_s25 + $0x4d0] sm:$0xff] }
  0x36   : > { %303 = vst [vmem:[%s1756_s26 + $0x260] sm:$0xff] %v302_v12  ;;  %305 = vst [vmem:[%s1756_s26 + $0x268] sm:$0xff] %v304_v13  ;;  %v308_v15 = vld [vmem:[%s1751_s25 + $0x4d8] sm:$0xff]  ;;  %v310_v16 = vld [vmem:[%s1751_s25 + $0x500] sm:$0xff] }
  0x37   : > { %307 = vst [vmem:[%s1756_s26 + $0x270] sm:$0xff] %v306_v14  ;;  %309 = vst [vmem:[%s1756_s26 + $0x278] sm:$0xff] %v308_v15  ;;  %v312_v17 = vld [vmem:[%s1751_s25 + $0x508] sm:$0xff]  ;;  %v314_v18 = vld [vmem:[%s1751_s25 + $0x510] sm:$0xff] }
  0x38   : > { %311 = vst [vmem:[%s1756_s26 + $0x280] sm:$0xff] %v310_v16  ;;  %v316_v19 = vld [vmem:[%s1751_s25 + $0x518] sm:$0xff]  ;;  %313 = vst [vmem:[%s1756_s26 + $0x288] sm:$0xff] %v312_v17  ;;  %v318_v20 = vld [vmem:[%s1751_s25 + $0x540] sm:$0xff] }
  0x39   : > { %315 = vst [vmem:[%s1756_s26 + $0x290] sm:$0xff] %v314_v18  ;;  %317 = vst [vmem:[%s1756_s26 + $0x298] sm:$0xff] %v316_v19  ;;  %v320_v21 = vld [vmem:[%s1751_s25 + $0x548] sm:$0xff]  ;;  %v322_v22 = vld [vmem:[%s1751_s25 + $0x550] sm:$0xff] }
  0x3a   : > { %319 = vst [vmem:[%s1756_s26 + $0x2a0] sm:$0xff] %v318_v20  ;;  %321 = vst [vmem:[%s1756_s26 + $0x2a8] sm:$0xff] %v320_v21  ;;  %v324_v23 = vld [vmem:[%s1751_s25 + $0x558] sm:$0xff]  ;;  %v326_v24 = vld [vmem:[%s1751_s25 + $0x580] sm:$0xff] }
  0x3b   : > { %323 = vst [vmem:[%s1756_s26 + $0x2b0] sm:$0xff] %v322_v22  ;;  %v328_v25 = vld [vmem:[%s1751_s25 + $0x588] sm:$0xff]  ;;  %325 = vst [vmem:[%s1756_s26 + $0x2b8] sm:$0xff] %v324_v23  ;;  %v330_v26 = vld [vmem:[%s1751_s25 + $0x590] sm:$0xff] }
  0x3c   : > { %327 = vst [vmem:[%s1756_s26 + $0x2c0] sm:$0xff] %v326_v24  ;;  %329 = vst [vmem:[%s1756_s26 + $0x2c8] sm:$0xff] %v328_v25  ;;  %v332_v27 = vld [vmem:[%s1751_s25 + $0x598] sm:$0xff]  ;;  %v334_v28 = vld [vmem:[%s1751_s25 + $0x5c0] sm:$0xff] }
  0x3d   : > { %331 = vst [vmem:[%s1756_s26 + $0x2d0] sm:$0xff] %v330_v26  ;;  %333 = vst [vmem:[%s1756_s26 + $0x2d8] sm:$0xff] %v332_v27  ;;  %v336_v29 = vld [vmem:[%s1751_s25 + $0x5c8] sm:$0xff]  ;;  %v338_v30 = vld [vmem:[%s1751_s25 + $0x5d0] sm:$0xff] }
  0x3e   : > { %335 = vst [vmem:[%s1756_s26 + $0x2e0] sm:$0xff] %v334_v28  ;;  %v340_v31 = vld [vmem:[%s1751_s25 + $0x5d8] sm:$0xff]  ;;  %337 = vst [vmem:[%s1756_s26 + $0x2e8] sm:$0xff] %v336_v29  ;;  %v342_v32 = vld [vmem:[%s1751_s25 + $0x600] sm:$0xff] }
  0x3f   : > { %339 = vst [vmem:[%s1756_s26 + $0x2f0] sm:$0xff] %v338_v30  ;;  %341 = vst [vmem:[%s1756_s26 + $0x2f8] sm:$0xff] %v340_v31  ;;  %v344_v33 = vld [vmem:[%s1751_s25 + $0x608] sm:$0xff]  ;;  %v346_v34 = vld [vmem:[%s1751_s25 + $0x610] sm:$0xff] }
  0x40   : > { %343 = vst [vmem:[%s1756_s26 + $0x300] sm:$0xff] %v342_v32  ;;  %345 = vst [vmem:[%s1756_s26 + $0x308] sm:$0xff] %v344_v33  ;;  %v348_v35 = vld [vmem:[%s1751_s25 + $0x618] sm:$0xff]  ;;  %v350_v36 = vld [vmem:[%s1751_s25 + $0x640] sm:$0xff] }
  0x41   : > { %347 = vst [vmem:[%s1756_s26 + $0x310] sm:$0xff] %v346_v34  ;;  %v352_v37 = vld [vmem:[%s1751_s25 + $0x648] sm:$0xff]  ;;  %349 = vst [vmem:[%s1756_s26 + $0x318] sm:$0xff] %v348_v35  ;;  %v354_v38 = vld [vmem:[%s1751_s25 + $0x650] sm:$0xff] }
  0x42   : > { %351 = vst [vmem:[%s1756_s26 + $0x320] sm:$0xff] %v350_v36  ;;  %353 = vst [vmem:[%s1756_s26 + $0x328] sm:$0xff] %v352_v37  ;;  %v356_v39 = vld [vmem:[%s1751_s25 + $0x658] sm:$0xff]  ;;  %v358_v40 = vld [vmem:[%s1751_s25 + $0x680] sm:$0xff] }
  0x43   : > { %355 = vst [vmem:[%s1756_s26 + $0x330] sm:$0xff] %v354_v38  ;;  %357 = vst [vmem:[%s1756_s26 + $0x338] sm:$0xff] %v356_v39  ;;  %v360_v41 = vld [vmem:[%s1751_s25 + $0x688] sm:$0xff]  ;;  %v362_v42 = vld [vmem:[%s1751_s25 + $0x690] sm:$0xff] }
  0x44   : > { %359 = vst [vmem:[%s1756_s26 + $0x340] sm:$0xff] %v358_v40  ;;  %v364_v43 = vld [vmem:[%s1751_s25 + $0x698] sm:$0xff]  ;;  %361 = vst [vmem:[%s1756_s26 + $0x348] sm:$0xff] %v360_v41  ;;  %v366_v44 = vld [vmem:[%s1751_s25 + $0x6c0] sm:$0xff] }
  0x45   : > { %363 = vst [vmem:[%s1756_s26 + $0x350] sm:$0xff] %v362_v42  ;;  %365 = vst [vmem:[%s1756_s26 + $0x358] sm:$0xff] %v364_v43  ;;  %v368_v45 = vld [vmem:[%s1751_s25 + $0x6c8] sm:$0xff]  ;;  %v370_v46 = vld [vmem:[%s1751_s25 + $0x6d0] sm:$0xff] }
  0x46   : > { %367 = vst [vmem:[%s1756_s26 + $0x360] sm:$0xff] %v366_v44  ;;  %369 = vst [vmem:[%s1756_s26 + $0x368] sm:$0xff] %v368_v45  ;;  %v372_v47 = vld [vmem:[%s1751_s25 + $0x6d8] sm:$0xff]  ;;  %v374_v48 = vld [vmem:[%s1751_s25 + $0x700] sm:$0xff] }
  0x47   : > { %371 = vst [vmem:[%s1756_s26 + $0x370] sm:$0xff] %v370_v46  ;;  %v376_v49 = vld [vmem:[%s1751_s25 + $0x708] sm:$0xff]  ;;  %373 = vst [vmem:[%s1756_s26 + $0x378] sm:$0xff] %v372_v47  ;;  %v378_v50 = vld [vmem:[%s1751_s25 + $0x710] sm:$0xff] }
  0x48   : > { %375 = vst [vmem:[%s1756_s26 + $0x380] sm:$0xff] %v374_v48  ;;  %377 = vst [vmem:[%s1756_s26 + $0x388] sm:$0xff] %v376_v49  ;;  %v380_v51 = vld [vmem:[%s1751_s25 + $0x718] sm:$0xff]  ;;  %v382_v52 = vld [vmem:[%s1751_s25 + $0x740] sm:$0xff] }
  0x49   : > { %379 = vst [vmem:[%s1756_s26 + $0x390] sm:$0xff] %v378_v50  ;;  %381 = vst [vmem:[%s1756_s26 + $0x398] sm:$0xff] %v380_v51  ;;  %v384_v53 = vld [vmem:[%s1751_s25 + $0x748] sm:$0xff]  ;;  %v386_v54 = vld [vmem:[%s1751_s25 + $0x750] sm:$0xff] }
  0x4a   : > { %383 = vst [vmem:[%s1756_s26 + $0x3a0] sm:$0xff] %v382_v52  ;;  %v388_v55 = vld [vmem:[%s1751_s25 + $0x758] sm:$0xff]  ;;  %385 = vst [vmem:[%s1756_s26 + $0x3a8] sm:$0xff] %v384_v53  ;;  %v390_v56 = vld [vmem:[%s1751_s25 + $0x780] sm:$0xff] }
  0x4b   : > { %387 = vst [vmem:[%s1756_s26 + $0x3b0] sm:$0xff] %v386_v54  ;;  %389 = vst [vmem:[%s1756_s26 + $0x3b8] sm:$0xff] %v388_v55  ;;  %v392_v57 = vld [vmem:[%s1751_s25 + $0x788] sm:$0xff]  ;;  %v394_v58 = vld [vmem:[%s1751_s25 + $0x790] sm:$0xff] }
  0x4c   : > { %391 = vst [vmem:[%s1756_s26 + $0x3c0] sm:$0xff] %v390_v56  ;;  %393 = vst [vmem:[%s1756_s26 + $0x3c8] sm:$0xff] %v392_v57  ;;  %v396_v59 = vld [vmem:[%s1751_s25 + $0x798] sm:$0xff]  ;;  %v398_v60 = vld [vmem:[%s1751_s25 + $0x7c0] sm:$0xff] }
  0x4d   : > { %395 = vst [vmem:[%s1756_s26 + $0x3d0] sm:$0xff] %v394_v58  ;;  %v400_v61 = vld [vmem:[%s1751_s25 + $0x7c8] sm:$0xff]  ;;  %397 = vst [vmem:[%s1756_s26 + $0x3d8] sm:$0xff] %v396_v59  ;;  %v402_v62 = vld [vmem:[%s1751_s25 + $0x7d0] sm:$0xff] }
  0x4e   : > { %399 = vst [vmem:[%s1756_s26 + $0x3e0] sm:$0xff] %v398_v60  ;;  %401 = vst [vmem:[%s1756_s26 + $0x3e8] sm:$0xff] %v400_v61  ;;  %v404_v63 = vld [vmem:[%s1751_s25 + $0x7d8] sm:$0xff] }
  0x4f   : > { %403 = vst [vmem:[%s1756_s26 + $0x3f0] sm:$0xff] %v402_v62  ;;  %405 = vst [vmem:[%s1756_s26 + $0x3f8] sm:$0xff] %v404_v63 }
  0x50 PF: > { %p1494_p5 = scmp.ge.s32.totalorder %s1694_s14, 1  ;;  %p410_p6 = scmp.lt.s32.totalorder %s1694_s14, 3 }
  0x52   : > { %p411_p7 = pnand %p1494_p5, %p410_p6 }
  0x53   : > { %s417_s27 = sand.u32 (!%p411_p7), 1, %s1686_s12   ;;  %s1496_s7 = sshll.u32 (!%p411_p7), %s1487_s15, 3 }
  0x54   : > { %414 = sbr.rel (%p411_p7) target bundleno = 437 (0x1b5), region = 51  ;;  %s1495_s30 = sshll.u32 (!%p411_p7), %s417_s27, 10 }
  0x55   : > { %s2023_s4 = scalar_lea.vmem (!%p411_p7), [#allocation2], %s1495_s30  ;;  %p442_p8 = scmp.lt.s32.totalorder (!%p411_p7), %s1496_s7, 15 }
  0x59   : > { %v2017_v0 = vld.sshfl [vmem:[%s2179_s0] sm:$0x33 pattern:$0x76325410]  ;;  %v505_v4 = vld [vmem:[%s2023_s4 + $0x1c8] sm:$0xff]  ;;  %v1696_v28 = vmov 0  }
  0x5a   : > { %v2021_v1 = vcombine.high %v2017_v0, %v2017_v0  ;;  %v504_v2 = vld [vmem:[%s2023_s4 + $0x1c0] sm:$0xff]  ;;  %v509_v6 = vld [vmem:[%s2023_s4 + $0x1e8] sm:$0xff]  ;;  %1655 = vset.pattern.permute.xlu0 %v1696_v28  ;;  %s2187_s7 = smov (!%p442_p8, %s1496_s7), 15 }
  0x5b   : > { %v508_v3 = vld [vmem:[%s2023_s4 + $0x1e0] sm:$0xff]  ;;  %v1558_v10 = vcombine.high %v505_v4, %v509_v6  ;;  %v1557_v11 = vcombine.low %v505_v4, %v509_v6  ;;  %v497_v13 = vld [vmem:[%s2023_s4 + $0x188] sm:$0xff]  ;;  %s1497_s8 = sshll.u32 %s2187_s7, 2 }
  0x5c   : > { %1265 = vmatprep.mubr.bf16.mxu0 %v2021_v1  ;;  %1306 = vmatprep.mubr.bf16.mxu1 %v2021_v1  ;;  %v1556_v5 = vcombine.high %v504_v2, %v508_v3  ;;  %v1555_v7 = vcombine.low %v504_v2, %v508_v3  ;;  %v496_v8 = vld [vmem:[%s2023_s4 + $0x180] sm:$0xff]  ;;  %v501_v14 = vld [vmem:[%s2023_s4 + $0x1a8] sm:$0xff]  ;;  %s445_s11 = scalar_lea.vmem %s2182_s3, %s1497_s8 }
  0x5d   : > { %v500_v9 = vld [vmem:[%s2023_s4 + $0x1a0] sm:$0xff]  ;;  %v1550_v16 = vcombine.high %v497_v13, %v501_v14  ;;  %v489_v18 = vld [vmem:[%s2023_s4 + $0x148] sm:$0xff]  ;;  %1274 = vmatprep.subr.bf16.mxu1 %v1558_v10  ;;  %v1549_v21 = vcombine.low %v497_v13, %v501_v14 }
  0x5e   : > { %v1548_v12 = vcombine.high %v496_v8, %v500_v9  ;;  %v488_v15 = vld [vmem:[%s2023_s4 + $0x140] sm:$0xff]  ;;  %1233 = vmatprep.subr.bf16.mxu0 %v1556_v5  ;;  %v493_v19 = vld [vmem:[%s2023_s4 + $0x168] sm:$0xff]  ;;  %v1547_v20 = vcombine.low %v496_v8, %v500_v9  ;;  %1275 = vmatpush1.bf16.msra.mxu1 %v1557_v11 }
  0x5f   : > { %v492_v17 = vld [vmem:[%s2023_s4 + $0x160] sm:$0xff]  ;;  %1234 = vmatpush1.bf16.msra.mxu0 %v1555_v7  ;;  %1276 = vmatprep.subr.bf16.mxu1 %v1550_v16  ;;  %v1542_v23 = vcombine.high %v489_v18, %v493_v19  ;;  %v481_v26 = vld [vmem:[%s2023_s4 + $0x108] sm:$0xff]  ;;  %v1541_v30 = vcombine.low %v489_v18, %v493_v19 }
  0x60   : > { %1235 = vmatprep.subr.bf16.mxu0 %v1548_v12  ;;  %v1540_v22 = vcombine.high %v488_v15, %v492_v17  ;;  %v480_v24 = vld [vmem:[%s2023_s4 + $0x100] sm:$0xff]  ;;  %v485_v27 = vld [vmem:[%s2023_s4 + $0x128] sm:$0xff]  ;;  %v1539_v29 = vcombine.low %v488_v15, %v492_v17 }
  0x61   : > { %v484_v25 = vld [vmem:[%s2023_s4 + $0x120] sm:$0xff]  ;;  %v1534_v32 = vcombine.high %v481_v26, %v485_v27  ;;  %v473_v35 = vld [vmem:[%s2023_s4 + $0xc8] sm:$0xff]  ;;  %v1533_v38 = vcombine.low %v481_v26, %v485_v27 }
  0x62   : > { %1277 = vmatpush1.bf16.msra.mxu1 %v1549_v21  ;;  %v1532_v31 = vcombine.high %v480_v24, %v484_v25  ;;  %v472_v33 = vld [vmem:[%s2023_s4 + $0xc0] sm:$0xff]  ;;  %v477_v36 = vld [vmem:[%s2023_s4 + $0xe8] sm:$0xff]  ;;  %v1531_v37 = vcombine.low %v480_v24, %v484_v25 }
  0x63   : > { %1236 = vmatpush1.bf16.msra.mxu0 %v1547_v20  ;;  %1278 = vmatprep.subr.bf16.mxu1 %v1542_v23  ;;  %v476_v34 = vld [vmem:[%s2023_s4 + $0xe0] sm:$0xff]  ;;  %v1526_v40 = vcombine.high %v473_v35, %v477_v36  ;;  %v465_v43 = vld [vmem:[%s2023_s4 + $0x88] sm:$0xff]  ;;  %v1525_v46 = vcombine.low %v473_v35, %v477_v36 }
  0x64   : > { %1237 = vmatprep.subr.bf16.mxu0 %v1540_v22  ;;  %v1524_v39 = vcombine.high %v472_v33, %v476_v34  ;;  %v464_v41 = vld [vmem:[%s2023_s4 + $0x80] sm:$0xff]  ;;  %v469_v44 = vld [vmem:[%s2023_s4 + $0xa8] sm:$0xff]  ;;  %v1523_v45 = vcombine.low %v472_v33, %v476_v34 }
  0x65   : > { %v468_v42 = vld [vmem:[%s2023_s4 + $0xa0] sm:$0xff]  ;;  %v1518_v48 = vcombine.high %v465_v43, %v469_v44  ;;  %v457_v51 = vld [vmem:[%s2023_s4 + $0x48] sm:$0xff]  ;;  %v1517_v54 = vcombine.low %v465_v43, %v469_v44 }
  0x66   : > { %1279 = vmatpush1.bf16.msra.mxu1 %v1541_v30  ;;  %v1516_v47 = vcombine.high %v464_v41, %v468_v42  ;;  %v456_v49 = vld [vmem:[%s2023_s4 + $0x40] sm:$0xff]  ;;  %v461_v52 = vld [vmem:[%s2023_s4 + $0x68] sm:$0xff]  ;;  %v1515_v53 = vcombine.low %v464_v41, %v468_v42 }
  0x67   : > { %1238 = vmatpush1.bf16.msra.mxu0 %v1539_v29  ;;  %1280 = vmatprep.subr.bf16.mxu1 %v1534_v32  ;;  %v460_v50 = vld [vmem:[%s2023_s4 + $0x60] sm:$0xff]  ;;  %v1510_v56 = vcombine.high %v457_v51, %v461_v52  ;;  %v449_v59 = vld [vmem:[%s2023_s4 + $0x8] sm:$0xff]  ;;  %v1509_v62 = vcombine.low %v457_v51, %v461_v52 }
  0x68   : > { %1239 = vmatprep.subr.bf16.mxu0 %v1532_v31  ;;  %v1508_v55 = vcombine.high %v456_v49, %v460_v50  ;;  %v448_v57 = vld [vmem:[%s2023_s4] sm:$0xff]  ;;  %v453_v60 = vld [vmem:[%s2023_s4 + $0x28] sm:$0xff]  ;;  %v1507_v61 = vcombine.low %v456_v49, %v460_v50 }
  0x69   : > { %v452_v58 = vld [vmem:[%s2023_s4 + $0x20] sm:$0xff]  ;;  %v1502_v2 = vcombine.high %v449_v59, %v453_v60  ;;  %v569_v5 = vld [vmem:[%s2023_s4 + $0x3c8] sm:$0xff]  ;;  %v1501_v8 = vcombine.low %v449_v59, %v453_v60 }
  0x6a   : > { %1281 = vmatpush1.bf16.msra.mxu1 %v1533_v38  ;;  %v1500_v63 = vcombine.high %v448_v57, %v452_v58  ;;  %v568_v3 = vld [vmem:[%s2023_s4 + $0x3c0] sm:$0xff]  ;;  %v573_v6 = vld [vmem:[%s2023_s4 + $0x3e8] sm:$0xff]  ;;  %v1499_v7 = vcombine.low %v448_v57, %v452_v58 }
  0x6b   : > { %1240 = vmatpush1.bf16.msra.mxu0 %v1531_v37  ;;  %1282 = vmatprep.subr.bf16.mxu1 %v1526_v40  ;;  %v572_v4 = vld [vmem:[%s2023_s4 + $0x3e0] sm:$0xff]  ;;  %v1622_v10 = vcombine.high %v569_v5, %v573_v6  ;;  %v561_v13 = vld [vmem:[%s2023_s4 + $0x388] sm:$0xff]  ;;  %v1621_v16 = vcombine.low %v569_v5, %v573_v6  ;;  %v506_v6 = vld [vmem:[%s2023_s4 + $0x1d0] sm:$0xff] }
  0x6c   : > { %1241 = vmatprep.subr.bf16.mxu0 %v1524_v39  ;;  %v1620_v9 = vcombine.high %v568_v3, %v572_v4  ;;  %v560_v11 = vld [vmem:[%s2023_s4 + $0x380] sm:$0xff]  ;;  %v565_v14 = vld [vmem:[%s2023_s4 + $0x3a8] sm:$0xff]  ;;  %v1619_v15 = vcombine.low %v568_v3, %v572_v4 }
  0x6d   : > { %v564_v12 = vld [vmem:[%s2023_s4 + $0x3a0] sm:$0xff]  ;;  %v1614_v18 = vcombine.high %v561_v13, %v565_v14  ;;  %v553_v21 = vld [vmem:[%s2023_s4 + $0x348] sm:$0xff]  ;;  %v1613_v24 = vcombine.low %v561_v13, %v565_v14  ;;  %v498_v14 = vld [vmem:[%s2023_s4 + $0x190] sm:$0xff] }
  0x6e   : > { %1283 = vmatpush1.bf16.msra.mxu1 %v1525_v46  ;;  %v1612_v17 = vcombine.high %v560_v11, %v564_v12  ;;  %v552_v19 = vld [vmem:[%s2023_s4 + $0x340] sm:$0xff]  ;;  %v557_v22 = vld [vmem:[%s2023_s4 + $0x368] sm:$0xff]  ;;  %v1611_v23 = vcombine.low %v560_v11, %v564_v12 }
  0x6f   : > { %1242 = vmatpush1.bf16.msra.mxu0 %v1523_v45  ;;  %1284 = vmatprep.subr.bf16.mxu1 %v1518_v48  ;;  %v556_v20 = vld [vmem:[%s2023_s4 + $0x360] sm:$0xff]  ;;  %v1606_v26 = vcombine.high %v553_v21, %v557_v22  ;;  %v545_v29 = vld [vmem:[%s2023_s4 + $0x308] sm:$0xff]  ;;  %v1605_v32 = vcombine.low %v553_v21, %v557_v22  ;;  %v490_v22 = vld [vmem:[%s2023_s4 + $0x150] sm:$0xff] }
  0x70   : > { %1243 = vmatprep.subr.bf16.mxu0 %v1516_v47  ;;  %v1604_v25 = vcombine.high %v552_v19, %v556_v20  ;;  %v544_v27 = vld [vmem:[%s2023_s4 + $0x300] sm:$0xff]  ;;  %v549_v30 = vld [vmem:[%s2023_s4 + $0x328] sm:$0xff]  ;;  %v1603_v31 = vcombine.low %v552_v19, %v556_v20 }
  0x71   : > { %v548_v28 = vld [vmem:[%s2023_s4 + $0x320] sm:$0xff]  ;;  %v1598_v34 = vcombine.high %v545_v29, %v549_v30  ;;  %v537_v38 = vld [vmem:[%s2023_s4 + $0x2c8] sm:$0xff]  ;;  %v1597_v41 = vcombine.low %v545_v29, %v549_v30  ;;  %v482_v30 = vld [vmem:[%s2023_s4 + $0x110] sm:$0xff] }
  0x72   : > { %1285 = vmatpush1.bf16.msra.mxu1 %v1517_v54  ;;  %v1596_v33 = vcombine.high %v544_v27, %v548_v28  ;;  %v536_v35 = vld [vmem:[%s2023_s4 + $0x2c0] sm:$0xff]  ;;  %v541_v39 = vld [vmem:[%s2023_s4 + $0x2e8] sm:$0xff]  ;;  %v1595_v40 = vcombine.low %v544_v27, %v548_v28 }
  0x73   : > { %1244 = vmatpush1.bf16.msra.mxu0 %v1515_v53  ;;  %1286 = vmatprep.subr.bf16.mxu1 %v1510_v56  ;;  %v540_v36 = vld [vmem:[%s2023_s4 + $0x2e0] sm:$0xff]  ;;  %v1590_v43 = vcombine.high %v537_v38, %v541_v39  ;;  %v529_v46 = vld [vmem:[%s2023_s4 + $0x288] sm:$0xff]  ;;  %v1589_v49 = vcombine.low %v537_v38, %v541_v39  ;;  %v474_v38 = vld [vmem:[%s2023_s4 + $0xd0] sm:$0xff] }
  0x74   : > { %1245 = vmatprep.subr.bf16.mxu0 %v1508_v55  ;;  %v576_v37 = vld [vmem:[%s2181_s2] sm:$0x7]  ;;  %v1588_v42 = vcombine.high %v536_v35, %v540_v36  ;;  %v533_v47 = vld [vmem:[%s2023_s4 + $0x2a8] sm:$0xff]  ;;  %v1587_v48 = vcombine.low %v536_v35, %v540_v36  ;;  %v478_v39 = vld [vmem:[%s2023_s4 + $0xf0] sm:$0xff] }
  0x75   : > { %579 = vperm.xlu0 %1655, %v576_v37   ;;  %v528_v44 = vld [vmem:[%s2023_s4 + $0x280] sm:$0xff]  ;;  %v1582_v51 = vcombine.high %v529_v46, %v533_v47  ;;  %v521_v54 = vld [vmem:[%s2023_s4 + $0x248] sm:$0xff]  ;;  %v1581_v57 = vcombine.low %v529_v46, %v533_v47  ;;  %v470_v46 = vld [vmem:[%s2023_s4 + $0xb0] sm:$0xff] }
  0x76   : > { %1287 = vmatpush1.bf16.msra.mxu1 %v1509_v62  ;;  %v532_v45 = vld [vmem:[%s2023_s4 + $0x2a0] sm:$0xff]  ;;  %v525_v55 = vld [vmem:[%s2023_s4 + $0x268] sm:$0xff]  ;;  %v467_v47 = vld [vmem:[%s2023_s4 + $0x98] sm:$0xff] }
  0x77   : > { %1246 = vmatpush1.bf16.msra.mxu0 %v1507_v61  ;;  %1288 = vmatprep.subr.bf16.mxu1 %v1502_v2  ;;  %v1580_v50 = vcombine.high %v528_v44, %v532_v45  ;;  %v520_v52 = vld [vmem:[%s2023_s4 + $0x240] sm:$0xff]  ;;  %v1579_v56 = vcombine.low %v528_v44, %v532_v45  ;;  %v1574_v59 = vcombine.high %v521_v54, %v525_v55  ;;  %v513_v62 = vld [vmem:[%s2023_s4 + $0x208] sm:$0xff]  ;;  %v466_v45 = vld [vmem:[%s2023_s4 + $0x90] sm:$0xff] }
  0x78   : > { %1247 = vmatprep.subr.bf16.mxu0 %v1500_v63  ;;  %v524_v53 = vld [vmem:[%s2023_s4 + $0x260] sm:$0xff]  ;;  %v517_v63 = vld [vmem:[%s2023_s4 + $0x228] sm:$0xff]  ;;  %v1573_v3 = vcombine.low %v521_v54, %v525_v55  ;;  %v462_v54 = vld [vmem:[%s2023_s4 + $0x70] sm:$0xff] }
  0x79   : > { %v1572_v58 = vcombine.high %v520_v52, %v524_v53  ;;  %v512_v60 = vld [vmem:[%s2023_s4 + $0x200] sm:$0xff]  ;;  %v1571_v2 = vcombine.low %v520_v52, %v524_v53  ;;  %v1566_v5 = vcombine.high %v513_v62, %v517_v63  ;;  %v1565_v11 = vcombine.low %v513_v62, %v517_v63  ;;  %v458_v53 = vld [vmem:[%s2023_s4 + $0x50] sm:$0xff]  ;;  %v459_v55 = vld [vmem:[%s2023_s4 + $0x58] sm:$0xff] }
  0x7a   : > { %1289 = vmatpush1.bf16.msra.mxu1 %v1501_v8  ;;  %v516_v61 = vld [vmem:[%s2023_s4 + $0x220] sm:$0xff]  ;;  %v507_v8 = vld [vmem:[%s2023_s4 + $0x1d8] sm:$0xff]  ;;  %v454_v62 = vld [vmem:[%s2023_s4 + $0x30] sm:$0xff] }
  0x7b   : > { %1248 = vmatpush1.bf16.msra.mxu0 %v1499_v7  ;;  %1290 = vmatprep.subr.bf16.mxu1 %v1622_v10  ;;  %v1564_v4 = vcombine.high %v512_v60, %v516_v61  ;;  %v510_v7 = vld [vmem:[%s2023_s4 + $0x1f0] sm:$0xff]  ;;  %v1563_v10 = vcombine.low %v512_v60, %v516_v61  ;;  %v451_v63 = vld [vmem:[%s2023_s4 + $0x18] sm:$0xff] }
  0x7c   : > { %1249 = vmatprep.subr.bf16.mxu0 %v1620_v9  ;;  %v511_v9 = vld [vmem:[%s2023_s4 + $0x1f8] sm:$0xff]  ;;  %v1560_v12 = vcombine.high %v506_v6, %v510_v7  ;;  %v450_v61 = vld [vmem:[%s2023_s4 + $0x10] sm:$0xff] }
  0x7d   : > { %v1562_v13 = vcombine.high %v507_v8, %v511_v9  ;;  %v1561_v19 = vcombine.low %v507_v8, %v511_v9  ;;  %v574_v8 = vld [vmem:[%s2023_s4 + $0x3f0] sm:$0xff]  ;;  %v571_v9 = vld [vmem:[%s2023_s4 + $0x3d8] sm:$0xff] }
  0x7e   : > { %1291 = vmatpush2.bf16.msra.mxu1 %v1621_v16  ;;  %v499_v16 = vld [vmem:[%s2023_s4 + $0x198] sm:$0xff] }
  0x7f   : > { %1250 = vmatpush2.bf16.msra.mxu0 %v1619_v15  ;;  %1292 = vmatprep.subr.bf16.mxu1 %v1614_v18  ;;  %v502_v15 = vld [vmem:[%s2023_s4 + $0x1b0] sm:$0xff]  ;;  %v1559_v18 = vcombine.low %v506_v6, %v510_v7 }
  0x80   : > { %1251 = vmatprep.subr.bf16.mxu0 %v1612_v17  ;;  %v503_v17 = vld [vmem:[%s2023_s4 + $0x1b8] sm:$0xff]  ;;  %v1552_v20 = vcombine.high %v498_v14, %v502_v15  ;;  %v570_v7 = vld [vmem:[%s2023_s4 + $0x3d0] sm:$0xff] }
  0x81   : > { %v1554_v21 = vcombine.high %v499_v16, %v503_v17  ;;  %v1553_v27 = vcombine.low %v499_v16, %v503_v17  ;;  %v566_v16 = vld [vmem:[%s2023_s4 + $0x3b0] sm:$0xff]  ;;  %v563_v17 = vld [vmem:[%s2023_s4 + $0x398] sm:$0xff] }
  0x82   : > { %1293 = vmatpush2.bf16.msra.mxu1 %v1613_v24  ;;  %v491_v24 = vld [vmem:[%s2023_s4 + $0x158] sm:$0xff] }
  0x83   : > { %1252 = vmatpush2.bf16.msra.mxu0 %v1611_v23  ;;  %1294 = vmatprep.subr.bf16.mxu1 %v1606_v26  ;;  %v494_v23 = vld [vmem:[%s2023_s4 + $0x170] sm:$0xff]  ;;  %v1551_v26 = vcombine.low %v498_v14, %v502_v15 }
  0x84   : > { %1253 = vmatprep.subr.bf16.mxu0 %v1604_v25  ;;  %v495_v25 = vld [vmem:[%s2023_s4 + $0x178] sm:$0xff]  ;;  %v1544_v28 = vcombine.high %v490_v22, %v494_v23  ;;  %v562_v15 = vld [vmem:[%s2023_s4 + $0x390] sm:$0xff] }
  0x85   : > { %v1546_v29 = vcombine.high %v491_v24, %v495_v25  ;;  %v1545_v35 = vcombine.low %v491_v24, %v495_v25  ;;  %v558_v24 = vld [vmem:[%s2023_s4 + $0x370] sm:$0xff]  ;;  %v555_v25 = vld [vmem:[%s2023_s4 + $0x358] sm:$0xff] }
  0x86   : > { %1295 = vmatpush2.bf16.msra.mxu1 %v1605_v32  ;;  %v483_v32 = vld [vmem:[%s2023_s4 + $0x118] sm:$0xff] }
  0x87   : > { %1254 = vmatpush2.bf16.msra.mxu0 %v1603_v31  ;;  %1296 = vmatprep.subr.bf16.mxu1 %v1598_v34  ;;  %v486_v31 = vld [vmem:[%s2023_s4 + $0x130] sm:$0xff]  ;;  %v1543_v34 = vcombine.low %v490_v22, %v494_v23 }
  0x88   : > { %1255 = vmatprep.subr.bf16.mxu0 %v1596_v33  ;;  %v487_v33 = vld [vmem:[%s2023_s4 + $0x138] sm:$0xff]  ;;  %v1536_v36 = vcombine.high %v482_v30, %v486_v31  ;;  %v554_v23 = vld [vmem:[%s2023_s4 + $0x350] sm:$0xff] }
  0x89   : > { %v1538_v37 = vcombine.high %v483_v32, %v487_v33 }
  0x8a   : > { %1297 = vmatpush2.bf16.msra.mxu1 %v1597_v41  ;;  %v479_v41 = vld [vmem:[%s2023_s4 + $0xf8] sm:$0xff] }
  0x8b   : > { %1256 = vmatpush2.bf16.msra.mxu0 %v1595_v40  ;;  %1298 = vmatprep.subr.bf16.mxu1 %v1590_v43  ;;  %v475_v40 = vld [vmem:[%s2023_s4 + $0xd8] sm:$0xff]  ;;  %v1528_v43 = vcombine.high %v474_v38, %v478_v39 }
  0x8c   : > { %1257 = vmatprep.subr.bf16.mxu0 %v1588_v42  ;;  %v1535_v42 = vcombine.low %v482_v30, %v486_v31  ;;  %v1530_v44 = vcombine.high %v475_v40, %v479_v41  ;;  %v546_v31 = vld [vmem:[%s2023_s4 + $0x310] sm:$0xff] }
  0x8e   : > { %1299 = vmatpush2.bf16.msra.mxu1 %v1589_v49  ;;  %v1527_v49 = vcombine.low %v474_v38, %v478_v39  ;;  %v538_v39 = vld [vmem:[%s2023_s4 + $0x2d0] sm:$0xff] }
  0x8f   : > { %1258 = vmatpush2.bf16.msra.mxu0 %v1587_v48  ;;  %1300 = vmatprep.subr.bf16.mxu1 %v1582_v51  ;;  %v471_v48 = vld [vmem:[%s2023_s4 + $0xb8] sm:$0xff]  ;;  %v1520_v51 = vcombine.high %v466_v45, %v470_v46 }
  0x90   : > { %1259 = vmatprep.subr.bf16.mxu0 %v1580_v50  ;;  %v1529_v50 = vcombine.low %v475_v40, %v479_v41  ;;  %v1522_v52 = vcombine.high %v467_v47, %v471_v48  ;;  %v542_v40 = vld [vmem:[%s2023_s4 + $0x2f0] sm:$0xff]  ;;  %v539_v41 = vld [vmem:[%s2023_s4 + $0x2d8] sm:$0xff] }
  0x92   : > { %1301 = vmatpush2.bf16.msra.mxu1 %v1581_v57  ;;  %v1519_v57 = vcombine.low %v466_v45, %v470_v46  ;;  %v530_v46 = vld [vmem:[%s2023_s4 + $0x290] sm:$0xff] }
  0x93   : > { %1260 = vmatpush2.bf16.msra.mxu0 %v1579_v56  ;;  %1302 = vmatprep.subr.bf16.mxu1 %v1574_v59  ;;  %v463_v56 = vld [vmem:[%s2023_s4 + $0x78] sm:$0xff]  ;;  %v1512_v59 = vcombine.high %v458_v53, %v462_v54 }
  0x94   : > { %1261 = vmatprep.subr.bf16.mxu0 %v1572_v58  ;;  %v1521_v58 = vcombine.low %v467_v47, %v471_v48  ;;  %v1514_v60 = vcombine.high %v459_v55, %v463_v56  ;;  %v534_v47 = vld [vmem:[%s2023_s4 + $0x2b0] sm:$0xff]  ;;  %v531_v48 = vld [vmem:[%s2023_s4 + $0x298] sm:$0xff] }
  0x96   : > { %1303 = vmatpush2.bf16.msra.mxu1 %v1573_v3  ;;  %v1511_v3 = vcombine.low %v458_v53, %v462_v54  ;;  %v522_v54 = vld [vmem:[%s2023_s4 + $0x250] sm:$0xff] }
  0x97   : > { %1262 = vmatpush2.bf16.msra.mxu0 %v1571_v2  ;;  %1304 = vmatprep.subr.bf16.mxu1 %v1566_v5  ;;  %v455_v2 = vld [vmem:[%s2023_s4 + $0x38] sm:$0xff]  ;;  %v1504_v5 = vcombine.high %v450_v61, %v454_v62 }
  0x98   : > { %1263 = vmatprep.subr.bf16.mxu0 %v1564_v4  ;;  %v1513_v4 = vcombine.low %v459_v55, %v463_v56  ;;  %v1506_v6 = vcombine.high %v451_v63, %v455_v2  ;;  %v526_v55 = vld [vmem:[%s2023_s4 + $0x270] sm:$0xff]  ;;  %v523_v56 = vld [vmem:[%s2023_s4 + $0x258] sm:$0xff] }
  0x9a   : > { %1305 = vmatpush2.bf16.msra.mxu1 %v1565_v11  ;;  %v1503_v11 = vcombine.low %v450_v61, %v454_v62  ;;  %v514_v62 = vld [vmem:[%s2023_s4 + $0x210] sm:$0xff] }
  0x9b   : > { %1264 = vmatpush2.bf16.msra.mxu0 %v1563_v10  ;;  %1356 = vmatprep.subr.bf16.mxu1 %v1562_v13  ;;  %v575_v10 = vld [vmem:[%s2023_s4 + $0x3f8] sm:$0xff]  ;;  %v1624_v13 = vcombine.high %v570_v7, %v574_v8 }
  0x9c   : > { %1315 = vmatprep.subr.bf16.mxu0 %v1560_v12  ;;  %v1505_v12 = vcombine.low %v451_v63, %v455_v2  ;;  %v1626_v14 = vcombine.high %v571_v9, %v575_v10  ;;  %v518_v63 = vld [vmem:[%s2023_s4 + $0x230] sm:$0xff]  ;;  %v515_v2 = vld [vmem:[%s2023_s4 + $0x218] sm:$0xff] }
  0x9d   : > { %1307 = vmatmul.mubr.bf16.vlgmr.msra.gmra.mxu1 %v2017_v0 }
  0x9e   : > { %1266 = vmatmul.mubr.bf16.vlgmr.msra.gmra.mxu0 %v2017_v0  ;;  %1357 = vmatpush1.bf16.msra.mxu1 %v1561_v19  ;;  %v1623_v19 = vcombine.low %v570_v7, %v574_v8  ;;  %v1567_v8 = vcombine.low %v514_v62, %v518_v63 }
  0x9f   : > { %1316 = vmatpush1.bf16.msra.mxu0 %v1559_v18  ;;  %1358 = vmatprep.subr.bf16.mxu1 %v1554_v21  ;;  %v567_v18 = vld [vmem:[%s2023_s4 + $0x3b8] sm:$0xff]  ;;  %v1616_v21 = vcombine.high %v562_v15, %v566_v16 }
  0xa0   : > { %1317 = vmatprep.subr.bf16.mxu0 %v1552_v20  ;;  %1347 = vmatprep.mubr.bf16.mxu0 %v2021_v1  ;;  %v1625_v20 = vcombine.low %v571_v9, %v575_v10  ;;  %v1618_v22 = vcombine.high %v563_v17, %v567_v18 }
  0xa1   : > { %1388 = vmatprep.mubr.bf16.mxu1 %v2021_v1  ;;  %v1537_v1 = vcombine.low %v483_v32, %v487_v33  ;;  %v550_v32 = vld [vmem:[%s2023_s4 + $0x330] sm:$0xff]  ;;  %v547_v33 = vld [vmem:[%s2023_s4 + $0x318] sm:$0xff] }
  0xa2   : > { %1359 = vmatpush1.bf16.msra.mxu1 %v1553_v27  ;;  %v1615_v27 = vcombine.low %v562_v15, %v566_v16 }
  0xa3   : > { %1318 = vmatpush1.bf16.msra.mxu0 %v1551_v26  ;;  %1360 = vmatprep.subr.bf16.mxu1 %v1546_v29  ;;  %v559_v26 = vld [vmem:[%s2023_s4 + $0x378] sm:$0xff]  ;;  %v1608_v29 = vcombine.high %v554_v23, %v558_v24 }
  0xa4   : > { %1319 = vmatprep.subr.bf16.mxu0 %v1544_v28  ;;  %v1617_v28 = vcombine.low %v563_v17, %v567_v18  ;;  %v1610_v30 = vcombine.high %v555_v25, %v559_v26 }
  0xa6   : > { %1361 = vmatpush1.bf16.msra.mxu1 %v1545_v35  ;;  %v1607_v35 = vcombine.low %v554_v23, %v558_v24 }
  0xa7   : > { %1320 = vmatpush1.bf16.msra.mxu0 %v1543_v34  ;;  %1362 = vmatprep.subr.bf16.mxu1 %v1538_v37  ;;  %v551_v34 = vld [vmem:[%s2023_s4 + $0x338] sm:$0xff]  ;;  %v1600_v37 = vcombine.high %v546_v31, %v550_v32 }
  0xa8   : > { %1321 = vmatprep.subr.bf16.mxu0 %v1536_v36  ;;  %v1609_v36 = vcombine.low %v555_v25, %v559_v26  ;;  %v1602_v38 = vcombine.high %v547_v33, %v551_v34 }
  0xaa   : > { %1363 = vmatpush1.bf16.msra.mxu1 %v1537_v1  ;;  %v1599_v1 = vcombine.low %v546_v31, %v550_v32 }
  0xab   : > { %1322 = vmatpush1.bf16.msra.mxu0 %v1535_v42  ;;  %1364 = vmatprep.subr.bf16.mxu1 %v1530_v44  ;;  %v543_v42 = vld [vmem:[%s2023_s4 + $0x2f8] sm:$0xff]  ;;  %v1592_v44 = vcombine.high %v538_v39, %v542_v40 }
  0xac   : > { %1323 = vmatprep.subr.bf16.mxu0 %v1528_v43  ;;  %v1601_v43 = vcombine.low %v547_v33, %v551_v34  ;;  %v1594_v45 = vcombine.high %v539_v41, %v543_v42 }
  0xae   : > { %1365 = vmatpush1.bf16.msra.mxu1 %v1529_v50  ;;  %v1591_v50 = vcombine.low %v538_v39, %v542_v40 }
  0xaf   : > { %1324 = vmatpush1.bf16.msra.mxu0 %v1527_v49  ;;  %1366 = vmatprep.subr.bf16.mxu1 %v1522_v52  ;;  %v535_v49 = vld [vmem:[%s2023_s4 + $0x2b8] sm:$0xff]  ;;  %v1584_v52 = vcombine.high %v530_v46, %v534_v47 }
  0xb0   : > { %1325 = vmatprep.subr.bf16.mxu0 %v1520_v51  ;;  %v1593_v51 = vcombine.low %v539_v41, %v543_v42  ;;  %v1586_v53 = vcombine.high %v531_v48, %v535_v49 }
  0xb2   : > { %1367 = vmatpush1.bf16.msra.mxu1 %v1521_v58  ;;  %v1583_v58 = vcombine.low %v530_v46, %v534_v47 }
  0xb3   : > { %1326 = vmatpush1.bf16.msra.mxu0 %v1519_v57  ;;  %1368 = vmatprep.subr.bf16.mxu1 %v1514_v60  ;;  %v527_v57 = vld [vmem:[%s2023_s4 + $0x278] sm:$0xff]  ;;  %v1576_v60 = vcombine.high %v522_v54, %v526_v55 }
  0xb4   : > { %1327 = vmatprep.subr.bf16.mxu0 %v1512_v59  ;;  %v1585_v59 = vcombine.low %v531_v48, %v535_v49  ;;  %v1578_v61 = vcombine.high %v523_v56, %v527_v57 }
  0xb6   : > { %1369 = vmatpush1.bf16.msra.mxu1 %v1513_v4  ;;  %v1575_v4 = vcombine.low %v522_v54, %v526_v55 }
  0xb7   : > { %1328 = vmatpush1.bf16.msra.mxu0 %v1511_v3  ;;  %1370 = vmatprep.subr.bf16.mxu1 %v1506_v6  ;;  %v519_v3 = vld [vmem:[%s2023_s4 + $0x238] sm:$0xff]  ;;  %v1568_v6 = vcombine.high %v514_v62, %v518_v63 }
  0xb8   : > { %1329 = vmatprep.subr.bf16.mxu0 %v1504_v5  ;;  %v1577_v5 = vcombine.low %v523_v56, %v527_v57  ;;  %v1570_v7 = vcombine.high %v515_v2, %v519_v3  ;;  %v1569_v9 = vcombine.low %v515_v2, %v519_v3 }
  0xba   : > { %1371 = vmatpush1.bf16.msra.mxu1 %v1505_v12 }
  0xbb   : > { %1330 = vmatpush1.bf16.msra.mxu0 %v1503_v11  ;;  %1372 = vmatprep.subr.bf16.mxu1 %v1626_v14 }
  0xbc   : > { %1331 = vmatprep.subr.bf16.mxu0 %v1624_v13 }
  0xbe   : > { %1373 = vmatpush2.bf16.msra.mxu1 %v1625_v20 }
  0xbf   : > { %1332 = vmatpush2.bf16.msra.mxu0 %v1623_v19  ;;  %1374 = vmatprep.subr.bf16.mxu1 %v1618_v22 }
  0xc0   : > { %1333 = vmatprep.subr.bf16.mxu0 %v1616_v21 }
  0xc2   : > { %1375 = vmatpush2.bf16.msra.mxu1 %v1617_v28 }
  0xc3   : > { %1334 = vmatpush2.bf16.msra.mxu0 %v1615_v27  ;;  %1376 = vmatprep.subr.bf16.mxu1 %v1610_v30 }
  0xc4   : > { %1335 = vmatprep.subr.bf16.mxu0 %v1608_v29 }
  0xc6   : > { %1377 = vmatpush2.bf16.msra.mxu1 %v1609_v36 }
  0xc7   : > { %1336 = vmatpush2.bf16.msra.mxu0 %v1607_v35  ;;  %1378 = vmatprep.subr.bf16.mxu1 %v1602_v38 }
  0xc8   : > { %1337 = vmatprep.subr.bf16.mxu0 %v1600_v37 }
  0xca   : > { %1379 = vmatpush2.bf16.msra.mxu1 %v1601_v43 }
  0xcb   : > { %1338 = vmatpush2.bf16.msra.mxu0 %v1599_v1  ;;  %1380 = vmatprep.subr.bf16.mxu1 %v1594_v45 }
  0xcc   : > { %1339 = vmatprep.subr.bf16.mxu0 %v1592_v44 }
  0xce   : > { %1381 = vmatpush2.bf16.msra.mxu1 %v1593_v51 }
  0xcf   : > { %1340 = vmatpush2.bf16.msra.mxu0 %v1591_v50  ;;  %1382 = vmatprep.subr.bf16.mxu1 %v1586_v53 }
  0xd0   : > { %1341 = vmatprep.subr.bf16.mxu0 %v1584_v52 }
  0xd2   : > { %1383 = vmatpush2.bf16.msra.mxu1 %v1585_v59 }
  0xd3   : > { %1342 = vmatpush2.bf16.msra.mxu0 %v1583_v58  ;;  %1384 = vmatprep.subr.bf16.mxu1 %v1578_v61 }
  0xd4   : > { %1343 = vmatprep.subr.bf16.mxu0 %v1576_v60 }
  0xd6   : > { %1385 = vmatpush2.bf16.msra.mxu1 %v1577_v5 }
  0xd7   : > { %1344 = vmatpush2.bf16.msra.mxu0 %v1575_v4  ;;  %1386 = vmatprep.subr.bf16.mxu1 %v1570_v7 }
  0xd8   : > { %1345 = vmatprep.subr.bf16.mxu0 %v1568_v6 }
  0xda   : > { %1387 = vmatpush2.bf16.msra.mxu1 %v1569_v9 }
  0xdb   : > { %1346 = vmatpush2.bf16.msra.mxu0 %v1567_v8 }
  0xdd   : > { %1389 = vmatmul.mubr.bf16.vlgmr.msra.gmra.mxu1 %v2017_v0 }
  0xde   : > { %1348 = vmatmul.mubr.bf16.vlgmr.msra.gmra.mxu0 %v2017_v0 }
  0xf0   : > { %v580_v10 = vpop.permute.xlu0 %579 }
 0x15d   : > { %v1308_v12 = vpop.f32.mrf.mxu1 }
 0x15e   : > { %v1267_v11 = vpop.f32.mrf.mxu0  ;;  %v1309_v14 = vadd.f32 %v1308_v12, %v580_v10 }
 0x15f   : > { %v1268_v13 = vadd.f32 %v1267_v11, %v580_v10  ;;  %v1310_v17 = vpop.f32.mrf.mxu1 }
 0x160   : > { %v1269_v15 = vpop.f32.mrf.mxu0  ;;  %v1311_v18 = vadd.f32 %v1310_v17, %v580_v10 }
 0x161   : > { %1656 = vtanh.f32 %v1268_v13  ;;  %v1270_v16 = vadd.f32 %v1269_v15, %v580_v10  ;;  %v1312_v20 = vpop.f32.mrf.mxu1 }
 0x162   : > { %1658 = vtanh.f32 %v1309_v14  ;;  %v1271_v19 = vpop.f32.mrf.mxu0 }
 0x163   : > { %1660 = vtanh.f32 %v1270_v16  ;;  %v1313_v0 = vpop.f32.mrf.mxu1 }
 0x164   : > { %1662 = vtanh.f32 %v1311_v18  ;;  %v1272_v21 = vpop.f32.mrf.mxu0 }
 0x16e   : > { %v1657_v22 = vpop.eup %1656 }
 0x16f   : > { %v1659_v23 = vpop.eup %1658 }
 0x170   : > { %v1661_v24 = vpop.eup %1660 }
 0x171   : > { %v1663_v25 = vpop.eup %1662  ;;  %v1413_v26 = vcombine.low %v1657_v22, %v1661_v24 }
 0x172   : > { %v1414_v27 = vcombine.low %v1659_v23, %v1663_v25 }
 0x173   : > { %1421 = vst [vmem:[%s445_s11] sm:$0x77] %v1413_v26 }
 0x174   : > { %1422 = vst [vmem:[%s445_s11 + $0x8] sm:$0x77] %v1414_v27 }
 0x19d   : > { %v1390_v30 = vpop.f32.mrf.mxu1 }
 0x19e   : > { %v1349_v28 = vpop.f32.mrf.mxu0  ;;  %v1391_v31 = vadd.f32 %v1390_v30, %v580_v10 }
 0x19f   : > { %v1350_v29 = vadd.f32 %v1349_v28, %v580_v10  ;;  %v1392_v34 = vpop.f32.mrf.mxu1 }
 0x1a0   : > { %v1351_v32 = vpop.f32.mrf.mxu0  ;;  %v1393_v35 = vadd.f32 %v1392_v34, %v580_v10 }
 0x1a1   : > { %1664 = vtanh.f32 %v1350_v29  ;;  %v1352_v33 = vadd.f32 %v1351_v32, %v580_v10  ;;  %v1394_v37 = vpop.f32.mrf.mxu1 }
 0x1a2   : > { %1666 = vtanh.f32 %v1391_v31  ;;  %v1353_v36 = vpop.f32.mrf.mxu0 }
 0x1a3   : > { %1668 = vtanh.f32 %v1352_v33  ;;  %v1395_v39 = vpop.f32.mrf.mxu1 }
 0x1a4   : > { %1670 = vtanh.f32 %v1393_v35  ;;  %v1354_v38 = vpop.f32.mrf.mxu0 }
 0x1ae   : > { %v1665_v40 = vpop.eup %1664 }
 0x1af   : > { %v1667_v41 = vpop.eup %1666 }
 0x1b0   : > { %v1669_v42 = vpop.eup %1668 }
 0x1b1   : > { %v1671_v1 = vpop.eup %1670  ;;  %v1415_v43 = vcombine.low %v1665_v40, %v1669_v42 }
 0x1b2   : > { %v1416_v44 = vcombine.low %v1667_v41, %v1671_v1 }
 0x1b3   : > { %1423 = vst [vmem:[%s445_s11 + $0x10] sm:$0x77] %v1415_v43 }
 0x1b4   : > { %1424 = vst [vmem:[%s445_s11 + $0x18] sm:$0x77] %v1416_v44 }
 0x1b5 PF: > { %p10_p9 = scmp.ge.s32.totalorder %s1734_s16, 4   ;;  %s2183_s12 = smov %s1690_s13 }
 0x1b6   : > { %s2184_s13 = smov %s1743_s19  ;;  %s2185_s14 = smov %s1734_s16 }
 0x1b7   :  { %12 = sbr.rel (!%p10_p9) target bundleno = 2 (0x2), region = 90 }

</bundles_post_ra>
